<compile_context>
chip_gen: v7x
topology: tpu7x:2x2x1
jax: 0.10.0
libtpu: 0.0.40
codegen_flags: <defaults>
</compile_context>

<pallas_src>
import jax
import jax.numpy as jnp
from jax.experimental import pallas as pl
from jax.experimental.pallas import tpu as pltpu

# ---------------- small, self-consistent ViT config (scaled-down B/16) ----------------
BATCH = 2
IN_CH = 3
IMG = 16
PATCH = 4
GRID = IMG // PATCH              # 4
N_PATCH = GRID * GRID            # 16
TOKENS = N_PATCH + 1             # 17 (16 patches + cls)
TP = 24                          # tokens padded to a sublane multiple (8)
DIM = 32                         # hidden size
HEADS = 4
HEAD_DIM = DIM // HEADS          # 8
MLP_DIM = 4 * DIM                # 128
LAYERS = 2
NUM_CLASSES = 1000               # ViT head -> 1000, then nn.Linear(1000,1) (folded at init)
LN_EPS = 1e-6
CPP = IN_CH * PATCH * PATCH      # 48 (already a multiple of 8)

# Token layout inside the kernel: rows 0..15 = patches, row 16 = cls, rows 17..23 = pad.
# (Self-attention is permutation-equivariant, so the cls output is unchanged.)
CLS_ROW = N_PATCH                # 16

# ---------------- slab32 layout (lane width = DIM = 32) ----------------
R_WPE = 0                                  # (CPP, DIM)   patch-embed weight
R_BASE = R_WPE + CPP                       # (TP, DIM)    pos + cls + conv-bias rows (pads = 0)
R_FIN = R_BASE + TP                        # 8 rows: lnf_w, lnf_b, folded head w, head bias
R_LAYER0 = R_FIN + 8
# per-layer relative row offsets
V_LN1W, V_LN1B, V_BK, V_BO, V_LN2W, V_LN2B, V_B2 = 0, 1, 2, 3, 4, 5, 6
V_BQ = 8                                   # rows 8..11: per-head column-padded scaled q bias
R_WK = 16                                  # (DIM, DIM)
R_WQ = R_WK + DIM                          # (HEADS*DIM, DIM) per-head column-padded scaled Wq
R_VOW = R_WQ + HEADS * DIM                 # (HEADS*DIM, DIM) per-head Wv_h @ Wo_h
R_W2 = R_VOW + HEADS * DIM                 # (MLP_DIM, DIM)
LAYER_ROWS = R_W2 + MLP_DIM                # 432 (multiple of 8)
R32_TOTAL = R_LAYER0 + LAYERS * LAYER_ROWS # 944

# ---------------- slab128 layout (lane width = MLP_DIM = 128) ----------------
L128_ROWS = DIM + 8                        # 32 rows W1 + 1 row b1 + 7 pad
L128_TOTAL = LAYERS * L128_ROWS            # 80


# ---------------- in-kernel helpers ----------------
def _layernorm(x, w, b):
    mu = jnp.mean(x, axis=-1, keepdims=True)
    var = jnp.mean((x - mu) ** 2, axis=-1, keepdims=True)
    return (x - mu) * jax.lax.rsqrt(var + LN_EPS) * w + b


def _gelu(x):
    # exact erf form (torch nn.GELU default); erf goes to the EUP on Mosaic.
    return 0.5 * x * (1.0 + jax.lax.erf(x * 0.7071067811865476))


# ---------------- single fused Pallas kernel (one grid step per image) ----------------
def _vit_kernel(xp_ref, w32_ref, w128_ref, o_ref):
    f32 = jnp.float32

    def row(r):                       # (1, DIM) static single-row view of the lane-32 slab
        return w32_ref[r:r + 1, :]

    # ---- patch embedding; cls token, conv bias and positions come from the 'base' rows ----
    pe = jnp.dot(xp_ref[0], w32_ref[R_WPE:R_WPE + CPP, :],
                 preferred_element_type=f32)                              # (N_PATCH, D)
    x = jnp.concatenate(
        [pe + w32_ref[R_BASE:R_BASE + N_PATCH, :],                        # patch rows
         w32_ref[R_BASE + N_PATCH:R_BASE + TP, :]],                       # cls row + zero pads
        axis=0)                                                           # (TP, D)

    # additive key-padding mask: pad key positions (>= TOKENS) get -1e30
    col = jax.lax.broadcasted_iota(jnp.int32, (1, TP), 1)
    mbias = jnp.where(col < TOKENS, 0.0, -1e30).astype(f32)               # (1, TP)

    for l in range(LAYERS):                                               # fully unrolled
        L0 = R_LAYER0 + l * LAYER_ROWS

        # ---- multi-head self-attention (pre-norm) ----
        h = _layernorm(x, row(L0 + V_LN1W), row(L0 + V_LN1B))
        k = jnp.dot(h, w32_ref[L0 + R_WK:L0 + R_WK + DIM, :],
                    preferred_element_type=f32) + row(L0 + V_BK)          # (TP, D)
        kT = k.T                                                          # one transpose / layer
        proj = jnp.zeros((TP, DIM), f32)
        for hh in range(HEADS):
            # Column-padded per-head Wq (zeros outside this head's feature columns) keeps
            # every per-head tensor lane-32 and starting at lane 0; scale folded at init.
            q = jnp.dot(h, w32_ref[L0 + R_WQ + hh * DIM:L0 + R_WQ + (hh + 1) * DIM, :],
                        preferred_element_type=f32) + row(L0 + V_BQ + hh)
            s = jnp.dot(q, kT, preferred_element_type=f32) + mbias        # (TP, TP)
            s = s - jnp.max(s, axis=-1, keepdims=True)
            e = jnp.exp(s)
            p = e * pl.reciprocal(jnp.sum(e, axis=-1, keepdims=True), approx=True)
            # Wv_h @ Wo_h is pre-folded into one (D, D) weight (bv@Wo folded into bo).
            vo = jnp.dot(h, w32_ref[L0 + R_VOW + hh * DIM:L0 + R_VOW + (hh + 1) * DIM, :],
                         preferred_element_type=f32)                      # (TP, D)
            proj = proj + jnp.dot(p, vo, preferred_element_type=f32)
        x = x + proj + row(L0 + V_BO)

        # ---- MLP (pre-norm) ----
        h2 = _layernorm(x, row(L0 + V_LN2W), row(L0 + V_LN2B))
        m = _gelu(jnp.dot(h2, w128_ref[l * L128_ROWS:l * L128_ROWS + DIM, :],
                          preferred_element_type=f32)
                  + w128_ref[l * L128_ROWS + DIM:l * L128_ROWS + DIM + 1, :])
        x = x + jnp.dot(m, w32_ref[L0 + R_W2:L0 + R_W2 + MLP_DIM, :],
                        preferred_element_type=f32) + row(L0 + V_B2)

    # ---- final LN + folded fc@head + sigmoid on the class-token row only ----
    cls = x[CLS_ROW:CLS_ROW + 1, :]
    hf = _layernorm(cls, row(R_FIN + 0), row(R_FIN + 1))
    y = jnp.sum(hf * row(R_FIN + 2), axis=-1, keepdims=True) \
        + w32_ref[R_FIN + 3:R_FIN + 4, 0:1]
    o_ref[...] = jax.nn.sigmoid(y).reshape(1, 1, 1)


# ---------------- wrapper ----------------
def vit_forward(x, kp):
    B = x.shape[0]
    assert B == BATCH, "kernel is specialized to BATCH"
    # Conv2d(stride=PATCH) as matmul: pure layout glue (the only wrapper-side prep).
    xp = x.reshape(B, IN_CH, GRID, PATCH, GRID, PATCH)
    xp = xp.transpose(0, 2, 4, 1, 3, 5).reshape(B, N_PATCH, CPP)

    out = pl.pallas_call(
        _vit_kernel,
        out_shape=jax.ShapeDtypeStruct((B, 1, 1), jnp.float32),
        grid=(B,),
        in_specs=[
            pl.BlockSpec((1, N_PATCH, CPP), lambda b: (b, 0, 0)),      # per-image patches
            pl.BlockSpec((R32_TOTAL, DIM), lambda b: (0, 0)),          # lane-32 weight slab
            pl.BlockSpec((L128_TOTAL, MLP_DIM), lambda b: (0, 0)),     # lane-128 weight slab
        ],
        out_specs=pl.BlockSpec((1, 1, 1), lambda b: (b, 0, 0)),
        compiler_params=pltpu.CompilerParams(dimension_semantics=("parallel",)),
    )(xp, kp["w32"], kp["w128"])
    return out.reshape(B, 1)


# ---------------- deterministic parameter init ----------------
def init_params(key):
    keys = iter(jax.random.split(key, 64))

    def nrm(shape, std=0.02):
        return std * jax.random.normal(next(keys), shape, dtype=jnp.float32)

    p = {
        "patch_w": nrm((DIM, IN_CH, PATCH, PATCH)),
        "patch_b": jnp.zeros((DIM,), jnp.float32),
        "cls": nrm((1, 1, DIM)),
        "pos": nrm((1, TOKENS, DIM)),
        "layers": [],
        "ln_w": jnp.ones((DIM,), jnp.float32),
        "ln_b": jnp.zeros((DIM,), jnp.float32),
        "fc_w": nrm((DIM, NUM_CLASSES)),
        "fc_b": jnp.zeros((NUM_CLASSES,), jnp.float32),
        "head_w": nrm((NUM_CLASSES, 1)),
        "head_b": jnp.zeros((1,), jnp.float32),
    }
    for _ in range(LAYERS):
        p["layers"].append(dict(
            ln1_w=jnp.ones((DIM,), jnp.float32), ln1_b=jnp.zeros((DIM,), jnp.float32),
            wq=nrm((DIM, DIM)), bq=jnp.zeros((DIM,), jnp.float32),
            wk=nrm((DIM, DIM)), bk=jnp.zeros((DIM,), jnp.float32),
            wv=nrm((DIM, DIM)), bv=jnp.zeros((DIM,), jnp.float32),
            wo=nrm((DIM, DIM)), bo=jnp.zeros((DIM,), jnp.float32),
            ln2_w=jnp.ones((DIM,), jnp.float32), ln2_b=jnp.zeros((DIM,), jnp.float32),
            w1=nrm((DIM, MLP_DIM)), b1=jnp.zeros((MLP_DIM,), jnp.float32),
            w2=nrm((MLP_DIM, DIM)), b2=jnp.zeros((DIM,), jnp.float32),
        ))
    return p


# ---------------- one-time packing of all weights into two contiguous slabs ----------------
def prepare_params(p):
    scale = 1.0 / (HEAD_DIM ** 0.5)

    w32 = jnp.zeros((R32_TOTAL, DIM), jnp.float32)
    w128 = jnp.zeros((L128_TOTAL, MLP_DIM), jnp.float32)

    # patch-embed weight (Conv2d(stride=PATCH) folded into a matmul)
    w32 = w32.at[R_WPE:R_WPE + CPP].set(p["patch_w"].reshape(DIM, CPP).T)

    # base rows: patch rows = conv-bias + pos[1..16], cls row = cls + pos[0], pad rows = 0
    base = jnp.zeros((TP, DIM), jnp.float32)
    base = base.at[:N_PATCH].set(p["pos"][0, 1:TOKENS] + p["patch_b"][None, :])
    base = base.at[CLS_ROW].set(p["pos"][0, 0] + p["cls"].reshape(DIM))
    w32 = w32.at[R_BASE:R_BASE + TP].set(base)

    # final LN + folded (fc @ linear) classifier head
    w32 = w32.at[R_FIN + 0].set(p["ln_w"])
    w32 = w32.at[R_FIN + 1].set(p["ln_b"])
    w32 = w32.at[R_FIN + 2].set((p["fc_w"] @ p["head_w"]).reshape(DIM))
    w32 = w32.at[R_FIN + 3, 0].set((p["fc_b"] @ p["head_w"] + p["head_b"])[0])

    for l, lp in enumerate(p["layers"]):
        L0 = R_LAYER0 + l * LAYER_ROWS
        w32 = w32.at[L0 + V_LN1W].set(lp["ln1_w"])
        w32 = w32.at[L0 + V_LN1B].set(lp["ln1_b"])
        w32 = w32.at[L0 + V_BK].set(lp["bk"])
        w32 = w32.at[L0 + V_BO].set(lp["bo"] + lp["bv"] @ lp["wo"])      # bv@Wo folded in
        w32 = w32.at[L0 + V_LN2W].set(lp["ln2_w"])
        w32 = w32.at[L0 + V_LN2B].set(lp["ln2_b"])
        w32 = w32.at[L0 + V_B2].set(lp["b2"])
        w32 = w32.at[L0 + R_WK:L0 + R_WK + DIM].set(lp["wk"])
        w32 = w32.at[L0 + R_W2:L0 + R_W2 + MLP_DIM].set(lp["w2"])
        for hh in range(HEADS):
            cs = slice(hh * HEAD_DIM, (hh + 1) * HEAD_DIM)
            # per-head q bias / weight, column-padded to full width, 1/sqrt(hd) folded
            bqpad = jnp.zeros((DIM,), jnp.float32).at[cs].set(lp["bq"][cs] * scale)
            w32 = w32.at[L0 + V_BQ + hh].set(bqpad)
            wqpad = jnp.zeros((DIM, DIM), jnp.float32).at[:, cs].set(lp["wq"][:, cs] * scale)
            w32 = w32.at[L0 + R_WQ + hh * DIM:L0 + R_WQ + (hh + 1) * DIM].set(wqpad)
            # per-head value -> output projection folded into one (D, D) weight
            w32 = w32.at[L0 + R_VOW + hh * DIM:L0 + R_VOW + (hh + 1) * DIM].set(
                lp["wv"][:, cs] @ lp["wo"][cs, :])
        w128 = w128.at[l * L128_ROWS:l * L128_ROWS + DIM].set(lp["w1"])
        w128 = w128.at[l * L128_ROWS + DIM].set(lp["b1"])

    return {"w32": w32, "w128": w128}


if __name__ == "__main__":
    key = jax.random.PRNGKey(0)
    pkey, xkey = jax.random.split(key)
    params = init_params(pkey)
    kparams = prepare_params(params)
    x = jax.random.normal(xkey, (BATCH, IN_CH, IMG, IMG), dtype=jnp.float32)

    out = jax.jit(lambda xx: vit_forward(xx, kparams))(x)
    out = jax.block_until_ready(out)
    assert out.shape == (BATCH, 1), out.shape
    assert bool(jnp.all(jnp.isfinite(out)))
    assert bool(jnp.all((out > 0.0) & (out < 1.0)))
    print("KERNEL_OK")
</pallas_src>

<mosaic_0001>
module attributes {stable_mosaic.version = 11 : i64} {
  func.func @_vit_kernel(%arg0: i32, %arg1: memref<1x16x48xf32, #tpu.memory_space<vmem>>, %arg2: memref<944x32xf32, #tpu.memory_space<vmem>>, %arg3: memref<80x128xf32, #tpu.memory_space<vmem>>, %arg4: memref<1x1x1xf32, #tpu.memory_space<vmem>>) attributes {dimension_semantics = [#tpu.dimension_semantics<parallel>], iteration_bounds = array<i64: 2>, scalar_prefetch = 0 : i64, scratch_operands = 0 : i64, tpu.core_type = #tpu.core_type<tc>, window_params = [{transform_indices = @transform_0, window_bounds = array<i64: 1, 16, 48>}, {pipeline_mode = #tpu.pipeline_mode<synchronous>, transform_indices = @transform_1, window_bounds = array<i64: 944, 32>}, {pipeline_mode = #tpu.pipeline_mode<synchronous>, transform_indices = @transform_2, window_bounds = array<i64: 80, 128>}, {transform_indices = @transform_3, window_bounds = array<i64: 1, 1, 1>}]} {
    %c0 = arith.constant 0 : index
    %c0_0 = arith.constant 0 : index
    %c0_1 = arith.constant 0 : index
    %0 = vector.load %arg1[%c0, %c0_0, %c0_1] : memref<1x16x48xf32, #tpu.memory_space<vmem>>, vector<1x16x48xf32>
    %1 = vector.shape_cast %0 : vector<1x16x48xf32> to vector<16x48xf32>
    %c0_2 = arith.constant 0 : index
    %c0_3 = arith.constant 0 : index
    %2 = vector.load %arg2[%c0_2, %c0_3] : memref<944x32xf32, #tpu.memory_space<vmem>>, vector<48x32xf32>
    %cst = arith.constant dense<0.000000e+00> : vector<16x32xf32>
    %3 = tpu.matmul %1, %2, %cst {dimension_numbers = #tpu.dot_dimension_numbers<[1], [0], [0], [1], [0, 0, 1, 1], [], []>} : vector<16x48xf32>, vector<48x32xf32>, vector<16x32xf32> -> vector<16x32xf32>
    %c48 = arith.constant 48 : index
    %c0_4 = arith.constant 0 : index
    %4 = vector.load %arg2[%c48, %c0_4] : memref<944x32xf32, #tpu.memory_space<vmem>>, vector<16x32xf32>
    %5 = arith.addf %3, %4 : vector<16x32xf32>
    %c64 = arith.constant 64 : index
    %c0_5 = arith.constant 0 : index
    %6 = vector.load %arg2[%c64, %c0_5] : memref<944x32xf32, #tpu.memory_space<vmem>>, vector<8x32xf32>
    %7 = tpu.concatenate %5, %6 in 0 : vector<16x32xf32>, vector<8x32xf32> -> vector<24x32xf32>
    %8 = tpu.iota {dimensions = array<i32: 1>} : vector<1x24xi32>
    %c17_i32 = arith.constant 17 : i32
    %9 = vector.broadcast %c17_i32 : i32 to vector<1x24xi32>
    %10 = arith.cmpi slt, %8, %9 : vector<1x24xi32>
    %cst_6 = arith.constant 0.000000e+00 : f32
    %cst_7 = arith.constant -1.000000e+30 : f32
    %11 = vector.broadcast %cst_6 : f32 to vector<1x24xf32>
    %12 = vector.broadcast %cst_7 : f32 to vector<1x24xf32>
    %13 = arith.select %10, %11, %12 : vector<1x24xi1>, vector<1x24xf32>
    %c80 = arith.constant 80 : index
    %c0_8 = arith.constant 0 : index
    %14 = vector.load %arg2[%c80, %c0_8] : memref<944x32xf32, #tpu.memory_space<vmem>>, vector<1x32xf32>
    %c81 = arith.constant 81 : index
    %c0_9 = arith.constant 0 : index
    %15 = vector.load %arg2[%c81, %c0_9] : memref<944x32xf32, #tpu.memory_space<vmem>>, vector<1x32xf32>
    %cst_10 = arith.constant dense<0.000000e+00> : vector<24xf32>
    %16 = vector.multi_reduction <add>, %7, %cst_10 [1] : vector<24x32xf32> to vector<24xf32>
    %17 = vector.shape_cast %16 : vector<24xf32> to vector<24x1xf32>
    %cst_11 = arith.constant 3.200000e+01 : f32
    %18 = vector.broadcast %cst_11 : f32 to vector<24x1xf32>
    %19 = arith.divf %17, %18 : vector<24x1xf32>
    %20 = vector.broadcast %19 : vector<24x1xf32> to vector<24x32xf32>
    %21 = arith.subf %7, %20 : vector<24x32xf32>
    %22 = arith.mulf %21, %21 : vector<24x32xf32>
    %cst_12 = arith.constant dense<0.000000e+00> : vector<24xf32>
    %23 = vector.multi_reduction <add>, %22, %cst_12 [1] : vector<24x32xf32> to vector<24xf32>
    %24 = vector.shape_cast %23 : vector<24xf32> to vector<24x1xf32>
    %cst_13 = arith.constant 3.200000e+01 : f32
    %25 = vector.broadcast %cst_13 : f32 to vector<24x1xf32>
    %26 = arith.divf %24, %25 : vector<24x1xf32>
    %27 = vector.broadcast %19 : vector<24x1xf32> to vector<24x32xf32>
    %28 = arith.subf %7, %27 : vector<24x32xf32>
    %cst_14 = arith.constant 9.99999997E-7 : f32
    %29 = vector.broadcast %cst_14 : f32 to vector<24x1xf32>
    %30 = arith.addf %26, %29 : vector<24x1xf32>
    %31 = math.rsqrt %30 : vector<24x1xf32>
    %32 = vector.broadcast %31 : vector<24x1xf32> to vector<24x32xf32>
    %33 = arith.mulf %28, %32 : vector<24x32xf32>
    %34 = vector.broadcast %14 : vector<1x32xf32> to vector<24x32xf32>
    %35 = arith.mulf %33, %34 : vector<24x32xf32>
    %36 = vector.broadcast %15 : vector<1x32xf32> to vector<24x32xf32>
    %37 = arith.addf %35, %36 : vector<24x32xf32>
    %c96 = arith.constant 96 : index
    %c0_15 = arith.constant 0 : index
    %38 = vector.load %arg2[%c96, %c0_15] : memref<944x32xf32, #tpu.memory_space<vmem>>, vector<32x32xf32>
    %cst_16 = arith.constant dense<0.000000e+00> : vector<24x32xf32>
    %39 = tpu.matmul %37, %38, %cst_16 {dimension_numbers = #tpu.dot_dimension_numbers<[1], [0], [0], [1], [0, 0, 1, 1], [], []>} : vector<24x32xf32>, vector<32x32xf32>, vector<24x32xf32> -> vector<24x32xf32>
    %c82 = arith.constant 82 : index
    %c0_17 = arith.constant 0 : index
    %40 = vector.load %arg2[%c82, %c0_17] : memref<944x32xf32, #tpu.memory_space<vmem>>, vector<1x32xf32>
    %41 = vector.broadcast %40 : vector<1x32xf32> to vector<24x32xf32>
    %42 = arith.addf %39, %41 : vector<24x32xf32>
    %43 = tpu.transpose %42, [1, 0] : vector<24x32xf32> -> vector<32x24xf32>
    %cst_18 = arith.constant 0.000000e+00 : f32
    %44 = vector.broadcast %cst_18 : f32 to vector<24x32xf32>
    %c128 = arith.constant 128 : index
    %c0_19 = arith.constant 0 : index
    %45 = vector.load %arg2[%c128, %c0_19] : memref<944x32xf32, #tpu.memory_space<vmem>>, vector<32x32xf32>
    %cst_20 = arith.constant dense<0.000000e+00> : vector<24x32xf32>
    %46 = tpu.matmul %37, %45, %cst_20 {dimension_numbers = #tpu.dot_dimension_numbers<[1], [0], [0], [1], [0, 0, 1, 1], [], []>} : vector<24x32xf32>, vector<32x32xf32>, vector<24x32xf32> -> vector<24x32xf32>
    %c88 = arith.constant 88 : index
    %c0_21 = arith.constant 0 : index
    %47 = vector.load %arg2[%c88, %c0_21] : memref<944x32xf32, #tpu.memory_space<vmem>>, vector<1x32xf32>
    %48 = vector.broadcast %47 : vector<1x32xf32> to vector<24x32xf32>
    %49 = arith.addf %46, %48 : vector<24x32xf32>
    %cst_22 = arith.constant dense<0.000000e+00> : vector<24x24xf32>
    %50 = tpu.matmul %49, %43, %cst_22 {dimension_numbers = #tpu.dot_dimension_numbers<[1], [0], [0], [1], [0, 0, 1, 1], [], []>} : vector<24x32xf32>, vector<32x24xf32>, vector<24x24xf32> -> vector<24x24xf32>
    %51 = vector.broadcast %13 : vector<1x24xf32> to vector<24x24xf32>
    %52 = arith.addf %50, %51 : vector<24x24xf32>
    %cst_23 = arith.constant dense<0xFF800000> : vector<24xf32>
    %53 = vector.multi_reduction <maximumf>, %52, %cst_23 [1] : vector<24x24xf32> to vector<24xf32>
    %54 = vector.shape_cast %53 : vector<24xf32> to vector<24x1xf32>
    %55 = vector.broadcast %54 : vector<24x1xf32> to vector<24x24xf32>
    %56 = arith.subf %52, %55 : vector<24x24xf32>
    %57 = math.exp %56 : vector<24x24xf32>
    %cst_24 = arith.constant dense<0.000000e+00> : vector<24xf32>
    %58 = vector.multi_reduction <add>, %57, %cst_24 [1] : vector<24x24xf32> to vector<24xf32>
    %59 = vector.shape_cast %58 : vector<24xf32> to vector<24x1xf32>
    %60 = tpu.reciprocal %59 {approx = true} : vector<24x1xf32> -> vector<24x1xf32>
    %61 = vector.broadcast %60 : vector<24x1xf32> to vector<24x24xf32>
    %62 = arith.mulf %57, %61 : vector<24x24xf32>
    %c256 = arith.constant 256 : index
    %c0_25 = arith.constant 0 : index
    %63 = vector.load %arg2[%c256, %c0_25] : memref<944x32xf32, #tpu.memory_space<vmem>>, vector<32x32xf32>
    %cst_26 = arith.constant dense<0.000000e+00> : vector<24x32xf32>
    %64 = tpu.matmul %37, %63, %cst_26 {dimension_numbers = #tpu.dot_dimension_numbers<[1], [0], [0], [1], [0, 0, 1, 1], [], []>} : vector<24x32xf32>, vector<32x32xf32>, vector<24x32xf32> -> vector<24x32xf32>
    %cst_27 = arith.constant dense<0.000000e+00> : vector<24x32xf32>
    %65 = tpu.matmul %62, %64, %cst_27 {dimension_numbers = #tpu.dot_dimension_numbers<[1], [0], [0], [1], [0, 0, 1, 1], [], []>} : vector<24x24xf32>, vector<24x32xf32>, vector<24x32xf32> -> vector<24x32xf32>
    %66 = arith.addf %44, %65 : vector<24x32xf32>
    %c160 = arith.constant 160 : index
    %c0_28 = arith.constant 0 : index
    %67 = vector.load %arg2[%c160, %c0_28] : memref<944x32xf32, #tpu.memory_space<vmem>>, vector<32x32xf32>
    %cst_29 = arith.constant dense<0.000000e+00> : vector<24x32xf32>
    %68 = tpu.matmul %37, %67, %cst_29 {dimension_numbers = #tpu.dot_dimension_numbers<[1], [0], [0], [1], [0, 0, 1, 1], [], []>} : vector<24x32xf32>, vector<32x32xf32>, vector<24x32xf32> -> vector<24x32xf32>
    %c89 = arith.constant 89 : index
    %c0_30 = arith.constant 0 : index
    %69 = vector.load %arg2[%c89, %c0_30] : memref<944x32xf32, #tpu.memory_space<vmem>>, vector<1x32xf32>
    %70 = vector.broadcast %69 : vector<1x32xf32> to vector<24x32xf32>
    %71 = arith.addf %68, %70 : vector<24x32xf32>
    %cst_31 = arith.constant dense<0.000000e+00> : vector<24x24xf32>
    %72 = tpu.matmul %71, %43, %cst_31 {dimension_numbers = #tpu.dot_dimension_numbers<[1], [0], [0], [1], [0, 0, 1, 1], [], []>} : vector<24x32xf32>, vector<32x24xf32>, vector<24x24xf32> -> vector<24x24xf32>
    %73 = vector.broadcast %13 : vector<1x24xf32> to vector<24x24xf32>
    %74 = arith.addf %72, %73 : vector<24x24xf32>
    %cst_32 = arith.constant dense<0xFF800000> : vector<24xf32>
    %75 = vector.multi_reduction <maximumf>, %74, %cst_32 [1] : vector<24x24xf32> to vector<24xf32>
    %76 = vector.shape_cast %75 : vector<24xf32> to vector<24x1xf32>
    %77 = vector.broadcast %76 : vector<24x1xf32> to vector<24x24xf32>
    %78 = arith.subf %74, %77 : vector<24x24xf32>
    %79 = math.exp %78 : vector<24x24xf32>
    %cst_33 = arith.constant dense<0.000000e+00> : vector<24xf32>
    %80 = vector.multi_reduction <add>, %79, %cst_33 [1] : vector<24x24xf32> to vector<24xf32>
    %81 = vector.shape_cast %80 : vector<24xf32> to vector<24x1xf32>
    %82 = tpu.reciprocal %81 {approx = true} : vector<24x1xf32> -> vector<24x1xf32>
    %83 = vector.broadcast %82 : vector<24x1xf32> to vector<24x24xf32>
    %84 = arith.mulf %79, %83 : vector<24x24xf32>
    %c288 = arith.constant 288 : index
    %c0_34 = arith.constant 0 : index
    %85 = vector.load %arg2[%c288, %c0_34] : memref<944x32xf32, #tpu.memory_space<vmem>>, vector<32x32xf32>
    %cst_35 = arith.constant dense<0.000000e+00> : vector<24x32xf32>
    %86 = tpu.matmul %37, %85, %cst_35 {dimension_numbers = #tpu.dot_dimension_numbers<[1], [0], [0], [1], [0, 0, 1, 1], [], []>} : vector<24x32xf32>, vector<32x32xf32>, vector<24x32xf32> -> vector<24x32xf32>
    %cst_36 = arith.constant dense<0.000000e+00> : vector<24x32xf32>
    %87 = tpu.matmul %84, %86, %cst_36 {dimension_numbers = #tpu.dot_dimension_numbers<[1], [0], [0], [1], [0, 0, 1, 1], [], []>} : vector<24x24xf32>, vector<24x32xf32>, vector<24x32xf32> -> vector<24x32xf32>
    %88 = arith.addf %66, %87 : vector<24x32xf32>
    %c192 = arith.constant 192 : index
    %c0_37 = arith.constant 0 : index
    %89 = vector.load %arg2[%c192, %c0_37] : memref<944x32xf32, #tpu.memory_space<vmem>>, vector<32x32xf32>
    %cst_38 = arith.constant dense<0.000000e+00> : vector<24x32xf32>
    %90 = tpu.matmul %37, %89, %cst_38 {dimension_numbers = #tpu.dot_dimension_numbers<[1], [0], [0], [1], [0, 0, 1, 1], [], []>} : vector<24x32xf32>, vector<32x32xf32>, vector<24x32xf32> -> vector<24x32xf32>
    %c90 = arith.constant 90 : index
    %c0_39 = arith.constant 0 : index
    %91 = vector.load %arg2[%c90, %c0_39] : memref<944x32xf32, #tpu.memory_space<vmem>>, vector<1x32xf32>
    %92 = vector.broadcast %91 : vector<1x32xf32> to vector<24x32xf32>
    %93 = arith.addf %90, %92 : vector<24x32xf32>
    %cst_40 = arith.constant dense<0.000000e+00> : vector<24x24xf32>
    %94 = tpu.matmul %93, %43, %cst_40 {dimension_numbers = #tpu.dot_dimension_numbers<[1], [0], [0], [1], [0, 0, 1, 1], [], []>} : vector<24x32xf32>, vector<32x24xf32>, vector<24x24xf32> -> vector<24x24xf32>
    %95 = vector.broadcast %13 : vector<1x24xf32> to vector<24x24xf32>
    %96 = arith.addf %94, %95 : vector<24x24xf32>
    %cst_41 = arith.constant dense<0xFF800000> : vector<24xf32>
    %97 = vector.multi_reduction <maximumf>, %96, %cst_41 [1] : vector<24x24xf32> to vector<24xf32>
    %98 = vector.shape_cast %97 : vector<24xf32> to vector<24x1xf32>
    %99 = vector.broadcast %98 : vector<24x1xf32> to vector<24x24xf32>
    %100 = arith.subf %96, %99 : vector<24x24xf32>
    %101 = math.exp %100 : vector<24x24xf32>
    %cst_42 = arith.constant dense<0.000000e+00> : vector<24xf32>
    %102 = vector.multi_reduction <add>, %101, %cst_42 [1] : vector<24x24xf32> to vector<24xf32>
    %103 = vector.shape_cast %102 : vector<24xf32> to vector<24x1xf32>
    %104 = tpu.reciprocal %103 {approx = true} : vector<24x1xf32> -> vector<24x1xf32>
    %105 = vector.broadcast %104 : vector<24x1xf32> to vector<24x24xf32>
    %106 = arith.mulf %101, %105 : vector<24x24xf32>
    %c320 = arith.constant 320 : index
    %c0_43 = arith.constant 0 : index
    %107 = vector.load %arg2[%c320, %c0_43] : memref<944x32xf32, #tpu.memory_space<vmem>>, vector<32x32xf32>
    %cst_44 = arith.constant dense<0.000000e+00> : vector<24x32xf32>
    %108 = tpu.matmul %37, %107, %cst_44 {dimension_numbers = #tpu.dot_dimension_numbers<[1], [0], [0], [1], [0, 0, 1, 1], [], []>} : vector<24x32xf32>, vector<32x32xf32>, vector<24x32xf32> -> vector<24x32xf32>
    %cst_45 = arith.constant dense<0.000000e+00> : vector<24x32xf32>
    %109 = tpu.matmul %106, %108, %cst_45 {dimension_numbers = #tpu.dot_dimension_numbers<[1], [0], [0], [1], [0, 0, 1, 1], [], []>} : vector<24x24xf32>, vector<24x32xf32>, vector<24x32xf32> -> vector<24x32xf32>
    %110 = arith.addf %88, %109 : vector<24x32xf32>
    %c224 = arith.constant 224 : index
    %c0_46 = arith.constant 0 : index
    %111 = vector.load %arg2[%c224, %c0_46] : memref<944x32xf32, #tpu.memory_space<vmem>>, vector<32x32xf32>
    %cst_47 = arith.constant dense<0.000000e+00> : vector<24x32xf32>
    %112 = tpu.matmul %37, %111, %cst_47 {dimension_numbers = #tpu.dot_dimension_numbers<[1], [0], [0], [1], [0, 0, 1, 1], [], []>} : vector<24x32xf32>, vector<32x32xf32>, vector<24x32xf32> -> vector<24x32xf32>
    %c91 = arith.constant 91 : index
    %c0_48 = arith.constant 0 : index
    %113 = vector.load %arg2[%c91, %c0_48] : memref<944x32xf32, #tpu.memory_space<vmem>>, vector<1x32xf32>
    %114 = vector.broadcast %113 : vector<1x32xf32> to vector<24x32xf32>
    %115 = arith.addf %112, %114 : vector<24x32xf32>
    %cst_49 = arith.constant dense<0.000000e+00> : vector<24x24xf32>
    %116 = tpu.matmul %115, %43, %cst_49 {dimension_numbers = #tpu.dot_dimension_numbers<[1], [0], [0], [1], [0, 0, 1, 1], [], []>} : vector<24x32xf32>, vector<32x24xf32>, vector<24x24xf32> -> vector<24x24xf32>
    %117 = vector.broadcast %13 : vector<1x24xf32> to vector<24x24xf32>
    %118 = arith.addf %116, %117 : vector<24x24xf32>
    %cst_50 = arith.constant dense<0xFF800000> : vector<24xf32>
    %119 = vector.multi_reduction <maximumf>, %118, %cst_50 [1] : vector<24x24xf32> to vector<24xf32>
    %120 = vector.shape_cast %119 : vector<24xf32> to vector<24x1xf32>
    %121 = vector.broadcast %120 : vector<24x1xf32> to vector<24x24xf32>
    %122 = arith.subf %118, %121 : vector<24x24xf32>
    %123 = math.exp %122 : vector<24x24xf32>
    %cst_51 = arith.constant dense<0.000000e+00> : vector<24xf32>
    %124 = vector.multi_reduction <add>, %123, %cst_51 [1] : vector<24x24xf32> to vector<24xf32>
    %125 = vector.shape_cast %124 : vector<24xf32> to vector<24x1xf32>
    %126 = tpu.reciprocal %125 {approx = true} : vector<24x1xf32> -> vector<24x1xf32>
    %127 = vector.broadcast %126 : vector<24x1xf32> to vector<24x24xf32>
    %128 = arith.mulf %123, %127 : vector<24x24xf32>
    %c352 = arith.constant 352 : index
    %c0_52 = arith.constant 0 : index
    %129 = vector.load %arg2[%c352, %c0_52] : memref<944x32xf32, #tpu.memory_space<vmem>>, vector<32x32xf32>
    %cst_53 = arith.constant dense<0.000000e+00> : vector<24x32xf32>
    %130 = tpu.matmul %37, %129, %cst_53 {dimension_numbers = #tpu.dot_dimension_numbers<[1], [0], [0], [1], [0, 0, 1, 1], [], []>} : vector<24x32xf32>, vector<32x32xf32>, vector<24x32xf32> -> vector<24x32xf32>
    %cst_54 = arith.constant dense<0.000000e+00> : vector<24x32xf32>
    %131 = tpu.matmul %128, %130, %cst_54 {dimension_numbers = #tpu.dot_dimension_numbers<[1], [0], [0], [1], [0, 0, 1, 1], [], []>} : vector<24x24xf32>, vector<24x32xf32>, vector<24x32xf32> -> vector<24x32xf32>
    %132 = arith.addf %110, %131 : vector<24x32xf32>
    %133 = arith.addf %7, %132 : vector<24x32xf32>
    %c83 = arith.constant 83 : index
    %c0_55 = arith.constant 0 : index
    %134 = vector.load %arg2[%c83, %c0_55] : memref<944x32xf32, #tpu.memory_space<vmem>>, vector<1x32xf32>
    %135 = vector.broadcast %134 : vector<1x32xf32> to vector<24x32xf32>
    %136 = arith.addf %133, %135 : vector<24x32xf32>
    %c84 = arith.constant 84 : index
    %c0_56 = arith.constant 0 : index
    %137 = vector.load %arg2[%c84, %c0_56] : memref<944x32xf32, #tpu.memory_space<vmem>>, vector<1x32xf32>
    %c85 = arith.constant 85 : index
    %c0_57 = arith.constant 0 : index
    %138 = vector.load %arg2[%c85, %c0_57] : memref<944x32xf32, #tpu.memory_space<vmem>>, vector<1x32xf32>
    %cst_58 = arith.constant dense<0.000000e+00> : vector<24xf32>
    %139 = vector.multi_reduction <add>, %136, %cst_58 [1] : vector<24x32xf32> to vector<24xf32>
    %140 = vector.shape_cast %139 : vector<24xf32> to vector<24x1xf32>
    %cst_59 = arith.constant 3.200000e+01 : f32
    %141 = vector.broadcast %cst_59 : f32 to vector<24x1xf32>
    %142 = arith.divf %140, %141 : vector<24x1xf32>
    %143 = vector.broadcast %142 : vector<24x1xf32> to vector<24x32xf32>
    %144 = arith.subf %136, %143 : vector<24x32xf32>
    %145 = arith.mulf %144, %144 : vector<24x32xf32>
    %cst_60 = arith.constant dense<0.000000e+00> : vector<24xf32>
    %146 = vector.multi_reduction <add>, %145, %cst_60 [1] : vector<24x32xf32> to vector<24xf32>
    %147 = vector.shape_cast %146 : vector<24xf32> to vector<24x1xf32>
    %cst_61 = arith.constant 3.200000e+01 : f32
    %148 = vector.broadcast %cst_61 : f32 to vector<24x1xf32>
    %149 = arith.divf %147, %148 : vector<24x1xf32>
    %150 = vector.broadcast %142 : vector<24x1xf32> to vector<24x32xf32>
    %151 = arith.subf %136, %150 : vector<24x32xf32>
    %cst_62 = arith.constant 9.99999997E-7 : f32
    %152 = vector.broadcast %cst_62 : f32 to vector<24x1xf32>
    %153 = arith.addf %149, %152 : vector<24x1xf32>
    %154 = math.rsqrt %153 : vector<24x1xf32>
    %155 = vector.broadcast %154 : vector<24x1xf32> to vector<24x32xf32>
    %156 = arith.mulf %151, %155 : vector<24x32xf32>
    %157 = vector.broadcast %137 : vector<1x32xf32> to vector<24x32xf32>
    %158 = arith.mulf %156, %157 : vector<24x32xf32>
    %159 = vector.broadcast %138 : vector<1x32xf32> to vector<24x32xf32>
    %160 = arith.addf %158, %159 : vector<24x32xf32>
    %c0_63 = arith.constant 0 : index
    %c0_64 = arith.constant 0 : index
    %161 = vector.load %arg3[%c0_63, %c0_64] : memref<80x128xf32, #tpu.memory_space<vmem>>, vector<32x128xf32>
    %cst_65 = arith.constant dense<0.000000e+00> : vector<24x128xf32>
    %162 = tpu.matmul %160, %161, %cst_65 {dimension_numbers = #tpu.dot_dimension_numbers<[1], [0], [0], [1], [0, 0, 1, 1], [], []>} : vector<24x32xf32>, vector<32x128xf32>, vector<24x128xf32> -> vector<24x128xf32>
    %c32 = arith.constant 32 : index
    %c0_66 = arith.constant 0 : index
    %163 = vector.load %arg3[%c32, %c0_66] : memref<80x128xf32, #tpu.memory_space<vmem>>, vector<1x128xf32>
    %164 = vector.broadcast %163 : vector<1x128xf32> to vector<24x128xf32>
    %165 = arith.addf %162, %164 : vector<24x128xf32>
    %cst_67 = arith.constant 5.000000e-01 : f32
    %166 = vector.broadcast %cst_67 : f32 to vector<24x128xf32>
    %167 = arith.mulf %166, %165 : vector<24x128xf32>
    %cst_68 = arith.constant 0.707106769 : f32
    %168 = vector.broadcast %cst_68 : f32 to vector<24x128xf32>
    %169 = arith.mulf %165, %168 : vector<24x128xf32>
    %170 = math.erf %169 : vector<24x128xf32>
    %cst_69 = arith.constant 1.000000e+00 : f32
    %171 = vector.broadcast %cst_69 : f32 to vector<24x128xf32>
    %172 = arith.addf %171, %170 : vector<24x128xf32>
    %173 = arith.mulf %167, %172 : vector<24x128xf32>
    %c384 = arith.constant 384 : index
    %c0_70 = arith.constant 0 : index
    %174 = vector.load %arg2[%c384, %c0_70] : memref<944x32xf32, #tpu.memory_space<vmem>>, vector<128x32xf32>
    %cst_71 = arith.constant dense<0.000000e+00> : vector<24x32xf32>
    %175 = tpu.matmul %173, %174, %cst_71 {dimension_numbers = #tpu.dot_dimension_numbers<[1], [0], [0], [1], [0, 0, 1, 1], [], []>} : vector<24x128xf32>, vector<128x32xf32>, vector<24x32xf32> -> vector<24x32xf32>
    %176 = arith.addf %136, %175 : vector<24x32xf32>
    %c86 = arith.constant 86 : index
    %c0_72 = arith.constant 0 : index
    %177 = vector.load %arg2[%c86, %c0_72] : memref<944x32xf32, #tpu.memory_space<vmem>>, vector<1x32xf32>
    %178 = vector.broadcast %177 : vector<1x32xf32> to vector<24x32xf32>
    %179 = arith.addf %176, %178 : vector<24x32xf32>
    %c512 = arith.constant 512 : index
    %c0_73 = arith.constant 0 : index
    %180 = vector.load %arg2[%c512, %c0_73] : memref<944x32xf32, #tpu.memory_space<vmem>>, vector<1x32xf32>
    %c513 = arith.constant 513 : index
    %c0_74 = arith.constant 0 : index
    %181 = vector.load %arg2[%c513, %c0_74] : memref<944x32xf32, #tpu.memory_space<vmem>>, vector<1x32xf32>
    %cst_75 = arith.constant dense<0.000000e+00> : vector<24xf32>
    %182 = vector.multi_reduction <add>, %179, %cst_75 [1] : vector<24x32xf32> to vector<24xf32>
    %183 = vector.shape_cast %182 : vector<24xf32> to vector<24x1xf32>
    %cst_76 = arith.constant 3.200000e+01 : f32
    %184 = vector.broadcast %cst_76 : f32 to vector<24x1xf32>
    %185 = arith.divf %183, %184 : vector<24x1xf32>
    %186 = vector.broadcast %185 : vector<24x1xf32> to vector<24x32xf32>
    %187 = arith.subf %179, %186 : vector<24x32xf32>
    %188 = arith.mulf %187, %187 : vector<24x32xf32>
    %cst_77 = arith.constant dense<0.000000e+00> : vector<24xf32>
    %189 = vector.multi_reduction <add>, %188, %cst_77 [1] : vector<24x32xf32> to vector<24xf32>
    %190 = vector.shape_cast %189 : vector<24xf32> to vector<24x1xf32>
    %cst_78 = arith.constant 3.200000e+01 : f32
    %191 = vector.broadcast %cst_78 : f32 to vector<24x1xf32>
    %192 = arith.divf %190, %191 : vector<24x1xf32>
    %193 = vector.broadcast %185 : vector<24x1xf32> to vector<24x32xf32>
    %194 = arith.subf %179, %193 : vector<24x32xf32>
    %cst_79 = arith.constant 9.99999997E-7 : f32
    %195 = vector.broadcast %cst_79 : f32 to vector<24x1xf32>
    %196 = arith.addf %192, %195 : vector<24x1xf32>
    %197 = math.rsqrt %196 : vector<24x1xf32>
    %198 = vector.broadcast %197 : vector<24x1xf32> to vector<24x32xf32>
    %199 = arith.mulf %194, %198 : vector<24x32xf32>
    %200 = vector.broadcast %180 : vector<1x32xf32> to vector<24x32xf32>
    %201 = arith.mulf %199, %200 : vector<24x32xf32>
    %202 = vector.broadcast %181 : vector<1x32xf32> to vector<24x32xf32>
    %203 = arith.addf %201, %202 : vector<24x32xf32>
    %c528 = arith.constant 528 : index
    %c0_80 = arith.constant 0 : index
    %204 = vector.load %arg2[%c528, %c0_80] : memref<944x32xf32, #tpu.memory_space<vmem>>, vector<32x32xf32>
    %cst_81 = arith.constant dense<0.000000e+00> : vector<24x32xf32>
    %205 = tpu.matmul %203, %204, %cst_81 {dimension_numbers = #tpu.dot_dimension_numbers<[1], [0], [0], [1], [0, 0, 1, 1], [], []>} : vector<24x32xf32>, vector<32x32xf32>, vector<24x32xf32> -> vector<24x32xf32>
    %c514 = arith.constant 514 : index
    %c0_82 = arith.constant 0 : index
    %206 = vector.load %arg2[%c514, %c0_82] : memref<944x32xf32, #tpu.memory_space<vmem>>, vector<1x32xf32>
    %207 = vector.broadcast %206 : vector<1x32xf32> to vector<24x32xf32>
    %208 = arith.addf %205, %207 : vector<24x32xf32>
    %209 = tpu.transpose %208, [1, 0] : vector<24x32xf32> -> vector<32x24xf32>
    %cst_83 = arith.constant 0.000000e+00 : f32
    %210 = vector.broadcast %cst_83 : f32 to vector<24x32xf32>
    %c560 = arith.constant 560 : index
    %c0_84 = arith.constant 0 : index
    %211 = vector.load %arg2[%c560, %c0_84] : memref<944x32xf32, #tpu.memory_space<vmem>>, vector<32x32xf32>
    %cst_85 = arith.constant dense<0.000000e+00> : vector<24x32xf32>
    %212 = tpu.matmul %203, %211, %cst_85 {dimension_numbers = #tpu.dot_dimension_numbers<[1], [0], [0], [1], [0, 0, 1, 1], [], []>} : vector<24x32xf32>, vector<32x32xf32>, vector<24x32xf32> -> vector<24x32xf32>
    %c520 = arith.constant 520 : index
    %c0_86 = arith.constant 0 : index
    %213 = vector.load %arg2[%c520, %c0_86] : memref<944x32xf32, #tpu.memory_space<vmem>>, vector<1x32xf32>
    %214 = vector.broadcast %213 : vector<1x32xf32> to vector<24x32xf32>
    %215 = arith.addf %212, %214 : vector<24x32xf32>
    %cst_87 = arith.constant dense<0.000000e+00> : vector<24x24xf32>
    %216 = tpu.matmul %215, %209, %cst_87 {dimension_numbers = #tpu.dot_dimension_numbers<[1], [0], [0], [1], [0, 0, 1, 1], [], []>} : vector<24x32xf32>, vector<32x24xf32>, vector<24x24xf32> -> vector<24x24xf32>
    %217 = vector.broadcast %13 : vector<1x24xf32> to vector<24x24xf32>
    %218 = arith.addf %216, %217 : vector<24x24xf32>
    %cst_88 = arith.constant dense<0xFF800000> : vector<24xf32>
    %219 = vector.multi_reduction <maximumf>, %218, %cst_88 [1] : vector<24x24xf32> to vector<24xf32>
    %220 = vector.shape_cast %219 : vector<24xf32> to vector<24x1xf32>
    %221 = vector.broadcast %220 : vector<24x1xf32> to vector<24x24xf32>
    %222 = arith.subf %218, %221 : vector<24x24xf32>
    %223 = math.exp %222 : vector<24x24xf32>
    %cst_89 = arith.constant dense<0.000000e+00> : vector<24xf32>
    %224 = vector.multi_reduction <add>, %223, %cst_89 [1] : vector<24x24xf32> to vector<24xf32>
    %225 = vector.shape_cast %224 : vector<24xf32> to vector<24x1xf32>
    %226 = tpu.reciprocal %225 {approx = true} : vector<24x1xf32> -> vector<24x1xf32>
    %227 = vector.broadcast %226 : vector<24x1xf32> to vector<24x24xf32>
    %228 = arith.mulf %223, %227 : vector<24x24xf32>
    %c688 = arith.constant 688 : index
    %c0_90 = arith.constant 0 : index
    %229 = vector.load %arg2[%c688, %c0_90] : memref<944x32xf32, #tpu.memory_space<vmem>>, vector<32x32xf32>
    %cst_91 = arith.constant dense<0.000000e+00> : vector<24x32xf32>
    %230 = tpu.matmul %203, %229, %cst_91 {dimension_numbers = #tpu.dot_dimension_numbers<[1], [0], [0], [1], [0, 0, 1, 1], [], []>} : vector<24x32xf32>, vector<32x32xf32>, vector<24x32xf32> -> vector<24x32xf32>
    %cst_92 = arith.constant dense<0.000000e+00> : vector<24x32xf32>
    %231 = tpu.matmul %228, %230, %cst_92 {dimension_numbers = #tpu.dot_dimension_numbers<[1], [0], [0], [1], [0, 0, 1, 1], [], []>} : vector<24x24xf32>, vector<24x32xf32>, vector<24x32xf32> -> vector<24x32xf32>
    %232 = arith.addf %210, %231 : vector<24x32xf32>
    %c592 = arith.constant 592 : index
    %c0_93 = arith.constant 0 : index
    %233 = vector.load %arg2[%c592, %c0_93] : memref<944x32xf32, #tpu.memory_space<vmem>>, vector<32x32xf32>
    %cst_94 = arith.constant dense<0.000000e+00> : vector<24x32xf32>
    %234 = tpu.matmul %203, %233, %cst_94 {dimension_numbers = #tpu.dot_dimension_numbers<[1], [0], [0], [1], [0, 0, 1, 1], [], []>} : vector<24x32xf32>, vector<32x32xf32>, vector<24x32xf32> -> vector<24x32xf32>
    %c521 = arith.constant 521 : index
    %c0_95 = arith.constant 0 : index
    %235 = vector.load %arg2[%c521, %c0_95] : memref<944x32xf32, #tpu.memory_space<vmem>>, vector<1x32xf32>
    %236 = vector.broadcast %235 : vector<1x32xf32> to vector<24x32xf32>
    %237 = arith.addf %234, %236 : vector<24x32xf32>
    %cst_96 = arith.constant dense<0.000000e+00> : vector<24x24xf32>
    %238 = tpu.matmul %237, %209, %cst_96 {dimension_numbers = #tpu.dot_dimension_numbers<[1], [0], [0], [1], [0, 0, 1, 1], [], []>} : vector<24x32xf32>, vector<32x24xf32>, vector<24x24xf32> -> vector<24x24xf32>
    %239 = vector.broadcast %13 : vector<1x24xf32> to vector<24x24xf32>
    %240 = arith.addf %238, %239 : vector<24x24xf32>
    %cst_97 = arith.constant dense<0xFF800000> : vector<24xf32>
    %241 = vector.multi_reduction <maximumf>, %240, %cst_97 [1] : vector<24x24xf32> to vector<24xf32>
    %242 = vector.shape_cast %241 : vector<24xf32> to vector<24x1xf32>
    %243 = vector.broadcast %242 : vector<24x1xf32> to vector<24x24xf32>
    %244 = arith.subf %240, %243 : vector<24x24xf32>
    %245 = math.exp %244 : vector<24x24xf32>
    %cst_98 = arith.constant dense<0.000000e+00> : vector<24xf32>
    %246 = vector.multi_reduction <add>, %245, %cst_98 [1] : vector<24x24xf32> to vector<24xf32>
    %247 = vector.shape_cast %246 : vector<24xf32> to vector<24x1xf32>
    %248 = tpu.reciprocal %247 {approx = true} : vector<24x1xf32> -> vector<24x1xf32>
    %249 = vector.broadcast %248 : vector<24x1xf32> to vector<24x24xf32>
    %250 = arith.mulf %245, %249 : vector<24x24xf32>
    %c720 = arith.constant 720 : index
    %c0_99 = arith.constant 0 : index
    %251 = vector.load %arg2[%c720, %c0_99] : memref<944x32xf32, #tpu.memory_space<vmem>>, vector<32x32xf32>
    %cst_100 = arith.constant dense<0.000000e+00> : vector<24x32xf32>
    %252 = tpu.matmul %203, %251, %cst_100 {dimension_numbers = #tpu.dot_dimension_numbers<[1], [0], [0], [1], [0, 0, 1, 1], [], []>} : vector<24x32xf32>, vector<32x32xf32>, vector<24x32xf32> -> vector<24x32xf32>
    %cst_101 = arith.constant dense<0.000000e+00> : vector<24x32xf32>
    %253 = tpu.matmul %250, %252, %cst_101 {dimension_numbers = #tpu.dot_dimension_numbers<[1], [0], [0], [1], [0, 0, 1, 1], [], []>} : vector<24x24xf32>, vector<24x32xf32>, vector<24x32xf32> -> vector<24x32xf32>
    %254 = arith.addf %232, %253 : vector<24x32xf32>
    %c624 = arith.constant 624 : index
    %c0_102 = arith.constant 0 : index
    %255 = vector.load %arg2[%c624, %c0_102] : memref<944x32xf32, #tpu.memory_space<vmem>>, vector<32x32xf32>
    %cst_103 = arith.constant dense<0.000000e+00> : vector<24x32xf32>
    %256 = tpu.matmul %203, %255, %cst_103 {dimension_numbers = #tpu.dot_dimension_numbers<[1], [0], [0], [1], [0, 0, 1, 1], [], []>} : vector<24x32xf32>, vector<32x32xf32>, vector<24x32xf32> -> vector<24x32xf32>
    %c522 = arith.constant 522 : index
    %c0_104 = arith.constant 0 : index
    %257 = vector.load %arg2[%c522, %c0_104] : memref<944x32xf32, #tpu.memory_space<vmem>>, vector<1x32xf32>
    %258 = vector.broadcast %257 : vector<1x32xf32> to vector<24x32xf32>
    %259 = arith.addf %256, %258 : vector<24x32xf32>
    %cst_105 = arith.constant dense<0.000000e+00> : vector<24x24xf32>
    %260 = tpu.matmul %259, %209, %cst_105 {dimension_numbers = #tpu.dot_dimension_numbers<[1], [0], [0], [1], [0, 0, 1, 1], [], []>} : vector<24x32xf32>, vector<32x24xf32>, vector<24x24xf32> -> vector<24x24xf32>
    %261 = vector.broadcast %13 : vector<1x24xf32> to vector<24x24xf32>
    %262 = arith.addf %260, %261 : vector<24x24xf32>
    %cst_106 = arith.constant dense<0xFF800000> : vector<24xf32>
    %263 = vector.multi_reduction <maximumf>, %262, %cst_106 [1] : vector<24x24xf32> to vector<24xf32>
    %264 = vector.shape_cast %263 : vector<24xf32> to vector<24x1xf32>
    %265 = vector.broadcast %264 : vector<24x1xf32> to vector<24x24xf32>
    %266 = arith.subf %262, %265 : vector<24x24xf32>
    %267 = math.exp %266 : vector<24x24xf32>
    %cst_107 = arith.constant dense<0.000000e+00> : vector<24xf32>
    %268 = vector.multi_reduction <add>, %267, %cst_107 [1] : vector<24x24xf32> to vector<24xf32>
    %269 = vector.shape_cast %268 : vector<24xf32> to vector<24x1xf32>
    %270 = tpu.reciprocal %269 {approx = true} : vector<24x1xf32> -> vector<24x1xf32>
    %271 = vector.broadcast %270 : vector<24x1xf32> to vector<24x24xf32>
    %272 = arith.mulf %267, %271 : vector<24x24xf32>
    %c752 = arith.constant 752 : index
    %c0_108 = arith.constant 0 : index
    %273 = vector.load %arg2[%c752, %c0_108] : memref<944x32xf32, #tpu.memory_space<vmem>>, vector<32x32xf32>
    %cst_109 = arith.constant dense<0.000000e+00> : vector<24x32xf32>
    %274 = tpu.matmul %203, %273, %cst_109 {dimension_numbers = #tpu.dot_dimension_numbers<[1], [0], [0], [1], [0, 0, 1, 1], [], []>} : vector<24x32xf32>, vector<32x32xf32>, vector<24x32xf32> -> vector<24x32xf32>
    %cst_110 = arith.constant dense<0.000000e+00> : vector<24x32xf32>
    %275 = tpu.matmul %272, %274, %cst_110 {dimension_numbers = #tpu.dot_dimension_numbers<[1], [0], [0], [1], [0, 0, 1, 1], [], []>} : vector<24x24xf32>, vector<24x32xf32>, vector<24x32xf32> -> vector<24x32xf32>
    %276 = arith.addf %254, %275 : vector<24x32xf32>
    %c656 = arith.constant 656 : index
    %c0_111 = arith.constant 0 : index
    %277 = vector.load %arg2[%c656, %c0_111] : memref<944x32xf32, #tpu.memory_space<vmem>>, vector<32x32xf32>
    %cst_112 = arith.constant dense<0.000000e+00> : vector<24x32xf32>
    %278 = tpu.matmul %203, %277, %cst_112 {dimension_numbers = #tpu.dot_dimension_numbers<[1], [0], [0], [1], [0, 0, 1, 1], [], []>} : vector<24x32xf32>, vector<32x32xf32>, vector<24x32xf32> -> vector<24x32xf32>
    %c523 = arith.constant 523 : index
    %c0_113 = arith.constant 0 : index
    %279 = vector.load %arg2[%c523, %c0_113] : memref<944x32xf32, #tpu.memory_space<vmem>>, vector<1x32xf32>
    %280 = vector.broadcast %279 : vector<1x32xf32> to vector<24x32xf32>
    %281 = arith.addf %278, %280 : vector<24x32xf32>
    %cst_114 = arith.constant dense<0.000000e+00> : vector<24x24xf32>
    %282 = tpu.matmul %281, %209, %cst_114 {dimension_numbers = #tpu.dot_dimension_numbers<[1], [0], [0], [1], [0, 0, 1, 1], [], []>} : vector<24x32xf32>, vector<32x24xf32>, vector<24x24xf32> -> vector<24x24xf32>
    %283 = vector.broadcast %13 : vector<1x24xf32> to vector<24x24xf32>
    %284 = arith.addf %282, %283 : vector<24x24xf32>
    %cst_115 = arith.constant dense<0xFF800000> : vector<24xf32>
    %285 = vector.multi_reduction <maximumf>, %284, %cst_115 [1] : vector<24x24xf32> to vector<24xf32>
    %286 = vector.shape_cast %285 : vector<24xf32> to vector<24x1xf32>
    %287 = vector.broadcast %286 : vector<24x1xf32> to vector<24x24xf32>
    %288 = arith.subf %284, %287 : vector<24x24xf32>
    %289 = math.exp %288 : vector<24x24xf32>
    %cst_116 = arith.constant dense<0.000000e+00> : vector<24xf32>
    %290 = vector.multi_reduction <add>, %289, %cst_116 [1] : vector<24x24xf32> to vector<24xf32>
    %291 = vector.shape_cast %290 : vector<24xf32> to vector<24x1xf32>
    %292 = tpu.reciprocal %291 {approx = true} : vector<24x1xf32> -> vector<24x1xf32>
    %293 = vector.broadcast %292 : vector<24x1xf32> to vector<24x24xf32>
    %294 = arith.mulf %289, %293 : vector<24x24xf32>
    %c784 = arith.constant 784 : index
    %c0_117 = arith.constant 0 : index
    %295 = vector.load %arg2[%c784, %c0_117] : memref<944x32xf32, #tpu.memory_space<vmem>>, vector<32x32xf32>
    %cst_118 = arith.constant dense<0.000000e+00> : vector<24x32xf32>
    %296 = tpu.matmul %203, %295, %cst_118 {dimension_numbers = #tpu.dot_dimension_numbers<[1], [0], [0], [1], [0, 0, 1, 1], [], []>} : vector<24x32xf32>, vector<32x32xf32>, vector<24x32xf32> -> vector<24x32xf32>
    %cst_119 = arith.constant dense<0.000000e+00> : vector<24x32xf32>
    %297 = tpu.matmul %294, %296, %cst_119 {dimension_numbers = #tpu.dot_dimension_numbers<[1], [0], [0], [1], [0, 0, 1, 1], [], []>} : vector<24x24xf32>, vector<24x32xf32>, vector<24x32xf32> -> vector<24x32xf32>
    %298 = arith.addf %276, %297 : vector<24x32xf32>
    %299 = arith.addf %179, %298 : vector<24x32xf32>
    %c515 = arith.constant 515 : index
    %c0_120 = arith.constant 0 : index
    %300 = vector.load %arg2[%c515, %c0_120] : memref<944x32xf32, #tpu.memory_space<vmem>>, vector<1x32xf32>
    %301 = vector.broadcast %300 : vector<1x32xf32> to vector<24x32xf32>
    %302 = arith.addf %299, %301 : vector<24x32xf32>
    %c516 = arith.constant 516 : index
    %c0_121 = arith.constant 0 : index
    %303 = vector.load %arg2[%c516, %c0_121] : memref<944x32xf32, #tpu.memory_space<vmem>>, vector<1x32xf32>
    %c517 = arith.constant 517 : index
    %c0_122 = arith.constant 0 : index
    %304 = vector.load %arg2[%c517, %c0_122] : memref<944x32xf32, #tpu.memory_space<vmem>>, vector<1x32xf32>
    %cst_123 = arith.constant dense<0.000000e+00> : vector<24xf32>
    %305 = vector.multi_reduction <add>, %302, %cst_123 [1] : vector<24x32xf32> to vector<24xf32>
    %306 = vector.shape_cast %305 : vector<24xf32> to vector<24x1xf32>
    %cst_124 = arith.constant 3.200000e+01 : f32
    %307 = vector.broadcast %cst_124 : f32 to vector<24x1xf32>
    %308 = arith.divf %306, %307 : vector<24x1xf32>
    %309 = vector.broadcast %308 : vector<24x1xf32> to vector<24x32xf32>
    %310 = arith.subf %302, %309 : vector<24x32xf32>
    %311 = arith.mulf %310, %310 : vector<24x32xf32>
    %cst_125 = arith.constant dense<0.000000e+00> : vector<24xf32>
    %312 = vector.multi_reduction <add>, %311, %cst_125 [1] : vector<24x32xf32> to vector<24xf32>
    %313 = vector.shape_cast %312 : vector<24xf32> to vector<24x1xf32>
    %cst_126 = arith.constant 3.200000e+01 : f32
    %314 = vector.broadcast %cst_126 : f32 to vector<24x1xf32>
    %315 = arith.divf %313, %314 : vector<24x1xf32>
    %316 = vector.broadcast %308 : vector<24x1xf32> to vector<24x32xf32>
    %317 = arith.subf %302, %316 : vector<24x32xf32>
    %cst_127 = arith.constant 9.99999997E-7 : f32
    %318 = vector.broadcast %cst_127 : f32 to vector<24x1xf32>
    %319 = arith.addf %315, %318 : vector<24x1xf32>
    %320 = math.rsqrt %319 : vector<24x1xf32>
    %321 = vector.broadcast %320 : vector<24x1xf32> to vector<24x32xf32>
    %322 = arith.mulf %317, %321 : vector<24x32xf32>
    %323 = vector.broadcast %303 : vector<1x32xf32> to vector<24x32xf32>
    %324 = arith.mulf %322, %323 : vector<24x32xf32>
    %325 = vector.broadcast %304 : vector<1x32xf32> to vector<24x32xf32>
    %326 = arith.addf %324, %325 : vector<24x32xf32>
    %c40 = arith.constant 40 : index
    %c0_128 = arith.constant 0 : index
    %327 = vector.load %arg3[%c40, %c0_128] : memref<80x128xf32, #tpu.memory_space<vmem>>, vector<32x128xf32>
    %cst_129 = arith.constant dense<0.000000e+00> : vector<24x128xf32>
    %328 = tpu.matmul %326, %327, %cst_129 {dimension_numbers = #tpu.dot_dimension_numbers<[1], [0], [0], [1], [0, 0, 1, 1], [], []>} : vector<24x32xf32>, vector<32x128xf32>, vector<24x128xf32> -> vector<24x128xf32>
    %c72 = arith.constant 72 : index
    %c0_130 = arith.constant 0 : index
    %329 = vector.load %arg3[%c72, %c0_130] : memref<80x128xf32, #tpu.memory_space<vmem>>, vector<1x128xf32>
    %330 = vector.broadcast %329 : vector<1x128xf32> to vector<24x128xf32>
    %331 = arith.addf %328, %330 : vector<24x128xf32>
    %cst_131 = arith.constant 5.000000e-01 : f32
    %332 = vector.broadcast %cst_131 : f32 to vector<24x128xf32>
    %333 = arith.mulf %332, %331 : vector<24x128xf32>
    %cst_132 = arith.constant 0.707106769 : f32
    %334 = vector.broadcast %cst_132 : f32 to vector<24x128xf32>
    %335 = arith.mulf %331, %334 : vector<24x128xf32>
    %336 = math.erf %335 : vector<24x128xf32>
    %cst_133 = arith.constant 1.000000e+00 : f32
    %337 = vector.broadcast %cst_133 : f32 to vector<24x128xf32>
    %338 = arith.addf %337, %336 : vector<24x128xf32>
    %339 = arith.mulf %333, %338 : vector<24x128xf32>
    %c816 = arith.constant 816 : index
    %c0_134 = arith.constant 0 : index
    %340 = vector.load %arg2[%c816, %c0_134] : memref<944x32xf32, #tpu.memory_space<vmem>>, vector<128x32xf32>
    %cst_135 = arith.constant dense<0.000000e+00> : vector<24x32xf32>
    %341 = tpu.matmul %339, %340, %cst_135 {dimension_numbers = #tpu.dot_dimension_numbers<[1], [0], [0], [1], [0, 0, 1, 1], [], []>} : vector<24x128xf32>, vector<128x32xf32>, vector<24x32xf32> -> vector<24x32xf32>
    %342 = arith.addf %302, %341 : vector<24x32xf32>
    %c518 = arith.constant 518 : index
    %c0_136 = arith.constant 0 : index
    %343 = vector.load %arg2[%c518, %c0_136] : memref<944x32xf32, #tpu.memory_space<vmem>>, vector<1x32xf32>
    %344 = vector.broadcast %343 : vector<1x32xf32> to vector<24x32xf32>
    %345 = arith.addf %342, %344 : vector<24x32xf32>
    %346 = vector.extract_strided_slice %345 {offsets = [16, 0], sizes = [1, 32], strides = [1, 1]} : vector<24x32xf32> to vector<1x32xf32>
    %c72_137 = arith.constant 72 : index
    %c0_138 = arith.constant 0 : index
    %347 = vector.load %arg2[%c72_137, %c0_138] : memref<944x32xf32, #tpu.memory_space<vmem>>, vector<1x32xf32>
    %c73 = arith.constant 73 : index
    %c0_139 = arith.constant 0 : index
    %348 = vector.load %arg2[%c73, %c0_139] : memref<944x32xf32, #tpu.memory_space<vmem>>, vector<1x32xf32>
    %cst_140 = arith.constant dense<0.000000e+00> : vector<1xf32>
    %349 = vector.multi_reduction <add>, %346, %cst_140 [1] : vector<1x32xf32> to vector<1xf32>
    %350 = vector.shape_cast %349 : vector<1xf32> to vector<1x1xf32>
    %cst_141 = arith.constant 3.200000e+01 : f32
    %351 = vector.broadcast %cst_141 : f32 to vector<1x1xf32>
    %352 = arith.divf %350, %351 : vector<1x1xf32>
    %353 = vector.broadcast %352 : vector<1x1xf32> to vector<1x32xf32>
    %354 = arith.subf %346, %353 : vector<1x32xf32>
    %355 = arith.mulf %354, %354 : vector<1x32xf32>
    %cst_142 = arith.constant dense<0.000000e+00> : vector<1xf32>
    %356 = vector.multi_reduction <add>, %355, %cst_142 [1] : vector<1x32xf32> to vector<1xf32>
    %357 = vector.shape_cast %356 : vector<1xf32> to vector<1x1xf32>
    %cst_143 = arith.constant 3.200000e+01 : f32
    %358 = vector.broadcast %cst_143 : f32 to vector<1x1xf32>
    %359 = arith.divf %357, %358 : vector<1x1xf32>
    %360 = vector.broadcast %352 : vector<1x1xf32> to vector<1x32xf32>
    %361 = arith.subf %346, %360 : vector<1x32xf32>
    %cst_144 = arith.constant 9.99999997E-7 : f32
    %362 = vector.broadcast %cst_144 : f32 to vector<1x1xf32>
    %363 = arith.addf %359, %362 : vector<1x1xf32>
    %364 = math.rsqrt %363 : vector<1x1xf32>
    %365 = vector.broadcast %364 : vector<1x1xf32> to vector<1x32xf32>
    %366 = arith.mulf %361, %365 : vector<1x32xf32>
    %367 = arith.mulf %366, %347 : vector<1x32xf32>
    %368 = arith.addf %367, %348 : vector<1x32xf32>
    %c74 = arith.constant 74 : index
    %c0_145 = arith.constant 0 : index
    %369 = vector.load %arg2[%c74, %c0_145] : memref<944x32xf32, #tpu.memory_space<vmem>>, vector<1x32xf32>
    %370 = arith.mulf %368, %369 : vector<1x32xf32>
    %cst_146 = arith.constant dense<0.000000e+00> : vector<1xf32>
    %371 = vector.multi_reduction <add>, %370, %cst_146 [1] : vector<1x32xf32> to vector<1xf32>
    %372 = vector.shape_cast %371 : vector<1xf32> to vector<1x1xf32>
    %c75 = arith.constant 75 : index
    %c0_147 = arith.constant 0 : index
    %373 = vector.load %arg2[%c75, %c0_147] : memref<944x32xf32, #tpu.memory_space<vmem>>, vector<1x1xf32>
    %374 = arith.addf %372, %373 : vector<1x1xf32>
    %375 = arith.negf %374 : vector<1x1xf32>
    %376 = math.exp %375 : vector<1x1xf32>
    %cst_148 = arith.constant 1.000000e+00 : f32
    %377 = vector.broadcast %cst_148 : f32 to vector<1x1xf32>
    %378 = arith.addf %377, %376 : vector<1x1xf32>
    %379 = arith.divf %377, %378 : vector<1x1xf32>
    %380 = vector.shape_cast %379 : vector<1x1xf32> to vector<1x1x1xf32>
    %c0_149 = arith.constant 0 : index
    %c0_150 = arith.constant 0 : index
    %c0_151 = arith.constant 0 : index
    %381 = vector.load %arg4[%c0_149, %c0_150, %c0_151] : memref<1x1x1xf32, #tpu.memory_space<vmem>>, vector<1x1x1xf32>
    tpu.vector_store %arg4[%c0_149, %c0_150, %c0_151], %380 {strides = array<i32>} : memref<1x1x1xf32, #tpu.memory_space<vmem>>, vector<1x1x1xf32>,
    return
  }
  func.func @transform_0(%arg0: i32) -> (i32, i32, i32) {
    %c0_i32 = arith.constant 0 : i32
    %c0_i32_0 = arith.constant 0 : i32
    %c0_i32_1 = arith.constant 0 : i32
    return %arg0, %c0_i32, %c0_i32_0 : i32, i32, i32
  }
  func.func @transform_1(%arg0: i32) -> (i32, i32) {
    %c0_i32 = arith.constant 0 : i32
    %c0_i32_0 = arith.constant 0 : i32
    %c0_i32_1 = arith.constant 0 : i32
    return %c0_i32, %c0_i32_0 : i32, i32
  }
  func.func @transform_2(%arg0: i32) -> (i32, i32) {
    %c0_i32 = arith.constant 0 : i32
    %c0_i32_0 = arith.constant 0 : i32
    %c0_i32_1 = arith.constant 0 : i32
    return %c0_i32, %c0_i32_0 : i32, i32
  }
  func.func @transform_3(%arg0: i32) -> (i32, i32, i32) {
    %c0_i32 = arith.constant 0 : i32
    %c0_i32_0 = arith.constant 0 : i32
    %c0_i32_1 = arith.constant 0 : i32
    return %arg0, %c0_i32, %c0_i32_0 : i32, i32, i32
  }
}

</mosaic_0001>

<bundles_post_ra>
// kernel: _lambda_.1
= control target key start
LH: loop header
LB: loop body
LE: loop exit
PB: predicated region body
PF: predicated region fallthrough
CT: control target
= control target key end

     0   :  { %s5868_s12 = smov 0   ;;  %s7145_s0 = inlined_call_operand.vmem [shape: f32[2,16,48], index: 0, kind: input, shape index: {}]   ;;  %s7146_s1 = inlined_call_operand.vmem [shape: f32[944,32], index: 1, kind: input, shape index: {}]   ;;  %s7147_s2 = inlined_call_operand.vmem [shape: f32[80,128], index: 2, kind: input, shape index: {}]   ;;  %s7148_s3 = inlined_call_operand.vmem [shape: f32[2,1,1], index: 3, kind: output, shape index: {}]  }
   0x1 LB: > { %s4321_s13 = sadd.s32 4294967295, %s5842_s12   ;;  %p4325_p0 = scmp.ge.s32.totalorder %s5842_s12, 1  ;;  %s5842_s12 = sphi %s5868_s12, %s13_s12  }
   0x2   : > { %p137_p1 = scmp.lt.s32.totalorder %s5842_s12, 3 }
   0x4   : > { %p138_p2 = pnand %p4325_p0, %p137_p1 }
   0x5   : > { %v169_v0 = vld [vmem:[%s7146_s1] sm:$0xff] (!%p138_p2)  ;;  %v170_v1 = vld [vmem:[%s7146_s1 + $0x8] sm:$0xff] (!%p138_p2)  ;;  %v171_v2 = vld [vmem:[%s7146_s1 + $0x10] sm:$0xff] (!%p138_p2)  ;;  %p159_p3 = scmp.lt.s32.totalorder (!%p138_p2), %s4321_s13, 1  ;;  %vm177_vm0 = vcmask (!%p138_p2), 392192   ;;  %vm266_vm1 = vcmask (!%p138_p2), 261120  }
   0x6   : > { %141 = sbr.rel (%p138_p2) target bundleno = 7670 (0x1df6), region = 32  ;;  %v5449_v3 = vpack.c.bf16 (!%p138_p2), %v170_v1, %v169_v0  ;;  %v172_v4 = vld [vmem:[%s7146_s1 + $0x18] sm:$0xff] (!%p138_p2)  ;;  %v173_v6 = vld [vmem:[%s7146_s1 + $0x20] sm:$0xff] (!%p138_p2)  ;;  %v174_v7 = vld [vmem:[%s7146_s1 + $0x28] sm:$0xff] (!%p138_p2)  ;;  %v5844_v41 = vmov (!%p138_p2), 0.0|0.0   ;;  %vm5845_vm2 = vmmov (!%p138_p2), 0  }
   0x7   : > { %v5453_v5 = vpack.c.bf16 (!%p138_p2), %v172_v4, %v171_v2  ;;  %v5457_v8 = vpack.c.bf16 (!%p138_p2), %v174_v7, %v173_v6  ;;  %v259_v11 = vld [vmem:[%s7146_s1 + $0x40] sm:$0xff] (!%p138_p2)  ;;  %v175_v13 = vld [vmem:[%s7146_s1 + $0x30] sm:$0xff] (!%p138_p2)  ;;  %v176_v15 = vld [vmem:[%s7146_s1 + $0x38] sm:$0xff] (!%p138_p2)  ;;  %5461 = vmatprep.subr.bf16.mxu1 (!%p138_p2), %v5844_v41  ;;  %v5846_v49 = vmov (!%p138_p2), 0.0   ;;  %vm606_vm5 = vcmask (!%p138_p2), 195584  }
   0x8   : > { %5450 = vmatprep.subr.bf16.mxu0 (!%p138_p2), %v5449_v3  ;;  %v273_v12 = vsel (!%p138_p2), %vm266_vm1, %v259_v11, 0.0  ;;  %v321_v36 = vld [vmem:[%s7146_s1 + $0x60] sm:$0xff] (!%p138_p2)  ;;  %v322_v37 = vld [vmem:[%s7146_s1 + $0x68] sm:$0xff] (!%p138_p2)  ;;  %v323_v43 = vld [vmem:[%s7146_s1 + $0x70] sm:$0xff] (!%p138_p2)  ;;  %4795 = vmatprep.mubr.msk.f32.mxu1 (!%p138_p2), %vm5845_vm2, %v5846_v49  ;;  %vm4243_vm6 = vcmask (!%p138_p2), 253952   ;;  %vm4272_vm7 = vcmask (!%p138_p2), 0  }
   0x9   : > { %5452 = vmatpush3.bf16.msra.mxu0 (!%p138_p2), %v5449_v3  ;;  %274 = vadd.xlane.f32.xlu1 (!%p138_p2), %v273_v12  ;;  %v419_v38 = vld [vmem:[%s7146_s1 + $0x80] sm:$0xff] (!%p138_p2)  ;;  %v5462_v39 = vpack.c.bf16 (!%p138_p2), %v322_v37, %v321_v36  ;;  %v420_v40 = vld [vmem:[%s7146_s1 + $0x88] sm:$0xff] (!%p138_p2)  ;;  %v324_v44 = vld [vmem:[%s7146_s1 + $0x78] sm:$0xff] (!%p138_p2) }
   0xa   : > { %5454 = vmatprep.subr.bf16.mxu0 (!%p138_p2), %v5453_v5  ;;  %v5468_v42 = vpack.c.bf16 (!%p138_p2), %v420_v40, %v419_v38  ;;  %v421_v45 = vld [vmem:[%s7146_s1 + $0x90] sm:$0xff] (!%p138_p2)  ;;  %v5465_v46 = vpack.c.bf16 (!%p138_p2), %v324_v44, %v323_v43  ;;  %v422_v47 = vld [vmem:[%s7146_s1 + $0x98] sm:$0xff] (!%p138_p2)  ;;  %v724_v63 = vld [vmem:[%s7146_s1 + $0xa0] sm:$0xff] (!%p138_p2) }
   0xb   : > { %5463 = vmatpush3.bf16.msra.mxu1 (!%p138_p2), %v5462_v39  ;;  %v5471_v48 = vpack.c.bf16 (!%p138_p2), %v422_v47, %v421_v45  ;;  %v4330_v60 = vld [vmem:[%s7146_s1 + $0x50] ss:$0 sm:$0xff] (!%p138_p2)  ;;  %v4331_v62 = vld [vmem:[%s7146_s1 + $0x51] ss:$0 sm:$0xff] (!%p138_p2)  ;;  %v725_v0 = vld [vmem:[%s7146_s1 + $0xa8] sm:$0xff] (!%p138_p2) }
   0xc   : > { %5464 = vmatprep.subr.bf16.mxu1 (!%p138_p2), %v5844_v41  ;;  %vm6055_vm3 = vmpackc.low (!%p138_p2), %vm266_vm1, %vm266_vm1  ;;  %v640_v43 = vld [vmem:[%s7146_s1 + $0x100] sm:$0xff] (!%p138_p2)  ;;  %v641_v44 = vld [vmem:[%s7146_s1 + $0x108] sm:$0xff] (!%p138_p2) }
   0xd   : > { %s7152_s13 = smov (!%p159_p3, %s4321_s13), 1  ;;  %5456 = vmatpush3.bf16.msra.mxu0 %v5453_v5  ;;  %v5484_v5 = vpack.c.bf16 %v725_v0, %v724_v63  ;;  %v4336_v45 = vld [vmem:[%s7146_s1 + $0x58] ss:$0 sm:$0xff] }
   0xe   : > { %s4489_s26 = sshll.u32 %s7152_s13, 4  ;;  %5458 = vmatprep.subr.bf16.mxu0 %v5457_v8  ;;  %s166_s20 = scalar_lea.vmem %s7148_s3, %s7152_s13 }
   0xf   : > { %s163_s29 = scalar_lea.vmem %s7145_s0, %s4489_s26  ;;  %5466 = vmatpush3.bf16.msra.mxu1 %v5465_v46 }
  0x10   : > { %v167_v9 = vld [vmem:[%s163_s29] sm:$0xff]  ;;  %v168_v10 = vld [vmem:[%s163_s29 + $0x8] sm:$0xff]  ;;  %5483 = vmatprep.subr.bf16.mxu1 %v5844_v41 }
  0x11   : > { %4784 = vmatprep.mubr.msk.f32.mxu0 %vm177_vm0, %v167_v9  ;;  %5460 = vmatpush3.bf16.msra.mxu0 %v5457_v8  ;;  %v726_v8 = vld [vmem:[%s7146_s1 + $0xb0] sm:$0xff]  ;;  %v727_v9 = vld [vmem:[%s7146_s1 + $0xb8] sm:$0xff] }
  0x12   : > { %5467 = vmatprep.subr.bf16.mxu0 %v5844_v41 }
  0x14   : > { %4785 = vmatmul.mubr.msk.f32.vlgmr.msra.gmra.mrb[0].mxu0 %vm177_vm0, %v168_v10 }
  0x15   : > { %5469 = vmatpush3.bf16.msra.mxu0 %v5468_v42  ;;  %4812 = vmatprep.mubr.msk.f32.mxu0 %vm5845_vm2, %v5846_v49 }
  0x16   : > { %5470 = vmatprep.subr.bf16.mxu0 %v5844_v41 }
  0x19   : > { %5472 = vmatpush3.bf16.msra.mxu0 %v5471_v48 }
  0x1a   : > { %5473 = vmatprep.subr.bf16.mxu0 %v5844_v41 }
  0x96   : > { %v275_v21 = vpop.xlane.xlu1 %274 }
  0x97   : > { %v279_v22 = vmul.f32 0.03125, %v275_v21  ;;  %v938_v21 = vld [vmem:[%s7146_s1 + $0x138] sm:$0xff] }
  0x99   : > { %v5918_v25 = vsub.f32 %v259_v11, %v279_v22 }
  0x9b   : > { %v285_v30 = vmul.f32 %v5918_v25, %v5918_v25 }
  0x9d   : > { %v292_v33 = vsel %vm266_vm1, %v285_v30, 0.0 }
  0xe7   : > { %v4786_v14 = vpop.f32.mrb[0].mxu0 }
  0xe8   : > { %v250_v16 = vpop.f32.mrb[1].mxu0  ;;  %v5912_v18 = vadd.f32 %v4786_v14, %v176_v15  ;;  %v935_v15 = vld [vmem:[%s7146_s1 + $0x120] sm:$0xff] }
  0xe9   : > { %v5910_v17 = vadd.f32 %v250_v16, %v175_v13  ;;  %v5487_v13 = vpack.c.bf16 %v727_v9, %v726_v8  ;;  %v936_v16 = vld [vmem:[%s7146_s1 + $0x128] sm:$0xff] }
  0xea   : > { %v270_v20 = vsel %vm266_vm1, %v5912_v18, 0.0 }
  0xeb   : > { %v267_v19 = vsel %vm266_vm1, %v5910_v17, 0.0 }
  0xec   : > { %268 = vadd.xlane.f32.xlu0 %v267_v19  ;;  %v5494_v19 = vpack.c.bf16 %v936_v16, %v935_v15 }
  0xf0   : > { %271 = vadd.xlane.f32.xlu0 %v270_v20  ;;  %v937_v20 = vld [vmem:[%s7146_s1 + $0x130] sm:$0xff] }
  0xf1   : > { %v5497_v22 = vpack.c.bf16 %v938_v21, %v937_v20 }
 0x179   : > { %v269_v23 = vpop.xlane.xlu0 %268 }
 0x17a   : > { %v277_v24 = vmul.f32 0.03125, %v269_v23 }
 0x17c   : > { %v280_v26 = vsub.f32 %v5910_v17, %v277_v24 }
 0x17d   : > { %v272_v27 = vpop.xlane.xlu0 %271 }
 0x17e   : > { %v278_v28 = vmul.f32 0.03125, %v272_v27  ;;  %v283_v29 = vmul.f32 %v280_v26, %v280_v26  ;;  %v4332_v27 = vld [vmem:[%s7146_s1 + $0x52] ss:$0 sm:$0xff] }
 0x180   : > { %v281_v31 = vsub.f32 %v5912_v18, %v278_v28  ;;  %v286_v32 = vsel %vm266_vm1, %v283_v29, 0.0 }
 0x181   : > { %287 = vadd.xlane.f32.xlu1 %v286_v32 }
 0x182   : > { %v284_v34 = vmul.f32 %v281_v31, %v281_v31 }
 0x184   : > { %v289_v35 = vsel %vm266_vm1, %v284_v34, 0.0 }
 0x185   : > { %293 = vadd.xlane.f32.xlu1 %v292_v33  ;;  %290 = vadd.xlane.f32.xlu0 %v289_v35 }
 0x20e   : > { %v288_v50 = vpop.xlane.xlu1 %287 }
 0x20f   : > { %v295_v51 = vmul.f32 0.03125, %v288_v50  ;;  %v5478_v50 = vpack.c.bf16 %v641_v44, %v640_v43 }
 0x211   : > { %v298_v52 = vadd.f32 1e-06, %v295_v51 }
 0x212   : > { %v294_v53 = vpop.xlane.xlu1 %293  ;;  %v291_v54 = vpop.xlane.xlu0 %290 }
 0x213   : > { %5697 = vrsqrt.f32 %v298_v52  ;;  %v297_v55 = vmul.f32 0.03125, %v294_v53  ;;  %v296_v56 = vmul.f32 0.03125, %v291_v54  ;;  %v642_v52 = vld [vmem:[%s7146_s1 + $0x110] sm:$0xff]  ;;  %v643_v53 = vld [vmem:[%s7146_s1 + $0x118] sm:$0xff] }
 0x215   : > { %v300_v57 = vadd.f32 1e-06, %v297_v55  ;;  %v299_v58 = vadd.f32 1e-06, %v296_v56  ;;  %v5481_v56 = vpack.c.bf16 %v643_v53, %v642_v52 }
 0x217   : > { %5699 = vrsqrt.f32 %v300_v57 }
 0x218   : > { %5701 = vrsqrt.f32 %v299_v58 }
 0x21d   : > { %v5698_v59 = vpop.eup %5697 }
 0x21e   : > { %v304_v61 = vmul.f32 %v5698_v59, %v280_v26 }
 0x220   : > { %v311_v1 = vmul.f32 %v4330_v60, %v304_v61 }
 0x221   : > { %v5700_v2 = vpop.eup %5699 }
 0x222   : > { %v5702_v3 = vpop.eup %5701  ;;  %v5973_v4 = vadd.f32 %v4331_v62, %v311_v1  ;;  %v306_v6 = vmul.f32 %v5700_v2, %v5918_v25  ;;  %v4349_v2 = vld [vmem:[%s7146_s1 + $0x59] ss:$0 sm:$0xff] }
 0x223   : > { %v305_v7 = vmul.f32 %v5702_v3, %v281_v31 }
 0x224   : > { %4796 = vmatmul.mubr.msk.f32.vlgmr.msra.gmra.mrb[0].mxu1 %vm266_vm1, %v5973_v4  ;;  %4813 = vmatmul.mubr.msk.f32.vlgmr.msra.gmra.mrb[2].mxu0 %vm266_vm1, %v5973_v4  ;;  %v313_v11 = vmul.f32 %v4330_v60, %v306_v6 }
 0x225   : > { %v312_v10 = vmul.f32 %v4330_v60, %v305_v7  ;;  %4798 = vmatprep.mubr.msk.f32.mxu1 %vm5845_vm2, %v5846_v49  ;;  %4815 = vmatprep.mubr.msk.f32.mxu0 %vm5845_vm2, %v5846_v49 }
 0x226   : > { %5485 = vmatpush3.bf16.msra.mxu1 %v5484_v5  ;;  %v6001_v14 = vadd.f32 %v4331_v62, %v313_v11 }
 0x227   : > { %v5990_v12 = vadd.f32 %v4331_v62, %v312_v10  ;;  %5486 = vmatprep.subr.bf16.mxu1 %v5844_v41 }
 0x229   : > { %4799 = vmatmul.mubr.msk.f32.gmra.mrb[2].mxu1 %vm266_vm1, %v5990_v12  ;;  %4816 = vmatmul.mubr.msk.f32.gmra.mrb[4].mxu0 %vm266_vm1, %v5990_v12 }
 0x22a   : > { %4801 = vmatprep.mubr.msk.f32.mxu1 %vm5845_vm2, %v5846_v49  ;;  %4818 = vmatprep.mubr.msk.f32.mxu0 %vm5845_vm2, %v5846_v49 }
 0x22b   : > { %5488 = vmatpush3.bf16.msra.mxu1 %v5487_v13 }
 0x22c   : > { %5493 = vmatprep.subr.bf16.mxu1 %v5844_v41 }
 0x22d   : > { %4802 = vmatmul.mubr.msk.f32.gmra.mrb[4].mxu1 %vm266_vm1, %v6001_v14  ;;  %4819 = vmatmul.mubr.msk.f32.gmra.mrb[6].mxu0 %vm266_vm1, %v6001_v14 }
 0x22e   : > { %4861 = vmatprep.mubr.msk.f32.mxu1 %vm5845_vm2, %v5846_v49  ;;  %4827 = vmatprep.mubr.msk.f32.mxu0 %vm5845_vm2, %v5846_v49 }
 0x231   : > { %4862 = vmatmul.mubr.msk.f32.vlgmr.msra.gmra.mrb[6].mxu1 %vm266_vm1, %v5973_v4 }
 0x232   : > { %4864 = vmatprep.mubr.msk.f32.mxu1 %vm5845_vm2, %v5846_v49  ;;  %5495 = vmatpush3.bf16.msra.mxu1 %v5494_v19  ;;  %v260_v19 = vlaneseq }
 0x233   : > { %5496 = vmatprep.subr.bf16.mxu1 %v5844_v41 }
 0x235   : > { %4865 = vmatmul.mubr.msk.f32.gmra.mrb[8].mxu1 %vm266_vm1, %v5990_v12 }
 0x236   : > { %4867 = vmatprep.mubr.msk.f32.mxu1 %vm5845_vm2, %v5846_v49  ;;  %5498 = vmatpush3.bf16.msra.mxu1 %v5497_v22 }
 0x237   : > { %5502 = vmatprep.subr.bf16.mxu1 %v5844_v41 }
 0x239   : > { %4868 = vmatmul.mubr.msk.f32.gmra.mrb[10].mxu1 %vm266_vm1, %v6001_v14 }
 0x23a   : > { %4893 = vmatprep.mubr.msk.f32.mxu1 %vm5845_vm2, %v5846_v49 }
 0x23d   : > { %4894 = vmatmul.mubr.msk.f32.vlgmr.msra.gmra.mrb[12].mxu1 %vm266_vm1, %v5973_v4 }
 0x23e   : > { %4896 = vmatprep.mubr.msk.f32.mxu1 %vm5845_vm2, %v5846_v49 }
 0x241   : > { %4897 = vmatmul.mubr.msk.f32.gmra.mrb[14].mxu1 %vm266_vm1, %v5990_v12 }
 0x242   : > { %4899 = vmatprep.mubr.msk.f32.mxu1 %vm5845_vm2, %v5846_v49 }
 0x245   : > { %4900 = vmatmul.mubr.msk.f32.gmra.mrb[16].mxu1 %vm266_vm1, %v6001_v14 }
 0x246   : > { %4923 = vmatprep.mubr.msk.f32.mxu1 %vm5845_vm2, %v5846_v49 }
 0x2f7   : > { %v405_v23 = vpop.f32.mrb[0].mxu1  ;;  %v494_v24 = vpop.f32.mrb[2].mxu0 }
 0x2f8   : > { %v4797_v25 = vpop.f32.mrb[1].mxu1  ;;  %v4814_v26 = vpop.f32.mrb[3].mxu0  ;;  %v406_v30 = vadd.f32 %v4332_v27, %v405_v23  ;;  %v495_v51 = vadd.f32 %v4336_v45, %v494_v24  ;;  %v261_v23 = vand.u32 127, %v260_v19 }
 0x2f9   : > { %v5847_v26 = vmov -1e+30  }
 0x2fa   : > { %vm262_vm4 = vcmp.lt.s32.totalorder %v261_v23, 17 }
 0x2fc   : > { %v410_v28 = vpop.f32.mrb[2].mxu1  ;;  %v499_v29 = vpop.f32.mrb[4].mxu0 }
 0x2fd   : > { %v411_v31 = vadd.f32 %v4332_v27, %v410_v28  ;;  %v4800_v32 = vpop.f32.mrb[3].mxu1  ;;  %v4817_v33 = vpop.f32.mrb[5].mxu0  ;;  %v500_v57 = vadd.f32 %v4336_v45, %v499_v29 }
 0x2ff   : > { %v6059_v35 = vpack.c.bf16 %v411_v31, %v406_v30 }
 0x300   : > { %v415_v36 = vpop.f32.mrb[4].mxu1  ;;  %v504_v37 = vpop.f32.mrb[6].mxu0 }
 0x301   : > { %v4803_v38 = vpop.f32.mrb[5].mxu1  ;;  %v4820_v39 = vpop.f32.mrb[7].mxu0  ;;  %5476 = vmatpush3.bf16.xpose.msk.msra.mxu0 %vm6055_vm3, %v6059_v35  ;;  %v6074_v46 = vadd.f32 %v4332_v27, %v415_v36  ;;  %v505_v60 = vadd.f32 %v4336_v45, %v504_v37  ;;  %v6131_v27 = vsel %vm262_vm4, 0.0, %v5847_v26 }
 0x302   : > { %4825 = vmatprep.subr.mxu0 %v5846_v49 }
 0x304   : > { %v799_v40 = vpop.f32.mrb[6].mxu1 }
 0x305   : > { %v4863_v42 = vpop.f32.mrb[7].mxu1  ;;  %v800_v3 = vadd.f32 %v4349_v2, %v799_v40 }
 0x308   : > { %v804_v47 = vpop.f32.mrb[8].mxu1 }
 0x309   : > { %4826 = vmatpush3.xpose.msk.msra.mxu0 %vm266_vm1, %v6074_v46  ;;  %v4866_v48 = vpop.f32.mrb[9].mxu1  ;;  %v805_v5 = vadd.f32 %v4349_v2, %v804_v47 }
 0x30a   : > { %5477 = vmatprep.subr.bf16.mxu0 %v5844_v41 }
 0x30c   : > { %4828 = vmatmul.mubr.msk.f32.vlgmr.msra.gmra.mrb[8].mxu0 %vm266_vm1, %v495_v51  ;;  %v809_v54 = vpop.f32.mrb[10].mxu1 }
 0x30d   : > { %5479 = vmatpush3.bf16.msra.mxu0 %v5478_v50  ;;  %v4869_v55 = vpop.f32.mrb[11].mxu1  ;;  %4830 = vmatprep.mubr.msk.f32.mxu0 %vm5845_vm2, %v5846_v49  ;;  %v810_v6 = vadd.f32 %v4349_v2, %v809_v54 }
 0x30e   : > { %5480 = vmatprep.subr.bf16.mxu0 %v5844_v41 }
 0x310   : > { %4831 = vmatmul.mubr.msk.f32.gmra.mrb[10].mxu0 %vm266_vm1, %v500_v57  ;;  %v1005_v58 = vpop.f32.mrb[12].mxu1 }
 0x311   : > { %5482 = vmatpush3.bf16.msra.mxu0 %v5481_v56  ;;  %v4895_v59 = vpop.f32.mrb[13].mxu1  ;;  %4833 = vmatprep.mubr.msk.f32.mxu0 %vm5845_vm2, %v5846_v49 }
 0x312   : > { %5489 = vmatprep.subr.bf16.mxu0 %v5844_v41 }
 0x314   : > { %4834 = vmatmul.mubr.msk.f32.gmra.mrb[12].mxu0 %vm266_vm1, %v505_v60  ;;  %v1010_v61 = vpop.f32.mrb[14].mxu1 }
 0x315   : > { %v5500_v62 = vpack.c.bf16 %v1010_v61, %v1005_v58  ;;  %v4898_v63 = vpop.f32.mrb[15].mxu1  ;;  %4844 = vmatprep.mubr.msk.f32.mxu0 %vm5845_vm2, %v5846_v49 }
 0x318   : > { %4845 = vmatmul.mubr.msk.f32.vlgmr.msra.gmra.mrb[14].mxu0 %vm266_vm1, %v5973_v4  ;;  %v1015_v0 = vpop.f32.mrb[16].mxu1 }
 0x319   : > { %v4901_v1 = vpop.f32.mrb[17].mxu1  ;;  %4847 = vmatprep.mubr.msk.f32.mxu0 %vm5845_vm2, %v5846_v49 }
 0x31a   : > { %5492 = vmatpush3.bf16.xpose.msk.msra.mxu0 %vm6055_vm3, %v6059_v35 }
 0x31b   : > { %4874 = vmatprep.subr.mxu0 %v5846_v49 }
 0x31c   : > { %4848 = vmatmul.mubr.msk.f32.gmra.mrb[16].mxu0 %vm266_vm1, %v5990_v12 }
 0x31d   : > { %4850 = vmatprep.mubr.msk.f32.mxu0 %vm5845_vm2, %v5846_v49 }
 0x320   : > { %4851 = vmatmul.mubr.msk.f32.gmra.mrb[18].mxu0 %vm266_vm1, %v6001_v14 }
 0x321   : > { %4876 = vmatprep.mubr.msk.f32.mxu0 %vm5845_vm2, %v5846_v49 }
 0x322   : > { %4875 = vmatpush3.xpose.msk.msra.mxu0 %vm266_vm1, %v6074_v46 }
 0x323   : > { %5499 = vmatprep.subr.bf16.mxu0 %v5844_v41 }
 0x325   : > { %4877 = vmatmul.mubr.msk.f32.vlgmr.msra.gmra.mrb[20].mxu0 %vm266_vm1, %v800_v3 }
 0x326   : > { %5501 = vmatpush3.bf16.msra.mxu0 %v5500_v62  ;;  %4879 = vmatprep.mubr.msk.f32.mxu0 %vm5845_vm2, %v5846_v49 }
 0x327   : > { %4906 = vmatprep.subr.mxu0 %v5846_v49 }
 0x329   : > { %4880 = vmatmul.mubr.msk.f32.gmra.mrb[22].mxu0 %vm266_vm1, %v805_v5 }
 0x32a   : > { %4907 = vmatpush3.msra.mxu0 %v1015_v0  ;;  %4882 = vmatprep.mubr.msk.f32.mxu0 %vm5845_vm2, %v5846_v49 }
 0x32b   : > { %5505 = vmatprep.subr.bf16.mxu0 %v5844_v41 }
 0x32d   : > { %4883 = vmatmul.mubr.msk.f32.gmra.mrb[24].mxu0 %vm266_vm1, %v810_v6 }
 0x32e   : > { %4908 = vmatprep.mubr.msk.f32.mxu0 %vm5845_vm2, %v5846_v49 }
 0x3df   : > { %v592_v7 = vpop.f32.mrb[8].mxu0 }
 0x3e0   : > { %v4829_v8 = vpop.f32.mrb[9].mxu0  ;;  %v593_v57 = vadd.f32 %v592_v7, %v6131_v27  ;;  %v1197_v7 = vld [vmem:[%s7146_s1 + $0xc0] sm:$0xff] }
 0x3e1   : > { %v1198_v8 = vld [vmem:[%s7146_s1 + $0xc8] sm:$0xff] }
 0x3e2   : > { %v607_v62 = vsel %vm606_vm5, %v593_v57, -inf }
 0x3e3   : > { %v597_v9 = vpop.f32.mrb[10].mxu0 }
 0x3e4   : > { %v4832_v10 = vpop.f32.mrb[11].mxu0  ;;  %v598_v60 = vadd.f32 %v597_v9, %v6131_v27 }
 0x3e6   : > { %v610_v1 = vsel %vm606_vm5, %v598_v60, -inf }
 0x3e7   : > { %v602_v11 = vpop.f32.mrb[12].mxu0 }
 0x3e8   : > { %v4835_v13 = vpop.f32.mrb[13].mxu0  ;;  %v603_v61 = vadd.f32 %v602_v11, %v6131_v27 }
 0x3e9   : > { %v5506_v13 = vpack.c.bf16 %v1198_v8, %v1197_v7 }
 0x3ea   : > { %v613_v0 = vsel %vm606_vm5, %v603_v61, -inf }
 0x3eb   : > { %v710_v15 = vpop.f32.mrb[14].mxu0 }
 0x3ec   : > { %v4846_v16 = vpop.f32.mrb[15].mxu0 }
 0x3ef   : > { %v715_v20 = vpop.f32.mrb[16].mxu0 }
 0x3f0   : > { %v5503_v21 = vpack.c.bf16 %v715_v20, %v710_v15  ;;  %v4849_v22 = vpop.f32.mrb[17].mxu0  ;;  %v1199_v20 = vld [vmem:[%s7146_s1 + $0xd0] sm:$0xff] }
 0x3f2   : > { %5504 = vmatpush3.bf16.msra.mxu1 %v5503_v21  ;;  %v1200_v21 = vld [vmem:[%s7146_s1 + $0xd8] sm:$0xff] }
 0x3f3   : > { %v720_v24 = vpop.f32.mrb[18].mxu0  ;;  %4921 = vmatprep.subr.mxu1 %v5846_v49 }
 0x3f4   : > { %v4852_v25 = vpop.f32.mrb[19].mxu0 }
 0x3f6   : > { %4922 = vmatpush3.msra.mxu1 %v720_v24 }
 0x3f7   : > { %5511 = vmatprep.subr.bf16.mxu1 %v5844_v41 }
 0x3f8   : > { %v888_v28 = vpop.f32.mrb[20].mxu0 }
 0x3f9   : > { %v889_v29 = vadd.f32 %v888_v28, %v6131_v27  ;;  %v4878_v30 = vpop.f32.mrb[21].mxu0  ;;  %v5509_v28 = vpack.c.bf16 %v1200_v21, %v1199_v20 }
 0x3fb   : > { %v902_v31 = vsel %vm606_vm5, %v889_v29, -inf }
 0x3fc   : > { %903 = vmax.xlane.f32.xlu0 %v902_v31  ;;  %v893_v32 = vpop.f32.mrb[22].mxu0 }
 0x3fd   : > { %v894_v33 = vadd.f32 %v893_v32, %v6131_v27  ;;  %v4881_v36 = vpop.f32.mrb[23].mxu0  ;;  %v1408_v32 = vld [vmem:[%s7146_s1 + $0x140] sm:$0xff] }
 0x3ff   : > { %v905_v37 = vsel %vm606_vm5, %v894_v33, -inf }
 0x400   : > { %906 = vmax.xlane.f32.xlu1 %v905_v37  ;;  %v898_v38 = vpop.f32.mrb[24].mxu0 }
 0x401   : > { %v899_v39 = vadd.f32 %v898_v38, %v6131_v27  ;;  %v4884_v40 = vpop.f32.mrb[25].mxu0 }
 0x402   : > { %v1411_v40 = vld [vmem:[%s7146_s1 + $0x158] sm:$0xff] }
 0x403   : > { %v908_v42 = vsel %vm606_vm5, %v899_v39, -inf }
 0x404   : > { %909 = vmax.xlane.f32.xlu0 %v908_v42 }
 0x489   : > { %v904_v43 = vpop.xlane.xlu0 %903 }
 0x48a   : > { %v911_v44 = vsub.f32 %v889_v29, %v904_v43 }
 0x48c   : > { %v914_v45 = vmul.f32 1.442695, %v911_v44 }
 0x48d   : > { %v907_v47 = vpop.xlane.xlu1 %906 }
 0x48e   : > { %5703 = vpow2.f32 %v914_v45  ;;  %v912_v48 = vsub.f32 %v894_v33, %v907_v47  ;;  %v1409_v33 = vld [vmem:[%s7146_s1 + $0x148] sm:$0xff] }
 0x48f   : > { %v5516_v37 = vpack.c.bf16 %v1409_v33, %v1408_v32 }
 0x490   : > { %v916_v50 = vmul.f32 1.442695, %v912_v48  ;;  %v1584_v48 = vld [vmem:[%s7146_s1 + $0xe0] sm:$0xff] }
 0x491   : > { %v910_v51 = vpop.xlane.xlu0 %909 }
 0x492   : > { %5705 = vpow2.f32 %v916_v50  ;;  %v913_v52 = vsub.f32 %v899_v39, %v910_v51  ;;  %v1410_v39 = vld [vmem:[%s7146_s1 + $0x150] sm:$0xff]  ;;  %v1585_v50 = vld [vmem:[%s7146_s1 + $0xe8] sm:$0xff] }
 0x493   : > { %v5519_v43 = vpack.c.bf16 %v1411_v40, %v1410_v39  ;;  %v5525_v51 = vpack.c.bf16 %v1585_v50, %v1584_v48 }
 0x494   : > { %v918_v53 = vmul.f32 1.442695, %v913_v52  ;;  %v1586_v52 = vld [vmem:[%s7146_s1 + $0xf0] sm:$0xff] }
 0x496   : > { %5707 = vpow2.f32 %v918_v53  ;;  %v1587_v53 = vld [vmem:[%s7146_s1 + $0xf8] sm:$0xff] }
 0x498   : > { %v5704_v54 = vpop.eup %5703 }
 0x499   : > { %v920_v55 = vsel %vm606_vm5, %v5704_v54, 0.0 }
 0x49a   : > { %921 = vadd.xlane.f32.xlu1 %v920_v55  ;;  %v1795_v55 = vld [vmem:[%s7146_s1 + $0x160] sm:$0xff] }
 0x49c   : > { %v5706_v56 = vpop.eup %5705 }
 0x49d   : > { %v923_v58 = vsel %vm606_vm5, %v5706_v56, 0.0 }
 0x49e   : > { %924 = vadd.xlane.f32.xlu0 %v923_v58  ;;  %v1797_v58 = vld [vmem:[%s7146_s1 + $0x170] sm:$0xff] }
 0x4a0   : > { %v5708_v59 = vpop.eup %5707 }
 0x4a1   : > { %v926_v63 = vsel %vm606_vm5, %v5708_v59, 0.0 }
 0x4a2   : > { %608 = vmax.xlane.f32.xlu0 %v607_v62  ;;  %927 = vadd.xlane.f32.xlu1 %v926_v63 }
 0x4a6   : > { %614 = vmax.xlane.f32.xlu0 %v613_v0  ;;  %611 = vmax.xlane.f32.xlu1 %v610_v1 }
 0x527   : > { %v922_v2 = vpop.xlane.xlu1 %921 }
 0x528   : > { %5709 = vrcp.f32 %v922_v2 }
 0x52b   : > { %v925_v3 = vpop.xlane.xlu0 %924 }
 0x52c   : > { %5711 = vrcp.f32 %v925_v3 }
 0x52f   : > { %v928_v5 = vpop.xlane.xlu1 %927  ;;  %v609_v6 = vpop.xlane.xlu0 %608 }
 0x530   : > { %5713 = vrcp.f32 %v928_v5  ;;  %v616_v9 = vsub.f32 %v593_v57, %v609_v6 }
 0x532   : > { %v5710_v10 = vpop.eup %5709  ;;  %v619_v11 = vmul.f32 1.442695, %v616_v9 }
 0x533   : > { %v932_v15 = vmul.f32 %v5710_v10, %v5704_v54  ;;  %v612_v16 = vpop.xlane.xlu1 %611  ;;  %v615_v19 = vpop.xlane.xlu0 %614  ;;  %v5528_v54 = vpack.c.bf16 %v1587_v53, %v1586_v52  ;;  %v4368_v10 = vld [vmem:[%s7146_s1 + $0x5a] ss:$0 sm:$0xff] }
 0x534   : > { %5715 = vpow2.f32 %v619_v11  ;;  %v617_v22 = vsub.f32 %v598_v60, %v612_v16  ;;  %v618_v23 = vsub.f32 %v603_v61, %v615_v19 }
 0x535   : > { %4909 = vmatmul.mubr.msk.f32.vlgmr.msra.gmra.mrb[26].mxu0 %vm606_vm5, %v932_v15 }
 0x536   : > { %v5712_v24 = vpop.eup %5711  ;;  %v621_v25 = vmul.f32 1.442695, %v617_v22  ;;  %v623_v26 = vmul.f32 1.442695, %v618_v23  ;;  %4911 = vmatprep.mubr.msk.f32.mxu0 %vm5845_vm2, %v5846_v49  ;;  %5507 = vmatpush3.bf16.msra.mxu0 %v5506_v13 }
 0x537   : > { %v933_v29 = vmul.f32 %v5712_v24, %v5706_v56  ;;  %5508 = vmatprep.subr.bf16.mxu0 %v5844_v41  ;;  %v1796_v56 = vld [vmem:[%s7146_s1 + $0x168] sm:$0xff] }
 0x538   : > { %5717 = vpow2.f32 %v621_v25  ;;  %v5535_v57 = vpack.c.bf16 %v1796_v56, %v1795_v55 }
 0x539   : > { %5719 = vpow2.f32 %v623_v26  ;;  %4912 = vmatmul.mubr.msk.f32.gmra.mrb[28].mxu0 %vm606_vm5, %v933_v29 }
 0x53a   : > { %v5714_v30 = vpop.eup %5713  ;;  %4914 = vmatprep.mubr.msk.f32.mxu0 %vm5845_vm2, %v5846_v49  ;;  %5510 = vmatpush3.bf16.msra.mxu0 %v5509_v28 }
 0x53b   : > { %v934_v31 = vmul.f32 %v5714_v30, %v5708_v59  ;;  %5515 = vmatprep.subr.bf16.mxu0 %v5844_v41  ;;  %v1798_v59 = vld [vmem:[%s7146_s1 + $0x178] sm:$0xff] }
 0x53c   : > { %v5538_v60 = vpack.c.bf16 %v1798_v59, %v1797_v58 }
 0x53d   : > { %4915 = vmatmul.mubr.msk.f32.gmra.mrb[30].mxu0 %vm606_vm5, %v934_v31 }
 0x53e   : > { %v6175_v36 = vpop.eup %5715  ;;  %4940 = vmatprep.mubr.msk.f32.mxu0 %vm5845_vm2, %v5846_v49 }
 0x53f   : > { %v625_v38 = vsel %vm606_vm5, %v6175_v36, 0.0 }
 0x540   : > { %626 = vadd.xlane.f32.xlu1 %v625_v38 }
 0x541   : > { %4941 = vmatmul.mubr.msk.f32.vlgmr.msra.gmra.mrb[32].mxu0 %vm266_vm1, %v5973_v4 }
 0x542   : > { %v6189_v42 = vpop.eup %5717  ;;  %4943 = vmatprep.mubr.msk.f32.mxu0 %vm5845_vm2, %v5846_v49  ;;  %5517 = vmatpush3.bf16.msra.mxu0 %v5516_v37 }
 0x543   : > { %v6193_v44 = vpop.eup %5719  ;;  %v628_v45 = vsel %vm606_vm5, %v6189_v42, 0.0  ;;  %5518 = vmatprep.subr.bf16.mxu0 %v5844_v41 }
 0x544   : > { %629 = vadd.xlane.f32.xlu0 %v628_v45  ;;  %v631_v47 = vsel %vm606_vm5, %v6193_v44, 0.0 }
 0x545   : > { %632 = vadd.xlane.f32.xlu1 %v631_v47  ;;  %4944 = vmatmul.mubr.msk.f32.gmra.mrb[34].mxu0 %vm266_vm1, %v5990_v12 }
 0x546   : > { %4946 = vmatprep.mubr.msk.f32.mxu0 %vm5845_vm2, %v5846_v49  ;;  %5520 = vmatpush3.bf16.msra.mxu0 %v5519_v43 }
 0x547   : > { %5524 = vmatprep.subr.bf16.mxu0 %v5844_v41 }
 0x549   : > { %4947 = vmatmul.mubr.msk.f32.gmra.mrb[36].mxu0 %vm266_vm1, %v6001_v14 }
 0x54a   : > { %4972 = vmatprep.mubr.msk.f32.mxu0 %vm5845_vm2, %v5846_v49 }
 0x54d   : > { %4973 = vmatmul.mubr.msk.f32.vlgmr.msra.gmra.mrb[38].mxu0 %vm266_vm1, %v5973_v4 }
 0x54e   : > { %4975 = vmatprep.mubr.msk.f32.mxu0 %vm5845_vm2, %v5846_v49  ;;  %5526 = vmatpush3.bf16.msra.mxu0 %v5525_v51 }
 0x54f   : > { %5527 = vmatprep.subr.bf16.mxu0 %v5844_v41 }
 0x551   : > { %4976 = vmatmul.mubr.msk.f32.gmra.mrb[40].mxu0 %vm266_vm1, %v5990_v12 }
 0x552   : > { %4978 = vmatprep.mubr.msk.f32.mxu0 %vm5845_vm2, %v5846_v49  ;;  %5529 = vmatpush3.bf16.msra.mxu0 %v5528_v54 }
 0x553   : > { %5534 = vmatprep.subr.bf16.mxu0 %v5844_v41 }
 0x555   : > { %4979 = vmatmul.mubr.msk.f32.gmra.mrb[42].mxu0 %vm266_vm1, %v6001_v14 }
 0x556   : > { %5004 = vmatprep.mubr.msk.f32.mxu0 %vm5845_vm2, %v5846_v49 }
 0x559   : > { %5005 = vmatmul.mubr.msk.f32.vlgmr.msra.gmra.mrb[44].mxu0 %vm266_vm1, %v5973_v4 }
 0x55a   : > { %5007 = vmatprep.mubr.msk.f32.mxu0 %vm5845_vm2, %v5846_v49  ;;  %5536 = vmatpush3.bf16.msra.mxu0 %v5535_v57 }
 0x55b   : > { %5537 = vmatprep.subr.bf16.mxu0 %v5844_v41 }
 0x55d   : > { %5008 = vmatmul.mubr.msk.f32.gmra.mrb[46].mxu0 %vm266_vm1, %v5990_v12 }
 0x55e   : > { %5010 = vmatprep.mubr.msk.f32.mxu0 %vm5845_vm2, %v5846_v49  ;;  %5539 = vmatpush3.bf16.msra.mxu0 %v5538_v60 }
 0x55f   : > { %5543 = vmatprep.subr.bf16.mxu0 %v5844_v41 }
 0x561   : > { %5011 = vmatmul.mubr.msk.f32.gmra.mrb[48].mxu0 %vm266_vm1, %v6001_v14 }
 0x562   : > { %5036 = vmatprep.mubr.msk.f32.mxu0 %vm5845_vm2, %v5846_v49 }
 0x565   : > { %5037 = vmatmul.mubr.msk.f32.vlgmr.msra.gmra.mrb[50].mxu0 %vm266_vm1, %v5973_v4 }
 0x566   : > { %5039 = vmatprep.mubr.msk.f32.mxu0 %vm5845_vm2, %v5846_v49 }
 0x569   : > { %5040 = vmatmul.mubr.msk.f32.gmra.mrb[52].mxu0 %vm266_vm1, %v5990_v12 }
 0x56a   : > { %5042 = vmatprep.mubr.msk.f32.mxu0 %vm5845_vm2, %v5846_v49 }
 0x56d   : > { %5043 = vmatmul.mubr.msk.f32.gmra.mrb[54].mxu0 %vm266_vm1, %v6001_v14 }
 0x56e   : > { %5068 = vmatprep.mubr.msk.f32.mxu0 %vm5845_vm2, %v5846_v49 }
 0x5cd   : > { %v627_v61 = vpop.xlane.xlu1 %626 }
 0x5ce   : > { %5721 = vrcp.f32 %v627_v61 }
 0x5d1   : > { %v630_v62 = vpop.xlane.xlu0 %629 }
 0x5d2   : > { %v633_v63 = vpop.xlane.xlu1 %632  ;;  %5723 = vrcp.f32 %v630_v62 }
 0x5d3   : > { %5725 = vrcp.f32 %v633_v63 }
 0x5d8   : > { %v5722_v4 = vpop.eup %5721 }
 0x5d9   : > { %v637_v0 = vmul.f32 %v5722_v4, %v6175_v36 }
 0x5db   : > { %4924 = vmatmul.mubr.msk.f32.vlgmr.msra.gmra.mrb[18].mxu1 %vm606_vm5, %v637_v0 }
 0x5dc   : > { %v5724_v12 = vpop.eup %5723  ;;  %5514 = vmatpush3.bf16.xpose.msk.msra.mxu1 %vm6055_vm3, %v6059_v35  ;;  %4926 = vmatprep.mubr.msk.f32.mxu1 %vm5845_vm2, %v5846_v49 }
 0x5dd   : > { %v638_v14 = vmul.f32 %v5724_v12, %v6189_v42  ;;  %4953 = vmatprep.subr.mxu1 %v5846_v49  ;;  %v5726_v1 = vpop.eup %5725 }
 0x5de   : > { %v639_v2 = vmul.f32 %v5726_v1, %v6193_v44 }
 0x5df   : > { %4927 = vmatmul.mubr.msk.f32.gmra.mrb[20].mxu1 %vm606_vm5, %v638_v14 }
 0x5e0   : > { %4929 = vmatprep.mubr.msk.f32.mxu1 %vm5845_vm2, %v5846_v49 }
 0x5e3   : > { %4930 = vmatmul.mubr.msk.f32.gmra.mrb[22].mxu1 %vm606_vm5, %v639_v2 }
 0x5e4   : > { %4954 = vmatpush3.xpose.msk.msra.mxu1 %vm266_vm1, %v6074_v46  ;;  %4955 = vmatprep.mubr.msk.f32.mxu1 %vm5845_vm2, %v5846_v49 }
 0x5e5   : > { %5521 = vmatprep.subr.bf16.mxu1 %v5844_v41 }
 0x608   : > { %v1094_v3 = vpop.f32.mrb[26].mxu0 }
 0x609   : > { %v4910_v5 = vpop.f32.mrb[27].mxu0 }
 0x60c   : > { %v1099_v6 = vpop.f32.mrb[28].mxu0 }
 0x60d   : > { %v4913_v7 = vpop.f32.mrb[29].mxu0 }
 0x610   : > { %v1104_v8 = vpop.f32.mrb[30].mxu0 }
 0x611   : > { %v4916_v9 = vpop.f32.mrb[31].mxu0 }
 0x614   : > { %v1272_v11 = vpop.f32.mrb[32].mxu0 }
 0x615   : > { %v1273_v13 = vadd.f32 %v4368_v10, %v1272_v11  ;;  %v4942_v15 = vpop.f32.mrb[33].mxu0 }
 0x617   : > { %4956 = vmatmul.mubr.msk.f32.vlgmr.msra.gmra.mrb[24].mxu1 %vm266_vm1, %v1273_v13 }
 0x618   : > { %v1277_v16 = vpop.f32.mrb[34].mxu0  ;;  %4958 = vmatprep.mubr.msk.f32.mxu1 %vm5845_vm2, %v5846_v49 }
 0x619   : > { %v1278_v19 = vadd.f32 %v4368_v10, %v1277_v16  ;;  %v4945_v20 = vpop.f32.mrb[35].mxu0 }
 0x61b   : > { %4959 = vmatmul.mubr.msk.f32.gmra.mrb[26].mxu1 %vm266_vm1, %v1278_v19 }
 0x61c   : > { %v1282_v21 = vpop.f32.mrb[36].mxu0  ;;  %4961 = vmatprep.mubr.msk.f32.mxu1 %vm5845_vm2, %v5846_v49 }
 0x61d   : > { %v1283_v22 = vadd.f32 %v4368_v10, %v1282_v21  ;;  %v4948_v23 = vpop.f32.mrb[37].mxu0 }
 0x61f   : > { %4962 = vmatmul.mubr.msk.f32.gmra.mrb[28].mxu1 %vm266_vm1, %v1283_v22 }
 0x620   : > { %v1478_v24 = vpop.f32.mrb[38].mxu0  ;;  %4987 = vmatprep.mubr.msk.f32.mxu1 %vm5845_vm2, %v5846_v49 }
 0x621   : > { %v4974_v25 = vpop.f32.mrb[39].mxu0 }
 0x624   : > { %v1483_v26 = vpop.f32.mrb[40].mxu0 }
 0x625   : > { %v5522_v28 = vpack.c.bf16 %v1483_v26, %v1478_v24  ;;  %v4977_v29 = vpop.f32.mrb[41].mxu0 }
 0x627   : > { %5523 = vmatpush3.bf16.msra.mxu1 %v5522_v28 }
 0x628   : > { %v1488_v30 = vpop.f32.mrb[42].mxu0  ;;  %4985 = vmatprep.subr.mxu1 %v5846_v49 }
 0x629   : > { %v4980_v31 = vpop.f32.mrb[43].mxu0 }
 0x62b   : > { %4986 = vmatpush3.msra.mxu1 %v1488_v30 }
 0x62c   : > { %v6305_v32 = vpop.f32.mrb[44].mxu0  ;;  %5530 = vmatprep.subr.bf16.mxu1 %v5844_v41 }
 0x62d   : > { %v5006_v33 = vpop.f32.mrb[45].mxu0 }
 0x630   : > { %v6308_v36 = vpop.f32.mrb[46].mxu0 }
 0x631   : > { %v5009_v37 = vpop.f32.mrb[47].mxu0 }
 0x634   : > { %v6310_v38 = vpop.f32.mrb[48].mxu0 }
 0x635   : > { %v5012_v39 = vpop.f32.mrb[49].mxu0 }
 0x636   : > { %v4384_v39 = vld [vmem:[%s7146_s1 + $0x5b] ss:$0 sm:$0xff] }
 0x638   : > { %v6312_v40 = vpop.f32.mrb[50].mxu0 }
 0x639   : > { %v5038_v42 = vpop.f32.mrb[51].mxu0 }
 0x63a   : > { %v1665_v42 = vadd.f32 %v4384_v39, %v6308_v36 }
 0x63c   : > { %v6314_v43 = vpop.f32.mrb[52].mxu0 }
 0x63d   : > { %v5541_v44 = vpack.c.bf16 %v6314_v43, %v6312_v40  ;;  %v5041_v45 = vpop.f32.mrb[53].mxu0 }
 0x640   : > { %v6318_v47 = vpop.f32.mrb[54].mxu0 }
 0x641   : > { %v5044_v48 = vpop.f32.mrb[55].mxu0 }
 0x6ae   : > { %v1183_v50 = vpop.f32.mrb[18].mxu1 }
 0x6af   : > { %v6320_v51 = vadd.f32 %v1183_v50, %v1094_v3  ;;  %v4925_v52 = vpop.f32.mrb[19].mxu1 }
 0x6b2   : > { %v1188_v53 = vpop.f32.mrb[20].mxu1 }
 0x6b3   : > { %v6322_v54 = vadd.f32 %v1188_v53, %v1099_v6  ;;  %v4928_v55 = vpop.f32.mrb[21].mxu1 }
 0x6b6   : > { %v1193_v56 = vpop.f32.mrb[22].mxu1 }
 0x6b7   : > { %v6324_v57 = vadd.f32 %v1193_v56, %v1104_v8  ;;  %v4931_v58 = vpop.f32.mrb[23].mxu1 }
 0x6ea   : > { %v1361_v59 = vpop.f32.mrb[24].mxu1 }
 0x6eb   : > { %v1362_v60 = vadd.f32 %v1361_v59, %v6131_v27  ;;  %v4957_v61 = vpop.f32.mrb[25].mxu1 }
 0x6ed   : > { %v1375_v62 = vsel %vm606_vm5, %v1362_v60, -inf }
 0x6ee   : > { %1376 = vmax.xlane.f32.xlu0 %v1375_v62  ;;  %v1366_v63 = vpop.f32.mrb[26].mxu1 }
 0x6ef   : > { %v1367_v4 = vadd.f32 %v1366_v63, %v6131_v27  ;;  %v4960_v0 = vpop.f32.mrb[27].mxu1 }
 0x6f1   : > { %v1378_v12 = vsel %vm606_vm5, %v1367_v4, -inf }
 0x6f2   : > { %1379 = vmax.xlane.f32.xlu1 %v1378_v12  ;;  %v1371_v14 = vpop.f32.mrb[28].mxu1 }
 0x6f3   : > { %v1372_v1 = vadd.f32 %v1371_v14, %v6131_v27  ;;  %v4963_v2 = vpop.f32.mrb[29].mxu1 }
 0x6f5   : > { %v1381_v3 = vsel %vm606_vm5, %v1372_v1, -inf }
 0x6f6   : > { %1382 = vmax.xlane.f32.xlu0 %v1381_v3 }
 0x77b   : > { %v1377_v5 = vpop.xlane.xlu0 %1376 }
 0x77c   : > { %v1384_v6 = vsub.f32 %v1362_v60, %v1377_v5 }
 0x77e   : > { %v1387_v7 = vmul.f32 1.442695, %v1384_v6 }
 0x77f   : > { %v1380_v8 = vpop.xlane.xlu1 %1379 }
 0x780   : > { %5727 = vpow2.f32 %v1387_v7  ;;  %v1385_v9 = vsub.f32 %v1367_v4, %v1380_v8 }
 0x782   : > { %v1389_v10 = vmul.f32 1.442695, %v1385_v9 }
 0x783   : > { %v1383_v11 = vpop.xlane.xlu0 %1382 }
 0x784   : > { %5729 = vpow2.f32 %v1389_v10  ;;  %v1386_v13 = vsub.f32 %v1372_v1, %v1383_v11 }
 0x786   : > { %v1391_v15 = vmul.f32 1.442695, %v1386_v13 }
 0x788   : > { %5731 = vpow2.f32 %v1391_v15 }
 0x78a   : > { %v5728_v16 = vpop.eup %5727 }
 0x78b   : > { %v1393_v19 = vsel %vm606_vm5, %v5728_v16, 0.0 }
 0x78c   : > { %1394 = vadd.xlane.f32.xlu1 %v1393_v19 }
 0x78e   : > { %v5730_v20 = vpop.eup %5729 }
 0x78f   : > { %v1396_v21 = vsel %vm606_vm5, %v5730_v20, 0.0 }
 0x790   : > { %1397 = vadd.xlane.f32.xlu0 %v1396_v21 }
 0x792   : > { %v5732_v22 = vpop.eup %5731 }
 0x793   : > { %v1399_v23 = vsel %vm606_vm5, %v5732_v22, 0.0 }
 0x794   : > { %1400 = vadd.xlane.f32.xlu1 %v1399_v23 }
 0x819   : > { %v1395_v24 = vpop.xlane.xlu1 %1394 }
 0x81a   : > { %5733 = vrcp.f32 %v1395_v24 }
 0x81d   : > { %v1398_v25 = vpop.xlane.xlu0 %1397 }
 0x81e   : > { %5735 = vrcp.f32 %v1398_v25 }
 0x821   : > { %v1401_v26 = vpop.xlane.xlu1 %1400 }
 0x822   : > { %5737 = vrcp.f32 %v1401_v26 }
 0x824   : > { %v5734_v28 = vpop.eup %5733 }
 0x825   : > { %v1405_v29 = vmul.f32 %v5734_v28, %v5728_v16  ;;  %v4400_v28 = vld [vmem:[%s7146_s1 + $0x53] ss:$0 sm:$0xff] }
 0x827   : > { %4988 = vmatmul.mubr.msk.f32.vlgmr.msra.gmra.mrb[30].mxu1 %vm606_vm5, %v1405_v29 }
 0x828   : > { %v5736_v30 = vpop.eup %5735  ;;  %5533 = vmatpush3.bf16.xpose.msk.msra.mxu1 %vm6055_vm3, %v6059_v35  ;;  %4990 = vmatprep.mubr.msk.f32.mxu1 %vm5845_vm2, %v5846_v49  ;;  %v1660_v35 = vadd.f32 %v4384_v39, %v6305_v32 }
 0x829   : > { %v1406_v31 = vmul.f32 %v5736_v30, %v5730_v20  ;;  %5017 = vmatprep.subr.mxu1 %v5846_v49 }
 0x82b   : > { %4991 = vmatmul.mubr.msk.f32.gmra.mrb[32].mxu1 %vm606_vm5, %v1406_v31 }
 0x82c   : > { %v5738_v33 = vpop.eup %5737  ;;  %4993 = vmatprep.mubr.msk.f32.mxu1 %vm5845_vm2, %v5846_v49 }
 0x82d   : > { %v1407_v37 = vmul.f32 %v5738_v33, %v5732_v22 }
 0x82f   : > { %4994 = vmatmul.mubr.msk.f32.gmra.mrb[34].mxu1 %vm606_vm5, %v1407_v37 }
 0x830   : > { %5018 = vmatpush3.xpose.msk.msra.mxu1 %vm266_vm1, %v6074_v46  ;;  %5019 = vmatprep.mubr.msk.f32.mxu1 %vm5845_vm2, %v5846_v49  ;;  %v1670_v46 = vadd.f32 %v4384_v39, %v6310_v38 }
 0x831   : > { %5540 = vmatprep.subr.bf16.mxu1 %v5844_v41 }
 0x833   : > { %5020 = vmatmul.mubr.msk.f32.vlgmr.msra.gmra.mrb[36].mxu1 %vm266_vm1, %v1660_v35 }
 0x834   : > { %5542 = vmatpush3.bf16.msra.mxu1 %v5541_v44  ;;  %5022 = vmatprep.mubr.msk.f32.mxu1 %vm5845_vm2, %v5846_v49 }
 0x835   : > { %5049 = vmatprep.subr.mxu1 %v5846_v49 }
 0x837   : > { %5023 = vmatmul.mubr.msk.f32.gmra.mrb[38].mxu1 %vm266_vm1, %v1665_v42 }
 0x838   : > { %5050 = vmatpush3.msra.mxu1 %v6318_v47  ;;  %5025 = vmatprep.mubr.msk.f32.mxu1 %vm5845_vm2, %v5846_v49 }
 0x839   : > { %5549 = vmatprep.subr.bf16.mxu1 %v5844_v41 }
 0x83b   : > { %5026 = vmatmul.mubr.msk.f32.gmra.mrb[40].mxu1 %vm266_vm1, %v1670_v46 }
 0x83c   : > { %5051 = vmatprep.mubr.msk.f32.mxu1 %vm5845_vm2, %v5846_v49 }
 0x8fa   : > { %v1567_v32 = vpop.f32.mrb[30].mxu1 }
 0x8fb   : > { %v6373_v36 = vadd.f32 %v1567_v32, %v6320_v51  ;;  %v4989_v40 = vpop.f32.mrb[31].mxu1 }
 0x8fe   : > { %v1572_v43 = vpop.f32.mrb[32].mxu1 }
 0x8ff   : > { %v6376_v44 = vadd.f32 %v1572_v43, %v6322_v54  ;;  %v4992_v45 = vpop.f32.mrb[33].mxu1 }
 0x902   : > { %v1577_v47 = vpop.f32.mrb[34].mxu1 }
 0x903   : > { %v6379_v38 = vadd.f32 %v1577_v47, %v6324_v57  ;;  %v4995_v48 = vpop.f32.mrb[35].mxu1 }
 0x906   : > { %v1748_v50 = vpop.f32.mrb[36].mxu1 }
 0x907   : > { %v1749_v52 = vadd.f32 %v1748_v50, %v6131_v27  ;;  %v5021_v53 = vpop.f32.mrb[37].mxu1 }
 0x909   : > { %v1762_v55 = vsel %vm606_vm5, %v1749_v52, -inf }
 0x90a   : > { %1763 = vmax.xlane.f32.xlu0 %v1762_v55  ;;  %v1753_v51 = vpop.f32.mrb[38].mxu1 }
 0x90b   : > { %v1754_v56 = vadd.f32 %v1753_v51, %v6131_v27  ;;  %v5024_v58 = vpop.f32.mrb[39].mxu1 }
 0x90d   : > { %v1765_v54 = vsel %vm606_vm5, %v1754_v56, -inf }
 0x90e   : > { %1766 = vmax.xlane.f32.xlu1 %v1765_v54  ;;  %v1758_v59 = vpop.f32.mrb[40].mxu1 }
 0x90f   : > { %v1759_v60 = vadd.f32 %v1758_v59, %v6131_v27  ;;  %v5027_v57 = vpop.f32.mrb[41].mxu1 }
 0x911   : > { %v1768_v61 = vsel %vm606_vm5, %v1759_v60, -inf }
 0x912   : > { %1769 = vmax.xlane.f32.xlu0 %v1768_v61  ;;  %v2037_v61 = vld [vmem:[%s7147_s2] sm:$0xff] }
 0x997   : > { %v1764_v62 = vpop.xlane.xlu0 %1763 }
 0x998   : > { %v1771_v63 = vsub.f32 %v1749_v52, %v1764_v62  ;;  %v2038_v62 = vld [vmem:[%s7147_s2 + $0x8] sm:$0xff] }
 0x99a   : > { %v1774_v4 = vmul.f32 1.442695, %v1771_v63  ;;  %v5544_v63 = vpack.c.bf16 %v2038_v62, %v2037_v61 }
 0x99b   : > { %v1767_v0 = vpop.xlane.xlu1 %1766 }
 0x99c   : > { %5739 = vpow2.f32 %v1774_v4  ;;  %v1772_v12 = vsub.f32 %v1754_v56, %v1767_v0  ;;  %5545 = vmatpush3.bf16.msra.mxu0 %v5544_v63  ;;  %v2039_v4 = vld [vmem:[%s7147_s2 + $0x10] sm:$0xff]  ;;  %v2040_v0 = vld [vmem:[%s7147_s2 + $0x18] sm:$0xff] }
 0x99d   : > { %5546 = vmatprep.subr.bf16.mxu0 %v5844_v41 }
 0x99e   : > { %v1776_v14 = vmul.f32 1.442695, %v1772_v12  ;;  %v5547_v12 = vpack.c.bf16 %v2040_v0, %v2039_v4 }
 0x99f   : > { %v1770_v1 = vpop.xlane.xlu0 %1769 }
 0x9a0   : > { %5741 = vpow2.f32 %v1776_v14  ;;  %v1773_v2 = vsub.f32 %v1759_v60, %v1770_v1  ;;  %5548 = vmatpush3.bf16.msra.mxu0 %v5547_v12  ;;  %v2150_v14 = vld [vmem:[%s7146_s1 + $0x180] sm:$0xff]  ;;  %v2151_v1 = vld [vmem:[%s7146_s1 + $0x188] sm:$0xff] }
 0x9a1   : > { %5573 = vmatprep.subr.bf16.mxu0 %v5844_v41 }
 0x9a2   : > { %v1778_v3 = vmul.f32 1.442695, %v1773_v2  ;;  %v2152_v2 = vld [vmem:[%s7146_s1 + $0x190] sm:$0xff] }
 0x9a4   : > { %5743 = vpow2.f32 %v1778_v3  ;;  %v5550_v3 = vpack.c.bf16 %v2151_v1, %v2150_v14 }
 0x9a6   : > { %v5740_v5 = vpop.eup %5739 }
 0x9a7   : > { %v1780_v6 = vsel %vm606_vm5, %v5740_v5, 0.0 }
 0x9a8   : > { %1781 = vadd.xlane.f32.xlu1 %v1780_v6 }
 0x9aa   : > { %v5742_v7 = vpop.eup %5741 }
 0x9ab   : > { %v1783_v8 = vsel %vm606_vm5, %v5742_v7, 0.0 }
 0x9ac   : > { %1784 = vadd.xlane.f32.xlu0 %v1783_v8  ;;  %v2155_v8 = vld [vmem:[%s7146_s1 + $0x1a8] sm:$0xff] }
 0x9ae   : > { %v5744_v9 = vpop.eup %5743 }
 0x9af   : > { %v1786_v10 = vsel %vm606_vm5, %v5744_v9, 0.0 }
 0x9b0   : > { %1787 = vadd.xlane.f32.xlu1 %v1786_v10 }
 0xa35   : > { %v1782_v11 = vpop.xlane.xlu1 %1781 }
 0xa36   : > { %5745 = vrcp.f32 %v1782_v11 }
 0xa39   : > { %v1785_v13 = vpop.xlane.xlu0 %1784 }
 0xa3a   : > { %5747 = vrcp.f32 %v1785_v13 }
 0xa3d   : > { %v1788_v15 = vpop.xlane.xlu1 %1787 }
 0xa3e   : > { %5749 = vrcp.f32 %v1788_v15 }
 0xa40   : > { %v5746_v16 = vpop.eup %5745 }
 0xa41   : > { %v1792_v19 = vmul.f32 %v5746_v16, %v5740_v5  ;;  %v2153_v5 = vld [vmem:[%s7146_s1 + $0x198] sm:$0xff] }
 0xa42   : > { %v5553_v6 = vpack.c.bf16 %v2153_v5, %v2152_v2 }
 0xa43   : > { %5052 = vmatmul.mubr.msk.f32.vlgmr.msra.gmra.mrb[42].mxu1 %vm606_vm5, %v1792_v19 }
 0xa44   : > { %v5748_v20 = vpop.eup %5747  ;;  %5054 = vmatprep.mubr.msk.f32.mxu1 %vm5845_vm2, %v5846_v49  ;;  %5551 = vmatpush3.bf16.msra.mxu1 %v5550_v3 }
 0xa45   : > { %v1793_v21 = vmul.f32 %v5748_v20, %v5742_v7  ;;  %5552 = vmatprep.subr.bf16.mxu1 %v5844_v41  ;;  %v2154_v7 = vld [vmem:[%s7146_s1 + $0x1a0] sm:$0xff] }
 0xa47   : > { %5055 = vmatmul.mubr.msk.f32.gmra.mrb[44].mxu1 %vm606_vm5, %v1793_v21 }
 0xa48   : > { %v5750_v22 = vpop.eup %5749  ;;  %5057 = vmatprep.mubr.msk.f32.mxu1 %vm5845_vm2, %v5846_v49  ;;  %5554 = vmatpush3.bf16.msra.mxu1 %v5553_v6 }
 0xa49   : > { %v1794_v23 = vmul.f32 %v5750_v22, %v5744_v9  ;;  %v5556_v9 = vpack.c.bf16 %v2155_v8, %v2154_v7  ;;  %5555 = vmatprep.subr.bf16.mxu1 %v5844_v41 }
 0xa4b   : > { %5058 = vmatmul.mubr.msk.f32.gmra.mrb[46].mxu1 %vm606_vm5, %v1794_v23 }
 0xa4c   : > { %5109 = vmatprep.mubr.msk.f32.mxu1 %vm5845_vm2, %v5846_v49  ;;  %5557 = vmatpush3.bf16.msra.mxu1 %v5556_v9 }
 0xa4d   : > { %5558 = vmatprep.subr.bf16.mxu1 %v5844_v41 }
 0xb16   : > { %v1954_v24 = vpop.f32.mrb[42].mxu1 }
 0xb17   : > { %v1968_v25 = vadd.f32 %v1954_v24, %v6373_v36  ;;  %v5053_v26 = vpop.f32.mrb[43].mxu1  ;;  %v4401_v24 = vld [vmem:[%s7146_s1 + $0x54] ss:$0 sm:$0xff] }
 0xb18   : > { %v4402_v26 = vld [vmem:[%s7146_s1 + $0x55] ss:$0 sm:$0xff] }
 0xb19   : > { %v1971_v29 = vadd.f32 %v1968_v25, %v5910_v17  ;;  %v5835_v17 = vld [vmem:[%s7146_s1 + $0x40] sm:$0xff] }
 0xb1a   : > { %v1959_v30 = vpop.f32.mrb[44].mxu1 }
 0xb1b   : > { %v6404_v31 = vadd.f32 %v4400_v28, %v1971_v29  ;;  %v1969_v33 = vadd.f32 %v1959_v30, %v6376_v44  ;;  %v5056_v37 = vpop.f32.mrb[45].mxu1 }
 0xb1d   : > { %v1972_v39 = vadd.f32 %v1969_v33, %v5912_v18  ;;  %v1984_v35 = vsel %vm266_vm1, %v6404_v31, 0.0 }
 0xb1e   : > { %1985 = vadd.xlane.f32.xlu0 %v1984_v35  ;;  %v1964_v42 = vpop.f32.mrb[46].mxu1 }
 0xb1f   : > { %v6410_v46 = vadd.f32 %v4400_v28, %v1972_v39  ;;  %v1970_v32 = vadd.f32 %v1964_v42, %v6379_v38  ;;  %v5059_v36 = vpop.f32.mrb[47].mxu1 }
 0xb21   : > { %v1973_v40 = vadd.f32 %v5835_v17, %v1970_v32  ;;  %v1987_v43 = vsel %vm266_vm1, %v6410_v46, 0.0  ;;  %v2156_v17 = vld [vmem:[%s7146_s1 + $0x1b0] sm:$0xff] }
 0xb22   : > { %1988 = vadd.xlane.f32.xlu1 %v1987_v43 }
 0xb23   : > { %v6418_v18 = vadd.f32 %v4400_v28, %v1973_v40  ;;  %v2157_v40 = vld [vmem:[%s7146_s1 + $0x1b8] sm:$0xff] }
 0xb24   : > { %v5559_v43 = vpack.c.bf16 %v2157_v40, %v2156_v17 }
 0xb25   : > { %v1990_v44 = vsel %vm266_vm1, %v6418_v18, 0.0 }
 0xb26   : > { %1991 = vadd.xlane.f32.xlu0 %v1990_v44  ;;  %5560 = vmatpush3.bf16.msra.mxu1 %v5559_v43  ;;  %v2158_v44 = vld [vmem:[%s7146_s1 + $0x1c0] sm:$0xff] }
 0xb27   : > { %5561 = vmatprep.subr.bf16.mxu1 %v5844_v41 }
 0xbab   : > { %v1986_v45 = vpop.xlane.xlu0 %1985 }
 0xbac   : > { %v1993_v47 = vmul.f32 0.03125, %v1986_v45  ;;  %v2159_v45 = vld [vmem:[%s7146_s1 + $0x1c8] sm:$0xff] }
 0xbae   : > { %v1996_v38 = vsub.f32 %v6404_v31, %v1993_v47  ;;  %v5562_v47 = vpack.c.bf16 %v2159_v45, %v2158_v44 }
 0xbaf   : > { %v1989_v48 = vpop.xlane.xlu1 %1988 }
 0xbb0   : > { %v1994_v50 = vmul.f32 0.03125, %v1989_v48  ;;  %v1999_v52 = vmul.f32 %v1996_v38, %v1996_v38  ;;  %5563 = vmatpush3.bf16.msra.mxu1 %v5562_v47  ;;  %v2161_v48 = vld [vmem:[%s7146_s1 + $0x1d8] sm:$0xff] }
 0xbb1   : > { %5564 = vmatprep.subr.bf16.mxu1 %v5844_v41 }
 0xbb2   : > { %v1997_v53 = vsub.f32 %v6410_v46, %v1994_v50  ;;  %v2002_v55 = vsel %vm266_vm1, %v1999_v52, 0.0  ;;  %v2162_v52 = vld [vmem:[%s7146_s1 + $0x1e0] sm:$0xff] }
 0xbb3   : > { %2003 = vadd.xlane.f32.xlu1 %v2002_v55  ;;  %v1992_v51 = vpop.xlane.xlu0 %1991 }
 0xbb4   : > { %v1995_v56 = vmul.f32 0.03125, %v1992_v51  ;;  %v2000_v58 = vmul.f32 %v1997_v53, %v1997_v53  ;;  %v2164_v51 = vld [vmem:[%s7146_s1 + $0x1f0] sm:$0xff] }
 0xbb6   : > { %v1998_v54 = vsub.f32 %v6418_v18, %v1995_v56  ;;  %v2005_v59 = vsel %vm266_vm1, %v2000_v58, 0.0  ;;  %v2165_v56 = vld [vmem:[%s7146_s1 + $0x1f8] sm:$0xff] }
 0xbb7   : > { %2006 = vadd.xlane.f32.xlu0 %v2005_v59  ;;  %v5571_v58 = vpack.c.bf16 %v2165_v56, %v2164_v51  ;;  %v2313_v51 = vld [vmem:[%s7146_s1 + $0x218] sm:$0xff] }
 0xbb8   : > { %v2001_v60 = vmul.f32 %v1998_v54, %v1998_v54 }
 0xbba   : > { %v2008_v57 = vsel %vm266_vm1, %v2001_v60, 0.0 }
 0xbbb   : > { %2009 = vadd.xlane.f32.xlu1 %v2008_v57 }
 0xc40   : > { %v2004_v10 = vpop.xlane.xlu1 %2003 }
 0xc41   : > { %v2011_v11 = vmul.f32 0.03125, %v2004_v10 }
 0xc43   : > { %v2014_v13 = vadd.f32 1e-06, %v2011_v11 }
 0xc44   : > { %v2007_v15 = vpop.xlane.xlu0 %2006 }
 0xc45   : > { %5751 = vrsqrt.f32 %v2014_v13  ;;  %v2012_v16 = vmul.f32 0.03125, %v2007_v15 }
 0xc47   : > { %v2015_v19 = vadd.f32 1e-06, %v2012_v16 }
 0xc48   : > { %v2010_v20 = vpop.xlane.xlu1 %2009 }
 0xc49   : > { %5753 = vrsqrt.f32 %v2015_v19  ;;  %v2013_v21 = vmul.f32 0.03125, %v2010_v20 }
 0xc4b   : > { %v2016_v22 = vadd.f32 1e-06, %v2013_v21  ;;  %v4407_v21 = vld [vmem:[%s7146_s1 + $0x56] ss:$0 sm:$0xff] }
 0xc4d   : > { %5755 = vrsqrt.f32 %v2016_v22 }
 0xc4f   : > { %v5752_v23 = vpop.eup %5751 }
 0xc50   : > { %v2020_v25 = vmul.f32 %v5752_v23, %v1996_v38  ;;  %v2160_v38 = vld [vmem:[%s7146_s1 + $0x1d0] sm:$0xff] }
 0xc51   : > { %v5565_v50 = vpack.c.bf16 %v2161_v48, %v2160_v38 }
 0xc52   : > { %v2027_v28 = vmul.f32 %v4401_v24, %v2020_v25 }
 0xc53   : > { %v5754_v29 = vpop.eup %5753  ;;  %5566 = vmatpush3.bf16.msra.mxu1 %v5565_v50 }
 0xc54   : > { %v2034_v30 = vadd.f32 %v4402_v26, %v2027_v28  ;;  %v2021_v33 = vmul.f32 %v5754_v29, %v1997_v53  ;;  %5567 = vmatprep.subr.bf16.mxu1 %v5844_v41  ;;  %v2163_v53 = vld [vmem:[%s7146_s1 + $0x1e8] sm:$0xff] }
 0xc55   : > { %v5568_v55 = vpack.c.bf16 %v2163_v53, %v2162_v52 }
 0xc56   : > { %5069 = vmatmul.mubr.msk.f32.vlgmr.msra.gmra.mrb[56].mxu0 %vm266_vm1, %v2034_v30  ;;  %v2028_v37 = vmul.f32 %v4401_v24, %v2021_v33 }
 0xc57   : > { %v5756_v39 = vpop.eup %5755  ;;  %5071 = vmatprep.mubr.msk.f32.mxu0 %vm5845_vm2, %v5846_v49  ;;  %5569 = vmatpush3.bf16.msra.mxu1 %v5568_v55  ;;  %v2312_v55 = vld [vmem:[%s7146_s1 + $0x210] sm:$0xff] }
 0xc58   : > { %v2035_v35 = vadd.f32 %v4402_v26, %v2028_v37  ;;  %v2022_v42 = vmul.f32 %v5756_v39, %v1998_v54  ;;  %5570 = vmatprep.subr.bf16.mxu1 %v5844_v41  ;;  %v4403_v54 = vld [vmem:[%s7147_s2 + $0x20] ss:$0 sm:$0xff]  ;;  %v5574_v56 = vpack.c.bf16 %v2313_v51, %v2312_v55 }
 0xc5a   : > { %5072 = vmatmul.mubr.msk.f32.gmra.mrb[58].mxu0 %vm266_vm1, %v2035_v35  ;;  %v2029_v32 = vmul.f32 %v4401_v24, %v2022_v42 }
 0xc5b   : > { %5074 = vmatprep.mubr.msk.f32.mxu0 %vm5845_vm2, %v5846_v49  ;;  %5572 = vmatpush3.bf16.msra.mxu1 %v5571_v58  ;;  %v2314_v58 = vld [vmem:[%s7146_s1 + $0x220] sm:$0xff] }
 0xc5c   : > { %v2036_v36 = vadd.f32 %v4402_v26, %v2029_v32  ;;  %5585 = vmatprep.subr.bf16.mxu1 %v5844_v41  ;;  %5575 = vmatpush3.bf16.msra.mxu0 %v5574_v56 }
 0xc5d   : > { %5576 = vmatprep.subr.bf16.mxu0 %v5844_v41 }
 0xc5e   : > { %5075 = vmatmul.mubr.msk.f32.gmra.mrb[60].mxu0 %vm266_vm1, %v2036_v36 }
 0xc5f   : > { %5126 = vmatprep.mubr.msk.f32.mxu0 %vm5845_vm2, %v5846_v49 }
 0xd29   : > { %v2121_v59 = vpop.f32.mrb[56].mxu0 }
 0xd2a   : > { %v2122_v60 = vadd.f32 %v4403_v54, %v2121_v59  ;;  %v5070_v57 = vpop.f32.mrb[57].mxu0 }
 0xd2c   : > { %v2138_v61 = vmul.f32 0.70710677, %v2122_v60  ;;  %v2135_v5 = vmul.f32 0.5, %v2122_v60 }
 0xd2d   : > { %v2126_v62 = vpop.f32.mrb[58].mxu0 }
 0xd2e   : > { %5757 = verf.f32 %v2138_v61  ;;  %v2127_v63 = vadd.f32 %v4403_v54, %v2126_v62  ;;  %v5073_v4 = vpop.f32.mrb[59].mxu0 }
 0xd30   : > { %v2139_v0 = vmul.f32 0.70710677, %v2127_v63  ;;  %v2136_v9 = vmul.f32 0.5, %v2127_v63 }
 0xd31   : > { %v2131_v12 = vpop.f32.mrb[60].mxu0 }
 0xd32   : > { %5759 = verf.f32 %v2139_v0  ;;  %v2132_v14 = vadd.f32 %v4403_v54, %v2131_v12  ;;  %v5076_v1 = vpop.f32.mrb[61].mxu0  ;;  %v2315_v54 = vld [vmem:[%s7146_s1 + $0x228] sm:$0xff] }
 0xd33   : > { %v5577_v59 = vpack.c.bf16 %v2315_v54, %v2314_v58  ;;  %v2716_v54 = vld [vmem:[%s7146_s1 + $0x260] sm:$0xff] }
 0xd34   : > { %v2140_v2 = vmul.f32 0.70710677, %v2132_v14  ;;  %v2137_v15 = vmul.f32 0.5, %v2132_v14 }
 0xd35   : > { %5578 = vmatpush3.bf16.msra.mxu0 %v5577_v59  ;;  %v2717_v59 = vld [vmem:[%s7146_s1 + $0x268] sm:$0xff] }
 0xd36   : > { %5761 = verf.f32 %v2140_v2  ;;  %5579 = vmatprep.subr.bf16.mxu0 %v5844_v41  ;;  %v4408_v2 = vld [vmem:[%s7146_s1 + $0x200] ss:$0 sm:$0xff] }
 0xd38   : > { %v5758_v3 = vpop.eup %5757 }
 0xd39   : > { %v2144_v6 = vadd.f32 1.0, %v5758_v3 }
 0xd3b   : > { %v2147_v7 = vmul.f32 %v2144_v6, %v2135_v5  ;;  %v2410_v5 = vld [vmem:[%s7146_s1 + $0x230] sm:$0xff]  ;;  %v2411_v6 = vld [vmem:[%s7146_s1 + $0x238] sm:$0xff] }
 0xd3c   : > { %v5760_v8 = vpop.eup %5759 }
 0xd3d   : > { %v2145_v10 = vadd.f32 1.0, %v5760_v8  ;;  %5110 = vmatmul.mubr.f32.vlgmr.msra.gmra.mrb[48].mxu1 %v2147_v7  ;;  %v4409_v7 = vld [vmem:[%s7146_s1 + $0x201] ss:$0 sm:$0xff] }
 0xd3e   : > { %5112 = vmatprep.mubr.msk.f32.mxu1 %vm5845_vm2, %v5846_v49 }
 0xd3f   : > { %v2148_v11 = vmul.f32 %v2145_v10, %v2136_v9  ;;  %v5580_v10 = vpack.c.bf16 %v2411_v6, %v2410_v5  ;;  %v2927_v6 = vld [vmem:[%s7146_s1 + $0x2e0] sm:$0xff] }
 0xd40   : > { %v5762_v13 = vpop.eup %5761 }
 0xd41   : > { %v2146_v16 = vadd.f32 1.0, %v5762_v13  ;;  %5113 = vmatmul.mubr.f32.gmra.mrb[50].mxu1 %v2148_v11 }
 0xd42   : > { %5115 = vmatprep.mubr.msk.f32.mxu1 %vm5845_vm2, %v5846_v49 }
 0xd43   : > { %v2149_v19 = vmul.f32 %v2146_v16, %v2137_v15  ;;  %v2412_v15 = vld [vmem:[%s7146_s1 + $0x240] sm:$0xff]  ;;  %v2413_v16 = vld [vmem:[%s7146_s1 + $0x248] sm:$0xff] }
 0xd45   : > { %5116 = vmatmul.mubr.f32.gmra.mrb[52].mxu1 %v2149_v19 }
 0xd46   : > { %5158 = vmatprep.mubr.msk.f32.mxu1 %vm5845_vm2, %v5846_v49 }
 0xe10   : > { %v2232_v20 = vpop.f32.mrb[48].mxu1 }
 0xe11   : > { %v2246_v22 = vadd.f32 %v2232_v20, %v6404_v31  ;;  %v5111_v23 = vpop.f32.mrb[49].mxu1 }
 0xe13   : > { %v6526_v24 = vadd.f32 %v4407_v21, %v2246_v22 }
 0xe14   : > { %v2237_v25 = vpop.f32.mrb[50].mxu1 }
 0xe15   : > { %v2247_v26 = vadd.f32 %v2237_v25, %v6410_v46  ;;  %v5114_v28 = vpop.f32.mrb[51].mxu1  ;;  %v2259_v29 = vsel %vm266_vm1, %v6526_v24, 0.0 }
 0xe16   : > { %2260 = vadd.xlane.f32.xlu0 %v2259_v29  ;;  %v2630_v28 = vld [vmem:[%s7146_s1 + $0x2b0] sm:$0xff]  ;;  %v2631_v29 = vld [vmem:[%s7146_s1 + $0x2b8] sm:$0xff] }
 0xe17   : > { %v6531_v30 = vadd.f32 %v4407_v21, %v2247_v26 }
 0xe18   : > { %v2242_v33 = vpop.f32.mrb[52].mxu1 }
 0xe19   : > { %v2248_v37 = vadd.f32 %v2242_v33, %v6418_v18  ;;  %v5117_v39 = vpop.f32.mrb[53].mxu1  ;;  %v2262_v31 = vsel %vm266_vm1, %v6531_v30, 0.0  ;;  %v5590_v33 = vpack.c.bf16 %v2631_v29, %v2630_v28 }
 0xe1a   : > { %2263 = vadd.xlane.f32.xlu1 %v2262_v31  ;;  %v2633_v39 = vld [vmem:[%s7146_s1 + $0x2c8] sm:$0xff] }
 0xe1b   : > { %v6536_v35 = vadd.f32 %v4407_v21, %v2248_v37  ;;  %v5583_v21 = vpack.c.bf16 %v2413_v16, %v2412_v15  ;;  %v2632_v37 = vld [vmem:[%s7146_s1 + $0x2c0] sm:$0xff] }
 0xe1c   : > { %v5593_v31 = vpack.c.bf16 %v2633_v39, %v2632_v37 }
 0xe1d   : > { %v2265_v46 = vsel %vm266_vm1, %v6536_v35, 0.0 }
 0xe1e   : > { %2266 = vadd.xlane.f32.xlu0 %v2265_v46 }
 0xea3   : > { %v2261_v42 = vpop.xlane.xlu0 %2260 }
 0xea4   : > { %v2268_v32 = vmul.f32 0.03125, %v2261_v42 }
 0xea6   : > { %v2271_v36 = vsub.f32 %v6526_v24, %v2268_v32  ;;  %v4410_v32 = vld [vmem:[%s7146_s1 + $0x202] ss:$0 sm:$0xff] }
 0xea7   : > { %v2264_v17 = vpop.xlane.xlu1 %2263 }
 0xea8   : > { %v2269_v40 = vmul.f32 0.03125, %v2264_v17  ;;  %v2274_v43 = vmul.f32 %v2271_v36, %v2271_v36 }
 0xeaa   : > { %v2272_v18 = vsub.f32 %v6531_v30, %v2269_v40  ;;  %v2277_v44 = vsel %vm266_vm1, %v2274_v43, 0.0 }
 0xeab   : > { %2278 = vadd.xlane.f32.xlu1 %v2277_v44  ;;  %v2267_v45 = vpop.xlane.xlu0 %2266 }
 0xeac   : > { %v2270_v47 = vmul.f32 0.03125, %v2267_v45  ;;  %v2275_v38 = vmul.f32 %v2272_v18, %v2272_v18 }
 0xeae   : > { %v2273_v48 = vsub.f32 %v6536_v35, %v2270_v47  ;;  %v2280_v50 = vsel %vm266_vm1, %v2275_v38, 0.0 }
 0xeaf   : > { %2281 = vadd.xlane.f32.xlu0 %v2280_v50  ;;  %v2715_v50 = vld [vmem:[%s7146_s1 + $0x258] sm:$0xff] }
 0xeb0   : > { %v2276_v52 = vmul.f32 %v2273_v48, %v2273_v48 }
 0xeb2   : > { %v2283_v53 = vsel %vm266_vm1, %v2276_v52, 0.0 }
 0xeb3   : > { %2284 = vadd.xlane.f32.xlu1 %v2283_v53  ;;  %v4414_v53 = vld [vmem:[%s7146_s1 + $0x208] ss:$0 sm:$0xff] }
 0xf38   : > { %v2279_v60 = vpop.xlane.xlu1 %2278 }
 0xf39   : > { %v2286_v57 = vmul.f32 0.03125, %v2279_v60 }
 0xf3b   : > { %v2289_v61 = vadd.f32 1e-06, %v2286_v57 }
 0xf3c   : > { %v2282_v62 = vpop.xlane.xlu0 %2281 }
 0xf3d   : > { %5763 = vrsqrt.f32 %v2289_v61  ;;  %v2287_v63 = vmul.f32 0.03125, %v2282_v62  ;;  %v5599_v61 = vpack.c.bf16 %v2717_v59, %v2716_v54 }
 0xf3f   : > { %v2290_v4 = vadd.f32 1e-06, %v2287_v63 }
 0xf40   : > { %v2285_v0 = vpop.xlane.xlu1 %2284 }
 0xf41   : > { %5765 = vrsqrt.f32 %v2290_v4  ;;  %v2288_v12 = vmul.f32 0.03125, %v2285_v0 }
 0xf43   : > { %v2291_v14 = vadd.f32 1e-06, %v2288_v12  ;;  %v2925_v12 = vld [vmem:[%s7146_s1 + $0x2d0] sm:$0xff] }
 0xf45   : > { %5767 = vrsqrt.f32 %v2291_v14  ;;  %v2926_v14 = vld [vmem:[%s7146_s1 + $0x2d8] sm:$0xff] }
 0xf46   : > { %v5606_v5 = vpack.c.bf16 %v2926_v14, %v2925_v12 }
 0xf47   : > { %v5764_v1 = vpop.eup %5763 }
 0xf48   : > { %v2295_v3 = vmul.f32 %v5764_v1, %v2271_v36 }
 0xf4a   : > { %v2302_v8 = vmul.f32 %v4408_v2, %v2295_v3 }
 0xf4b   : > { %v5766_v9 = vpop.eup %5765 }
 0xf4c   : > { %v6572_v11 = vadd.f32 %v4409_v7, %v2302_v8  ;;  %v2296_v13 = vmul.f32 %v5766_v9, %v2272_v18 }
 0xf4e   : > { %v2303_v19 = vmul.f32 %v4408_v2, %v2296_v13  ;;  %5127 = vmatmul.mubr.msk.f32.vlgmr.msra.gmra.mrb[62].mxu0 %vm266_vm1, %v6572_v11 }
 0xf4f   : > { %v5768_v20 = vpop.eup %5767  ;;  %5129 = vmatprep.mubr.msk.f32.mxu0 %vm5845_vm2, %v5846_v49  ;;  %5581 = vmatpush3.bf16.msra.mxu0 %v5580_v10 }
 0xf50   : > { %v6584_v22 = vadd.f32 %v4409_v7, %v2303_v19  ;;  %v2297_v23 = vmul.f32 %v5768_v20, %v2273_v48  ;;  %5582 = vmatprep.subr.bf16.mxu0 %v5844_v41  ;;  %v2714_v48 = vld [vmem:[%s7146_s1 + $0x250] sm:$0xff] }
 0xf51   : > { %v5596_v56 = vpack.c.bf16 %v2715_v50, %v2714_v48 }
 0xf52   : > { %v2304_v25 = vmul.f32 %v4408_v2, %v2297_v23  ;;  %5130 = vmatmul.mubr.msk.f32.gmra.mrb[64].mxu0 %vm266_vm1, %v6584_v22  ;;  %v4427_v23 = vld [vmem:[%s7146_s1 + $0x209] ss:$0 sm:$0xff] }
 0xf53   : > { %5132 = vmatprep.mubr.msk.f32.mxu0 %vm5845_vm2, %v5846_v49  ;;  %5584 = vmatpush3.bf16.msra.mxu0 %v5583_v21 }
 0xf54   : > { %v6591_v26 = vadd.f32 %v4409_v7, %v2304_v25  ;;  %5589 = vmatprep.subr.bf16.mxu0 %v5844_v41  ;;  %v2928_v7 = vld [vmem:[%s7146_s1 + $0x2e8] sm:$0xff] }
 0xf55   : > { %v5609_v10 = vpack.c.bf16 %v2928_v7, %v2927_v6 }
 0xf56   : > { %5133 = vmatmul.mubr.msk.f32.gmra.mrb[66].mxu0 %vm266_vm1, %v6591_v26 }
 0xf57   : > { %5143 = vmatprep.mubr.msk.f32.mxu0 %vm5845_vm2, %v5846_v49 }
 0xf5a   : > { %5144 = vmatmul.mubr.msk.f32.vlgmr.msra.gmra.mrb[68].mxu0 %vm266_vm1, %v6572_v11 }
 0xf5b   : > { %5146 = vmatprep.mubr.msk.f32.mxu0 %vm5845_vm2, %v5846_v49  ;;  %5591 = vmatpush3.bf16.msra.mxu0 %v5590_v33 }
 0xf5c   : > { %5592 = vmatprep.subr.bf16.mxu0 %v5844_v41 }
 0xf5e   : > { %5147 = vmatmul.mubr.msk.f32.gmra.mrb[70].mxu0 %vm266_vm1, %v6584_v22 }
 0xf5f   : > { %5149 = vmatprep.mubr.msk.f32.mxu0 %vm5845_vm2, %v5846_v49  ;;  %5594 = vmatpush3.bf16.msra.mxu0 %v5593_v31 }
 0xf60   : > { %5601 = vmatprep.subr.bf16.mxu0 %v5844_v41 }
 0xf62   : > { %5150 = vmatmul.mubr.msk.f32.gmra.mrb[72].mxu0 %vm266_vm1, %v6591_v26 }
 0xf63   : > { %5175 = vmatprep.mubr.msk.f32.mxu0 %vm5845_vm2, %v5846_v49 }
 0xf66   : > { %5176 = vmatmul.mubr.msk.f32.vlgmr.msra.gmra.mrb[74].mxu0 %vm266_vm1, %v6572_v11 }
 0xf67   : > { %5178 = vmatprep.mubr.msk.f32.mxu0 %vm5845_vm2, %v5846_v49 }
 0xf6a   : > { %5179 = vmatmul.mubr.msk.f32.gmra.mrb[76].mxu0 %vm266_vm1, %v6584_v22 }
 0xf6b   : > { %5181 = vmatprep.mubr.msk.f32.mxu0 %vm5845_vm2, %v5846_v49 }
 0xf6e   : > { %5182 = vmatmul.mubr.msk.f32.gmra.mrb[78].mxu0 %vm266_vm1, %v6591_v26 }
 0xf6f   : > { %5207 = vmatprep.mubr.msk.f32.mxu0 %vm5845_vm2, %v5846_v49 }
0x1021   : > { %v2396_v46 = vpop.f32.mrb[62].mxu0 }
0x1022   : > { %v5128_v42 = vpop.f32.mrb[63].mxu0  ;;  %v2397_v17 = vadd.f32 %v4410_v32, %v2396_v46 }
0x1025   : > { %v2401_v36 = vpop.f32.mrb[64].mxu0 }
0x1026   : > { %v2402_v40 = vadd.f32 %v4410_v32, %v2401_v36  ;;  %v5131_v43 = vpop.f32.mrb[65].mxu0 }
0x1028   : > { %v6639_v18 = vpack.c.bf16 %v2402_v40, %v2397_v17 }
0x1029   : > { %v2406_v44 = vpop.f32.mrb[66].mxu0 }
0x102a   : > { %v5134_v45 = vpop.f32.mrb[67].mxu0  ;;  %5588 = vmatpush3.bf16.xpose.msk.msra.mxu1 %vm6055_vm3, %v6639_v18  ;;  %5604 = vmatpush3.bf16.xpose.msk.msra.mxu0 %vm6055_vm3, %v6639_v18  ;;  %v6655_v52 = vadd.f32 %v4410_v32, %v2406_v44 }
0x102b   : > { %5156 = vmatprep.subr.mxu1 %v5846_v49  ;;  %5205 = vmatprep.subr.mxu0 %v5846_v49 }
0x102d   : > { %v2485_v47 = vpop.f32.mrb[68].mxu0 }
0x102e   : > { %v5145_v38 = vpop.f32.mrb[69].mxu0  ;;  %v2486_v58 = vadd.f32 %v4414_v53, %v2485_v47 }
0x1031   : > { %v2490_v55 = vpop.f32.mrb[70].mxu0 }
0x1032   : > { %v5148_v51 = vpop.f32.mrb[71].mxu0  ;;  %5157 = vmatpush3.xpose.msk.msra.mxu1 %vm266_vm1, %v6655_v52  ;;  %5206 = vmatpush3.xpose.msk.msra.mxu0 %vm266_vm1, %v6655_v52  ;;  %v2491_v62 = vadd.f32 %v4414_v53, %v2490_v55 }
0x1033   : > { %5595 = vmatprep.subr.bf16.mxu1 %v5844_v41  ;;  %5611 = vmatprep.subr.bf16.mxu0 %v5844_v41 }
0x1035   : > { %v2495_v60 = vpop.f32.mrb[72].mxu0  ;;  %5159 = vmatmul.mubr.msk.f32.vlgmr.msra.gmra.mrb[54].mxu1 %vm266_vm1, %v2486_v58 }
0x1036   : > { %v5151_v57 = vpop.f32.mrb[73].mxu0  ;;  %5161 = vmatprep.mubr.msk.f32.mxu1 %vm5845_vm2, %v5846_v49  ;;  %5597 = vmatpush3.bf16.msra.mxu1 %v5596_v56  ;;  %v2496_v0 = vadd.f32 %v4414_v53, %v2495_v60 }
0x1037   : > { %5598 = vmatprep.subr.bf16.mxu1 %v5844_v41 }
0x1039   : > { %5162 = vmatmul.mubr.msk.f32.gmra.mrb[56].mxu1 %vm266_vm1, %v2491_v62  ;;  %v2700_v63 = vpop.f32.mrb[74].mxu0 }
0x103a   : > { %v5177_v4 = vpop.f32.mrb[75].mxu0  ;;  %5164 = vmatprep.mubr.msk.f32.mxu1 %vm5845_vm2, %v5846_v49  ;;  %5600 = vmatpush3.bf16.msra.mxu1 %v5599_v61 }
0x103b   : > { %5605 = vmatprep.subr.bf16.mxu1 %v5844_v41 }
0x103d   : > { %5165 = vmatmul.mubr.msk.f32.gmra.mrb[58].mxu1 %vm266_vm1, %v2496_v0  ;;  %v2705_v1 = vpop.f32.mrb[76].mxu0 }
0x103e   : > { %v5615_v2 = vpack.c.bf16 %v2705_v1, %v2700_v63  ;;  %v5180_v3 = vpop.f32.mrb[77].mxu0  ;;  %5192 = vmatprep.mubr.msk.f32.mxu1 %vm5845_vm2, %v5846_v49 }
0x1041   : > { %v2710_v8 = vpop.f32.mrb[78].mxu0  ;;  %5193 = vmatmul.mubr.msk.f32.vlgmr.msra.gmra.mrb[60].mxu1 %vm266_vm1, %v6572_v11 }
0x1042   : > { %v5183_v9 = vpop.f32.mrb[79].mxu0  ;;  %5195 = vmatprep.mubr.msk.f32.mxu1 %vm5845_vm2, %v5846_v49  ;;  %5607 = vmatpush3.bf16.msra.mxu1 %v5606_v5 }
0x1043   : > { %5608 = vmatprep.subr.bf16.mxu1 %v5844_v41 }
0x1045   : > { %5196 = vmatmul.mubr.msk.f32.gmra.mrb[62].mxu1 %vm266_vm1, %v6584_v22 }
0x1046   : > { %5198 = vmatprep.mubr.msk.f32.mxu1 %vm5845_vm2, %v5846_v49  ;;  %5610 = vmatpush3.bf16.msra.mxu1 %v5609_v10 }
0x1047   : > { %5614 = vmatprep.subr.bf16.mxu1 %v5844_v41 }
0x1049   : > { %5199 = vmatmul.mubr.msk.f32.gmra.mrb[64].mxu1 %vm266_vm1, %v6591_v26 }
0x104a   : > { %5224 = vmatprep.mubr.msk.f32.mxu1 %vm5845_vm2, %v5846_v49 }
0x104d   : > { %5225 = vmatmul.mubr.msk.f32.vlgmr.msra.gmra.mrb[66].mxu1 %vm266_vm1, %v6572_v11 }
0x104e   : > { %5616 = vmatpush3.bf16.msra.mxu1 %v5615_v2  ;;  %5227 = vmatprep.mubr.msk.f32.mxu1 %vm5845_vm2, %v5846_v49 }
0x104f   : > { %5252 = vmatprep.subr.mxu1 %v5846_v49 }
0x1051   : > { %5228 = vmatmul.mubr.msk.f32.gmra.mrb[68].mxu1 %vm266_vm1, %v6584_v22 }
0x1052   : > { %5253 = vmatpush3.msra.mxu1 %v2710_v8  ;;  %5230 = vmatprep.mubr.msk.f32.mxu1 %vm5845_vm2, %v5846_v49 }
0x1053   : > { %5623 = vmatprep.subr.bf16.mxu1 %v5844_v41 }
0x1055   : > { %5231 = vmatmul.mubr.msk.f32.gmra.mrb[70].mxu1 %vm266_vm1, %v6591_v26 }
0x1056   : > { %5254 = vmatprep.mubr.msk.f32.mxu1 %vm5845_vm2, %v5846_v49 }
0x1108   : > { %v6723_v13 = vpop.f32.mrb[54].mxu1 }
0x1109   : > { %v5160_v15 = vpop.f32.mrb[55].mxu1  ;;  %v2584_v6 = vadd.f32 %v6723_v13, %v6131_v27 }
0x110b   : > { %v2597_v15 = vsel %vm606_vm5, %v2584_v6, -inf }
0x110c   : > { %v6725_v16 = vpop.f32.mrb[56].mxu1 }
0x110d   : > { %v5163_v19 = vpop.f32.mrb[57].mxu1  ;;  %v2589_v9 = vadd.f32 %v6725_v16, %v6131_v27 }
0x110f   : > { %v2600_v13 = vsel %vm606_vm5, %v2589_v9, -inf }
0x1110   : > { %v6727_v20 = vpop.f32.mrb[58].mxu1 }
0x1111   : > { %v5166_v21 = vpop.f32.mrb[59].mxu1  ;;  %v2594_v10 = vadd.f32 %v6727_v20, %v6131_v27  ;;  %v3187_v20 = vld [vmem:[%s7146_s1 + $0x270] sm:$0xff] }
0x1113   : > { %v2603_v21 = vsel %vm606_vm5, %v2594_v10, -inf }
0x1114   : > { %v2789_v25 = vpop.f32.mrb[60].mxu1 }
0x1115   : > { %v2790_v28 = vadd.f32 %v4427_v23, %v2789_v25  ;;  %v5194_v29 = vpop.f32.mrb[61].mxu1 }
0x1116   : > { %v3188_v29 = vld [vmem:[%s7146_s1 + $0x278] sm:$0xff] }
0x1117   : > { %5208 = vmatmul.mubr.msk.f32.vlgmr.msra.gmra.mrb[80].mxu0 %vm266_vm1, %v2790_v28 }
0x1118   : > { %v2794_v33 = vpop.f32.mrb[62].mxu1  ;;  %5210 = vmatprep.mubr.msk.f32.mxu0 %vm5845_vm2, %v5846_v49 }
0x1119   : > { %v2795_v37 = vadd.f32 %v4427_v23, %v2794_v33  ;;  %v5197_v39 = vpop.f32.mrb[63].mxu1 }
0x111b   : > { %5211 = vmatmul.mubr.msk.f32.gmra.mrb[82].mxu0 %vm266_vm1, %v2795_v37 }
0x111c   : > { %v2799_v31 = vpop.f32.mrb[64].mxu1  ;;  %5213 = vmatprep.mubr.msk.f32.mxu0 %vm5845_vm2, %v5846_v49 }
0x111d   : > { %v2800_v46 = vadd.f32 %v4427_v23, %v2799_v31  ;;  %v5200_v42 = vpop.f32.mrb[65].mxu1  ;;  %v5618_v31 = vpack.c.bf16 %v3188_v29, %v3187_v20 }
0x111f   : > { %5214 = vmatmul.mubr.msk.f32.gmra.mrb[84].mxu0 %vm266_vm1, %v2800_v46 }
0x1120   : > { %v2995_v32 = vpop.f32.mrb[66].mxu1  ;;  %5239 = vmatprep.mubr.msk.f32.mxu0 %vm5845_vm2, %v5846_v49 }
0x1121   : > { %v5226_v36 = vpop.f32.mrb[67].mxu1 }
0x1122   : > { %v3189_v36 = vld [vmem:[%s7146_s1 + $0x280] sm:$0xff] }
0x1124   : > { %v3000_v17 = vpop.f32.mrb[68].mxu1 }
0x1125   : > { %v5612_v40 = vpack.c.bf16 %v3000_v17, %v2995_v32  ;;  %v5229_v43 = vpop.f32.mrb[69].mxu1  ;;  %v3190_v17 = vld [vmem:[%s7146_s1 + $0x288] sm:$0xff] }
0x1127   : > { %5613 = vmatpush3.bf16.msra.mxu0 %v5612_v40 }
0x1128   : > { %v3005_v44 = vpop.f32.mrb[70].mxu1  ;;  %5237 = vmatprep.subr.mxu0 %v5846_v49 }
0x1129   : > { %v5232_v45 = vpop.f32.mrb[71].mxu1 }
0x112b   : > { %5238 = vmatpush3.msra.mxu0 %v3005_v44 }
0x112c   : > { %5617 = vmatprep.subr.bf16.mxu0 %v5844_v41 }
0x11ea   : > { %v2878_v47 = vpop.f32.mrb[80].mxu0 }
0x11eb   : > { %v2879_v38 = vadd.f32 %v2878_v47, %v6131_v27  ;;  %v5209_v48 = vpop.f32.mrb[81].mxu0 }
0x11ed   : > { %v2892_v50 = vsel %vm606_vm5, %v2879_v38, -inf }
0x11ee   : > { %2893 = vmax.xlane.f32.xlu0 %v2892_v50  ;;  %v2883_v53 = vpop.f32.mrb[82].mxu0 }
0x11ef   : > { %v2884_v55 = vadd.f32 %v2883_v53, %v6131_v27  ;;  %v5212_v51 = vpop.f32.mrb[83].mxu0 }
0x11f0   : > { %v3399_v51 = vld [vmem:[%s7146_s1 + $0x2f8] sm:$0xff] }
0x11f1   : > { %v2895_v56 = vsel %vm606_vm5, %v2884_v55, -inf }
0x11f2   : > { %2896 = vmax.xlane.f32.xlu1 %v2895_v56  ;;  %v2888_v58 = vpop.f32.mrb[84].mxu0 }
0x11f3   : > { %v2889_v54 = vadd.f32 %v2888_v58, %v6131_v27  ;;  %v5215_v59 = vpop.f32.mrb[85].mxu0 }
0x11f4   : > { %v3400_v59 = vld [vmem:[%s7146_s1 + $0x300] sm:$0xff] }
0x11f5   : > { %v2898_v60 = vsel %vm606_vm5, %v2889_v54, -inf }
0x11f6   : > { %2899 = vmax.xlane.f32.xlu0 %v2898_v60  ;;  %v3401_v60 = vld [vmem:[%s7146_s1 + $0x308] sm:$0xff] }
0x127b   : > { %v2894_v57 = vpop.xlane.xlu0 %2893 }
0x127c   : > { %v2901_v61 = vsub.f32 %v2879_v38, %v2894_v57  ;;  %v5621_v38 = vpack.c.bf16 %v3190_v17, %v3189_v36 }
0x127e   : > { %v2904_v62 = vmul.f32 1.442695, %v2901_v61  ;;  %v5631_v61 = vpack.c.bf16 %v3401_v60, %v3400_v59 }
0x127f   : > { %v2897_v63 = vpop.xlane.xlu1 %2896 }
0x1280   : > { %5769 = vpow2.f32 %v2904_v62  ;;  %v2902_v4 = vsub.f32 %v2884_v55, %v2897_v63  ;;  %v3398_v55 = vld [vmem:[%s7146_s1 + $0x2f0] sm:$0xff] }
0x1281   : > { %v5628_v58 = vpack.c.bf16 %v3399_v51, %v3398_v55 }
0x1282   : > { %v2906_v0 = vmul.f32 1.442695, %v2902_v4 }
0x1283   : > { %v2900_v12 = vpop.xlane.xlu0 %2899 }
0x1284   : > { %5771 = vpow2.f32 %v2906_v0  ;;  %v2903_v14 = vsub.f32 %v2889_v54, %v2900_v12  ;;  %v3574_v0 = vld [vmem:[%s7146_s1 + $0x290] sm:$0xff]  ;;  %v3575_v12 = vld [vmem:[%s7146_s1 + $0x298] sm:$0xff] }
0x1286   : > { %v2908_v1 = vmul.f32 1.442695, %v2903_v14  ;;  %v5637_v14 = vpack.c.bf16 %v3575_v12, %v3574_v0 }
0x1288   : > { %5773 = vpow2.f32 %v2908_v1  ;;  %v3576_v1 = vld [vmem:[%s7146_s1 + $0x2a0] sm:$0xff] }
0x128a   : > { %v5770_v2 = vpop.eup %5769 }
0x128b   : > { %v2910_v3 = vsel %vm606_vm5, %v5770_v2, 0.0 }
0x128c   : > { %2911 = vadd.xlane.f32.xlu1 %v2910_v3 }
0x128e   : > { %v5772_v5 = vpop.eup %5771 }
0x128f   : > { %v2913_v7 = vsel %vm606_vm5, %v5772_v5, 0.0 }
0x1290   : > { %2914 = vadd.xlane.f32.xlu0 %v2913_v7 }
0x1292   : > { %v5774_v8 = vpop.eup %5773 }
0x1293   : > { %v2916_v19 = vsel %vm606_vm5, %v5774_v8, 0.0 }
0x1294   : > { %2598 = vmax.xlane.f32.xlu0 %v2597_v15  ;;  %2917 = vadd.xlane.f32.xlu1 %v2916_v19 }
0x1298   : > { %2604 = vmax.xlane.f32.xlu0 %v2603_v21  ;;  %2601 = vmax.xlane.f32.xlu1 %v2600_v13 }
0x1319   : > { %v2912_v23 = vpop.xlane.xlu1 %2911 }
0x131a   : > { %5775 = vrcp.f32 %v2912_v23 }
0x131d   : > { %v2915_v25 = vpop.xlane.xlu0 %2914 }
0x131e   : > { %5777 = vrcp.f32 %v2915_v25 }
0x1321   : > { %v2918_v16 = vpop.xlane.xlu1 %2917  ;;  %v2599_v28 = vpop.xlane.xlu0 %2598 }
0x1322   : > { %5779 = vrcp.f32 %v2918_v16  ;;  %v2606_v33 = vsub.f32 %v2584_v6, %v2599_v28  ;;  %v3786_v6 = vld [vmem:[%s7146_s1 + $0x318] sm:$0xff] }
0x1324   : > { %v5776_v37 = vpop.eup %5775  ;;  %v2609_v39 = vmul.f32 1.442695, %v2606_v33 }
0x1325   : > { %v2922_v46 = vmul.f32 %v5776_v37, %v5770_v2  ;;  %v2602_v42 = vpop.xlane.xlu1 %2601  ;;  %v2605_v32 = vpop.xlane.xlu0 %2604  ;;  %v3577_v2 = vld [vmem:[%s7146_s1 + $0x2a8] sm:$0xff] }
0x1326   : > { %5781 = vpow2.f32 %v2609_v39  ;;  %v2607_v40 = vsub.f32 %v2589_v9, %v2602_v42  ;;  %v2608_v43 = vsub.f32 %v2594_v10, %v2605_v32  ;;  %v5640_v3 = vpack.c.bf16 %v3577_v2, %v3576_v1  ;;  %v3788_v9 = vld [vmem:[%s7146_s1 + $0x328] sm:$0xff] }
0x1327   : > { %5240 = vmatmul.mubr.msk.f32.vlgmr.msra.gmra.mrb[86].mxu0 %vm606_vm5, %v2922_v46  ;;  %v4446_v39 = vld [vmem:[%s7146_s1 + $0x20a] ss:$0 sm:$0xff] }
0x1328   : > { %v5778_v44 = vpop.eup %5777  ;;  %v2611_v45 = vmul.f32 1.442695, %v2607_v40  ;;  %v2613_v47 = vmul.f32 1.442695, %v2608_v43  ;;  %5242 = vmatprep.mubr.msk.f32.mxu0 %vm5845_vm2, %v5846_v49  ;;  %5619 = vmatpush3.bf16.msra.mxu0 %v5618_v31 }
0x1329   : > { %v2923_v48 = vmul.f32 %v5778_v44, %v5772_v5  ;;  %5620 = vmatprep.subr.bf16.mxu0 %v5844_v41  ;;  %v3785_v5 = vld [vmem:[%s7146_s1 + $0x310] sm:$0xff] }
0x132a   : > { %5783 = vpow2.f32 %v2611_v45  ;;  %v5647_v7 = vpack.c.bf16 %v3786_v6, %v3785_v5 }
0x132b   : > { %5785 = vpow2.f32 %v2613_v47  ;;  %5243 = vmatmul.mubr.msk.f32.gmra.mrb[88].mxu0 %vm606_vm5, %v2923_v48 }
0x132c   : > { %v5780_v50 = vpop.eup %5779  ;;  %5245 = vmatprep.mubr.msk.f32.mxu0 %vm5845_vm2, %v5846_v49  ;;  %5622 = vmatpush3.bf16.msra.mxu0 %v5621_v38 }
0x132d   : > { %v2924_v53 = vmul.f32 %v5780_v50, %v5774_v8  ;;  %5627 = vmatprep.subr.bf16.mxu0 %v5844_v41  ;;  %v3787_v8 = vld [vmem:[%s7146_s1 + $0x320] sm:$0xff] }
0x132e   : > { %v5650_v10 = vpack.c.bf16 %v3788_v9, %v3787_v8 }
0x132f   : > { %5246 = vmatmul.mubr.msk.f32.gmra.mrb[90].mxu0 %vm606_vm5, %v2924_v53 }
0x1330   : > { %v6788_v56 = vpop.eup %5781  ;;  %5271 = vmatprep.mubr.msk.f32.mxu0 %vm5845_vm2, %v5846_v49 }
0x1331   : > { %v2615_v54 = vsel %vm606_vm5, %v6788_v56, 0.0 }
0x1332   : > { %2616 = vadd.xlane.f32.xlu1 %v2615_v54 }
0x1333   : > { %5272 = vmatmul.mubr.msk.f32.vlgmr.msra.gmra.mrb[92].mxu0 %vm266_vm1, %v6572_v11 }
0x1334   : > { %v6802_v57 = vpop.eup %5783  ;;  %5274 = vmatprep.mubr.msk.f32.mxu0 %vm5845_vm2, %v5846_v49  ;;  %5629 = vmatpush3.bf16.msra.mxu0 %v5628_v58 }
0x1335   : > { %v6806_v62 = vpop.eup %5785  ;;  %v2618_v63 = vsel %vm606_vm5, %v6802_v57, 0.0  ;;  %5630 = vmatprep.subr.bf16.mxu0 %v5844_v41 }
0x1336   : > { %2619 = vadd.xlane.f32.xlu0 %v2618_v63  ;;  %v2621_v4 = vsel %vm606_vm5, %v6806_v62, 0.0 }
0x1337   : > { %2622 = vadd.xlane.f32.xlu1 %v2621_v4  ;;  %5275 = vmatmul.mubr.msk.f32.gmra.mrb[94].mxu0 %vm266_vm1, %v6584_v22 }
0x1338   : > { %5277 = vmatprep.mubr.msk.f32.mxu0 %vm5845_vm2, %v5846_v49  ;;  %5632 = vmatpush3.bf16.msra.mxu0 %v5631_v61 }
0x1339   : > { %5636 = vmatprep.subr.bf16.mxu0 %v5844_v41 }
0x133b   : > { %5278 = vmatmul.mubr.msk.f32.gmra.mrb[96].mxu0 %vm266_vm1, %v6591_v26 }
0x133c   : > { %5303 = vmatprep.mubr.msk.f32.mxu0 %vm5845_vm2, %v5846_v49 }
0x133f   : > { %5304 = vmatmul.mubr.msk.f32.vlgmr.msra.gmra.mrb[98].mxu0 %vm266_vm1, %v6572_v11 }
0x1340   : > { %5306 = vmatprep.mubr.msk.f32.mxu0 %vm5845_vm2, %v5846_v49  ;;  %5638 = vmatpush3.bf16.msra.mxu0 %v5637_v14 }
0x1341   : > { %5639 = vmatprep.subr.bf16.mxu0 %v5844_v41 }
0x1343   : > { %5307 = vmatmul.mubr.msk.f32.gmra.mrb[100].mxu0 %vm266_vm1, %v6584_v22 }
0x1344   : > { %5309 = vmatprep.mubr.msk.f32.mxu0 %vm5845_vm2, %v5846_v49  ;;  %5641 = vmatpush3.bf16.msra.mxu0 %v5640_v3 }
0x1345   : > { %5646 = vmatprep.subr.bf16.mxu0 %v5844_v41 }
0x1347   : > { %5310 = vmatmul.mubr.msk.f32.gmra.mrb[102].mxu0 %vm266_vm1, %v6591_v26 }
0x1348   : > { %5335 = vmatprep.mubr.msk.f32.mxu0 %vm5845_vm2, %v5846_v49 }
0x134b   : > { %5336 = vmatmul.mubr.msk.f32.vlgmr.msra.gmra.mrb[104].mxu0 %vm266_vm1, %v6572_v11 }
0x134c   : > { %5338 = vmatprep.mubr.msk.f32.mxu0 %vm5845_vm2, %v5846_v49  ;;  %5648 = vmatpush3.bf16.msra.mxu0 %v5647_v7 }
0x134d   : > { %5649 = vmatprep.subr.bf16.mxu0 %v5844_v41 }
0x134f   : > { %5339 = vmatmul.mubr.msk.f32.gmra.mrb[106].mxu0 %vm266_vm1, %v6584_v22 }
0x1350   : > { %5341 = vmatprep.mubr.msk.f32.mxu0 %vm5845_vm2, %v5846_v49  ;;  %5651 = vmatpush3.bf16.msra.mxu0 %v5650_v10 }
0x1351   : > { %5655 = vmatprep.subr.bf16.mxu0 %v5844_v41 }
0x1353   : > { %5342 = vmatmul.mubr.msk.f32.gmra.mrb[108].mxu0 %vm266_vm1, %v6591_v26 }
0x1354   : > { %5367 = vmatprep.mubr.msk.f32.mxu0 %vm5845_vm2, %v5846_v49 }
0x1357   : > { %5368 = vmatmul.mubr.msk.f32.vlgmr.msra.gmra.mrb[110].mxu0 %vm266_vm1, %v6572_v11 }
0x1358   : > { %5370 = vmatprep.mubr.msk.f32.mxu0 %vm5845_vm2, %v5846_v49 }
0x135b   : > { %5371 = vmatmul.mubr.msk.f32.gmra.mrb[112].mxu0 %vm266_vm1, %v6584_v22 }
0x135c   : > { %5373 = vmatprep.mubr.msk.f32.mxu0 %vm5845_vm2, %v5846_v49 }
0x135f   : > { %5374 = vmatmul.mubr.msk.f32.gmra.mrb[114].mxu0 %vm266_vm1, %v6591_v26 }
0x1360   : > { %5399 = vmatprep.mubr.msk.f32.mxu0 %vm5845_vm2, %v5846_v49 }
0x13bf   : > { %v2617_v15 = vpop.xlane.xlu1 %2616 }
0x13c0   : > { %5787 = vrcp.f32 %v2617_v15 }
0x13c3   : > { %v2620_v19 = vpop.xlane.xlu0 %2619 }
0x13c4   : > { %v2623_v21 = vpop.xlane.xlu1 %2622  ;;  %5789 = vrcp.f32 %v2620_v19 }
0x13c5   : > { %5791 = vrcp.f32 %v2623_v21 }
0x13ca   : > { %v5788_v11 = vpop.eup %5787 }
0x13cb   : > { %v2627_v13 = vmul.f32 %v5788_v11, %v6788_v56 }
0x13cd   : > { %5255 = vmatmul.mubr.msk.f32.vlgmr.msra.gmra.mrb[72].mxu1 %vm606_vm5, %v2627_v13 }
0x13ce   : > { %v5790_v22 = vpop.eup %5789  ;;  %5626 = vmatpush3.bf16.xpose.msk.msra.mxu1 %vm6055_vm3, %v6639_v18  ;;  %5257 = vmatprep.mubr.msk.f32.mxu1 %vm5845_vm2, %v5846_v49 }
0x13cf   : > { %v2628_v26 = vmul.f32 %v5790_v22, %v6802_v57  ;;  %5284 = vmatprep.subr.mxu1 %v5846_v49  ;;  %v5792_v23 = vpop.eup %5791 }
0x13d0   : > { %v2629_v25 = vmul.f32 %v5792_v23, %v6806_v62 }
0x13d1   : > { %5258 = vmatmul.mubr.msk.f32.gmra.mrb[74].mxu1 %vm606_vm5, %v2628_v26 }
0x13d2   : > { %5260 = vmatprep.mubr.msk.f32.mxu1 %vm5845_vm2, %v5846_v49 }
0x13d5   : > { %5261 = vmatmul.mubr.msk.f32.gmra.mrb[76].mxu1 %vm606_vm5, %v2629_v25 }
0x13d6   : > { %5285 = vmatpush3.xpose.msk.msra.mxu1 %vm266_vm1, %v6655_v52  ;;  %5286 = vmatprep.mubr.msk.f32.mxu1 %vm5845_vm2, %v5846_v49 }
0x13d7   : > { %5633 = vmatprep.subr.bf16.mxu1 %v5844_v41 }
0x13fa   : > { %v3084_v16 = vpop.f32.mrb[86].mxu0 }
0x13fb   : > { %v5241_v28 = vpop.f32.mrb[87].mxu0 }
0x13fe   : > { %v3089_v20 = vpop.f32.mrb[88].mxu0 }
0x13ff   : > { %v5244_v29 = vpop.f32.mrb[89].mxu0 }
0x1402   : > { %v3094_v33 = vpop.f32.mrb[90].mxu0 }
0x1403   : > { %v5247_v37 = vpop.f32.mrb[91].mxu0 }
0x1406   : > { %v3262_v31 = vpop.f32.mrb[92].mxu0 }
0x1407   : > { %v3263_v46 = vadd.f32 %v4446_v39, %v3262_v31  ;;  %v5273_v42 = vpop.f32.mrb[93].mxu0 }
0x1409   : > { %5287 = vmatmul.mubr.msk.f32.vlgmr.msra.gmra.mrb[78].mxu1 %vm266_vm1, %v3263_v46 }
0x140a   : > { %v3267_v32 = vpop.f32.mrb[94].mxu0  ;;  %5289 = vmatprep.mubr.msk.f32.mxu1 %vm5845_vm2, %v5846_v49 }
0x140b   : > { %v3268_v36 = vadd.f32 %v4446_v39, %v3267_v32  ;;  %v5276_v17 = vpop.f32.mrb[95].mxu0 }
0x140d   : > { %5290 = vmatmul.mubr.msk.f32.gmra.mrb[80].mxu1 %vm266_vm1, %v3268_v36 }
0x140e   : > { %v3272_v40 = vpop.f32.mrb[96].mxu0  ;;  %5292 = vmatprep.mubr.msk.f32.mxu1 %vm5845_vm2, %v5846_v49 }
0x140f   : > { %v3273_v43 = vadd.f32 %v4446_v39, %v3272_v40  ;;  %v5279_v44 = vpop.f32.mrb[97].mxu0 }
0x1411   : > { %5293 = vmatmul.mubr.msk.f32.gmra.mrb[82].mxu1 %vm266_vm1, %v3273_v43 }
0x1412   : > { %v3468_v45 = vpop.f32.mrb[98].mxu0  ;;  %5318 = vmatprep.mubr.msk.f32.mxu1 %vm5845_vm2, %v5846_v49 }
0x1413   : > { %v5305_v47 = vpop.f32.mrb[99].mxu0 }
0x1416   : > { %v3473_v38 = vpop.f32.mrb[100].mxu0 }
0x1417   : > { %v5634_v48 = vpack.c.bf16 %v3473_v38, %v3468_v45  ;;  %v5308_v50 = vpop.f32.mrb[101].mxu0 }
0x1419   : > { %5635 = vmatpush3.bf16.msra.mxu1 %v5634_v48 }
0x141a   : > { %v3478_v53 = vpop.f32.mrb[102].mxu0  ;;  %5316 = vmatprep.subr.mxu1 %v5846_v49 }
0x141b   : > { %v5311_v55 = vpop.f32.mrb[103].mxu0 }
0x141d   : > { %5317 = vmatpush3.msra.mxu1 %v3478_v53 }
0x141e   : > { %v6918_v51 = vpop.f32.mrb[104].mxu0  ;;  %5642 = vmatprep.subr.bf16.mxu1 %v5844_v41 }
0x141f   : > { %v5337_v56 = vpop.f32.mrb[105].mxu0 }
0x1422   : > { %v6921_v58 = vpop.f32.mrb[106].mxu0 }
0x1423   : > { %v5340_v54 = vpop.f32.mrb[107].mxu0 }
0x1426   : > { %v6923_v59 = vpop.f32.mrb[108].mxu0 }
0x1427   : > { %v5343_v60 = vpop.f32.mrb[109].mxu0 }
0x142a   : > { %v6925_v57 = vpop.f32.mrb[110].mxu0 }
0x142b   : > { %v5369_v61 = vpop.f32.mrb[111].mxu0 }
0x142c   : > { %v4462_v61 = vld [vmem:[%s7146_s1 + $0x20b] ss:$0 sm:$0xff] }
0x142d   : > { %v3650_v34 = vadd.f32 %v4462_v61, %v6918_v51 }
0x142e   : > { %v6927_v62 = vpop.f32.mrb[112].mxu0 }
0x142f   : > { %v5653_v63 = vpack.c.bf16 %v6927_v62, %v6925_v57  ;;  %v5372_v4 = vpop.f32.mrb[113].mxu0 }
0x1432   : > { %v6931_v0 = vpop.f32.mrb[114].mxu0 }
0x1433   : > { %v5375_v12 = vpop.f32.mrb[115].mxu0 }
0x14a0   : > { %v3173_v14 = vpop.f32.mrb[72].mxu1 }
0x14a1   : > { %v6933_v1 = vadd.f32 %v3173_v14, %v3084_v16  ;;  %v5256_v2 = vpop.f32.mrb[73].mxu1 }
0x14a4   : > { %v3178_v3 = vpop.f32.mrb[74].mxu1 }
0x14a5   : > { %v6935_v5 = vadd.f32 %v3178_v3, %v3089_v20  ;;  %v5259_v6 = vpop.f32.mrb[75].mxu1 }
0x14a8   : > { %v3183_v7 = vpop.f32.mrb[76].mxu1 }
0x14a9   : > { %v6937_v8 = vadd.f32 %v3183_v7, %v3094_v33  ;;  %v5262_v9 = vpop.f32.mrb[77].mxu1 }
0x14dc   : > { %v3351_v10 = vpop.f32.mrb[78].mxu1 }
0x14dd   : > { %v3352_v15 = vadd.f32 %v3351_v10, %v6131_v27  ;;  %v5288_v19 = vpop.f32.mrb[79].mxu1 }
0x14df   : > { %v3365_v21 = vsel %vm606_vm5, %v3352_v15, -inf }
0x14e0   : > { %3366 = vmax.xlane.f32.xlu0 %v3365_v21  ;;  %v3356_v11 = vpop.f32.mrb[80].mxu1 }
0x14e1   : > { %v3357_v13 = vadd.f32 %v3356_v11, %v6131_v27  ;;  %v5291_v22 = vpop.f32.mrb[81].mxu1 }
0x14e3   : > { %v3368_v26 = vsel %vm606_vm5, %v3357_v13, -inf }
0x14e4   : > { %3369 = vmax.xlane.f32.xlu1 %v3368_v26  ;;  %v3361_v23 = vpop.f32.mrb[82].mxu1 }
0x14e5   : > { %v3362_v25 = vadd.f32 %v3361_v23, %v6131_v27  ;;  %v5294_v16 = vpop.f32.mrb[83].mxu1 }
0x14e7   : > { %v3371_v28 = vsel %vm606_vm5, %v3362_v25, -inf }
0x14e8   : > { %3372 = vmax.xlane.f32.xlu0 %v3371_v28 }
0x156d   : > { %v3367_v20 = vpop.xlane.xlu0 %3366 }
0x156e   : > { %v3374_v29 = vsub.f32 %v3352_v15, %v3367_v20 }
0x1570   : > { %v3377_v33 = vmul.f32 1.442695, %v3374_v29 }
0x1571   : > { %v3370_v37 = vpop.xlane.xlu1 %3369 }
0x1572   : > { %5793 = vpow2.f32 %v3377_v33  ;;  %v3375_v39 = vsub.f32 %v3357_v13, %v3370_v37 }
0x1574   : > { %v3379_v31 = vmul.f32 1.442695, %v3375_v39 }
0x1575   : > { %v3373_v46 = vpop.xlane.xlu0 %3372 }
0x1576   : > { %5795 = vpow2.f32 %v3379_v31  ;;  %v3376_v42 = vsub.f32 %v3362_v25, %v3373_v46 }
0x1578   : > { %v3381_v32 = vmul.f32 1.442695, %v3376_v42 }
0x157a   : > { %5797 = vpow2.f32 %v3381_v32 }
0x157c   : > { %v5794_v36 = vpop.eup %5793 }
0x157d   : > { %v3383_v17 = vsel %vm606_vm5, %v5794_v36, 0.0 }
0x157e   : > { %3384 = vadd.xlane.f32.xlu1 %v3383_v17 }
0x1580   : > { %v5796_v40 = vpop.eup %5795 }
0x1581   : > { %v3386_v43 = vsel %vm606_vm5, %v5796_v40, 0.0 }
0x1582   : > { %3387 = vadd.xlane.f32.xlu0 %v3386_v43 }
0x1584   : > { %v5798_v44 = vpop.eup %5797 }
0x1585   : > { %v3389_v45 = vsel %vm606_vm5, %v5798_v44, 0.0 }
0x1586   : > { %3390 = vadd.xlane.f32.xlu1 %v3389_v45 }
0x160b   : > { %v3385_v47 = vpop.xlane.xlu1 %3384 }
0x160c   : > { %5799 = vrcp.f32 %v3385_v47 }
0x160f   : > { %v3388_v38 = vpop.xlane.xlu0 %3387 }
0x1610   : > { %5801 = vrcp.f32 %v3388_v38 }
0x1613   : > { %v3391_v48 = vpop.xlane.xlu1 %3390 }
0x1614   : > { %5803 = vrcp.f32 %v3391_v48  ;;  %v4478_v48 = vld [vmem:[%s7146_s1 + $0x203] ss:$0 sm:$0xff] }
0x1616   : > { %v5800_v50 = vpop.eup %5799 }
0x1617   : > { %v3395_v53 = vmul.f32 %v5800_v50, %v5794_v36 }
0x1619   : > { %5319 = vmatmul.mubr.msk.f32.vlgmr.msra.gmra.mrb[84].mxu1 %vm606_vm5, %v3395_v53 }
0x161a   : > { %v5802_v55 = vpop.eup %5801  ;;  %5645 = vmatpush3.bf16.xpose.msk.msra.mxu1 %vm6055_vm3, %v6639_v18  ;;  %5321 = vmatprep.mubr.msk.f32.mxu1 %vm5845_vm2, %v5846_v49  ;;  %v3655_v18 = vadd.f32 %v4462_v61, %v6921_v58 }
0x161b   : > { %v3396_v56 = vmul.f32 %v5802_v55, %v5796_v40  ;;  %5348 = vmatprep.subr.mxu1 %v5846_v49 }
0x161d   : > { %5322 = vmatmul.mubr.msk.f32.gmra.mrb[86].mxu1 %vm606_vm5, %v3396_v56 }
0x161e   : > { %v5804_v54 = vpop.eup %5803  ;;  %5324 = vmatprep.mubr.msk.f32.mxu1 %vm5845_vm2, %v5846_v49 }
0x161f   : > { %v3397_v60 = vmul.f32 %v5804_v54, %v5798_v44 }
0x1621   : > { %5325 = vmatmul.mubr.msk.f32.gmra.mrb[88].mxu1 %vm606_vm5, %v3397_v60 }
0x1622   : > { %5349 = vmatpush3.xpose.msk.msra.mxu1 %vm266_vm1, %v6655_v52  ;;  %5350 = vmatprep.mubr.msk.f32.mxu1 %vm5845_vm2, %v5846_v49  ;;  %v3660_v52 = vadd.f32 %v4462_v61, %v6923_v59 }
0x1623   : > { %5652 = vmatprep.subr.bf16.mxu1 %v5844_v41 }
0x1625   : > { %5351 = vmatmul.mubr.msk.f32.vlgmr.msra.gmra.mrb[90].mxu1 %vm266_vm1, %v3650_v34 }
0x1626   : > { %5654 = vmatpush3.bf16.msra.mxu1 %v5653_v63  ;;  %5353 = vmatprep.mubr.msk.f32.mxu1 %vm5845_vm2, %v5846_v49 }
0x1627   : > { %5380 = vmatprep.subr.mxu1 %v5846_v49 }
0x1629   : > { %5354 = vmatmul.mubr.msk.f32.gmra.mrb[92].mxu1 %vm266_vm1, %v3655_v18 }
0x162a   : > { %5381 = vmatpush3.msra.mxu1 %v6931_v0  ;;  %5356 = vmatprep.mubr.msk.f32.mxu1 %vm5845_vm2, %v5846_v49 }
0x162b   : > { %5661 = vmatprep.subr.bf16.mxu1 %v5844_v41 }
0x162d   : > { %5357 = vmatmul.mubr.msk.f32.gmra.mrb[94].mxu1 %vm266_vm1, %v3660_v52 }
0x162e   : > { %5382 = vmatprep.mubr.msk.f32.mxu1 %vm5845_vm2, %v5846_v49 }
0x16ec   : > { %v3557_v51 = vpop.f32.mrb[84].mxu1 }
0x16ed   : > { %v6986_v58 = vadd.f32 %v3557_v51, %v6933_v1  ;;  %v5320_v57 = vpop.f32.mrb[85].mxu1 }
0x16f0   : > { %v3562_v62 = vpop.f32.mrb[86].mxu1 }
0x16f1   : > { %v6989_v63 = vadd.f32 %v3562_v62, %v6935_v5  ;;  %v5323_v4 = vpop.f32.mrb[87].mxu1 }
0x16f4   : > { %v3567_v0 = vpop.f32.mrb[88].mxu1 }
0x16f5   : > { %v6992_v59 = vadd.f32 %v3567_v0, %v6937_v8  ;;  %v5326_v12 = vpop.f32.mrb[89].mxu1 }
0x16f8   : > { %v3738_v14 = vpop.f32.mrb[90].mxu1 }
0x16f9   : > { %v3739_v2 = vadd.f32 %v3738_v14, %v6131_v27  ;;  %v5352_v3 = vpop.f32.mrb[91].mxu1 }
0x16fb   : > { %v3752_v6 = vsel %vm606_vm5, %v3739_v2, -inf }
0x16fc   : > { %3753 = vmax.xlane.f32.xlu0 %v3752_v6  ;;  %v3743_v1 = vpop.f32.mrb[92].mxu1 }
0x16fd   : > { %v3744_v7 = vadd.f32 %v3743_v1, %v6131_v27  ;;  %v5355_v9 = vpop.f32.mrb[93].mxu1 }
0x16ff   : > { %v3755_v5 = vsel %vm606_vm5, %v3744_v7, -inf }
0x1700   : > { %3756 = vmax.xlane.f32.xlu1 %v3755_v5  ;;  %v3748_v10 = vpop.f32.mrb[94].mxu1 }
0x1701   : > { %v3749_v15 = vadd.f32 %v3748_v10, %v6131_v27  ;;  %v5358_v8 = vpop.f32.mrb[95].mxu1  ;;  %v4027_v10 = vld [vmem:[%s7147_s2 + $0x28] sm:$0xff] }
0x1703   : > { %v3758_v19 = vsel %vm606_vm5, %v3749_v15, -inf }
0x1704   : > { %3759 = vmax.xlane.f32.xlu0 %v3758_v19  ;;  %v4029_v19 = vld [vmem:[%s7147_s2 + $0x38] sm:$0xff] }
0x1789   : > { %v3754_v21 = vpop.xlane.xlu0 %3753 }
0x178a   : > { %v3761_v11 = vsub.f32 %v3739_v2, %v3754_v21  ;;  %v4030_v21 = vld [vmem:[%s7147_s2 + $0x40] sm:$0xff] }
0x178c   : > { %v3764_v13 = vmul.f32 1.442695, %v3761_v11  ;;  %v5659_v11 = vpack.c.bf16 %v4030_v21, %v4029_v19 }
0x178d   : > { %v3757_v22 = vpop.xlane.xlu1 %3756 }
0x178e   : > { %5805 = vpow2.f32 %v3764_v13  ;;  %v3762_v26 = vsub.f32 %v3744_v7, %v3757_v22  ;;  %v4140_v13 = vld [vmem:[%s7146_s1 + $0x330] sm:$0xff]  ;;  %v4141_v22 = vld [vmem:[%s7146_s1 + $0x338] sm:$0xff] }
0x1790   : > { %v3766_v23 = vmul.f32 1.442695, %v3762_v26  ;;  %v4142_v26 = vld [vmem:[%s7146_s1 + $0x340] sm:$0xff] }
0x1791   : > { %v3760_v25 = vpop.xlane.xlu0 %3759 }
0x1792   : > { %5807 = vpow2.f32 %v3766_v23  ;;  %v3763_v16 = vsub.f32 %v3749_v15, %v3760_v25  ;;  %v4028_v15 = vld [vmem:[%s7147_s2 + $0x30] sm:$0xff]  ;;  %v5662_v23 = vpack.c.bf16 %v4141_v22, %v4140_v13  ;;  %v4143_v25 = vld [vmem:[%s7146_s1 + $0x348] sm:$0xff] }
0x1793   : > { %v5656_v8 = vpack.c.bf16 %v4028_v15, %v4027_v10 }
0x1794   : > { %v3768_v28 = vmul.f32 1.442695, %v3763_v16  ;;  %v5665_v16 = vpack.c.bf16 %v4143_v25, %v4142_v26 }
0x1795   : > { %5657 = vmatpush3.bf16.msra.mxu0 %v5656_v8 }
0x1796   : > { %5809 = vpow2.f32 %v3768_v28  ;;  %5658 = vmatprep.subr.bf16.mxu0 %v5844_v41  ;;  %v4144_v28 = vld [vmem:[%s7146_s1 + $0x350] sm:$0xff] }
0x1798   : > { %v5806_v20 = vpop.eup %5805 }
0x1799   : > { %v3770_v29 = vsel %vm606_vm5, %v5806_v20, 0.0  ;;  %5660 = vmatpush3.bf16.msra.mxu0 %v5659_v11 }
0x179a   : > { %3771 = vadd.xlane.f32.xlu1 %v3770_v29 }
0x179c   : > { %v5808_v27 = vpop.eup %5807 }
0x179d   : > { %v3773_v33 = vsel %vm606_vm5, %v5808_v27, 0.0 }
0x179e   : > { %3774 = vadd.xlane.f32.xlu0 %v3773_v33 }
0x17a0   : > { %v5810_v37 = vpop.eup %5809 }
0x17a1   : > { %v3776_v39 = vsel %vm606_vm5, %v5810_v37, 0.0 }
0x17a2   : > { %3777 = vadd.xlane.f32.xlu1 %v3776_v39 }
0x1827   : > { %v3772_v31 = vpop.xlane.xlu1 %3771 }
0x1828   : > { %5811 = vrcp.f32 %v3772_v31 }
0x182b   : > { %v3775_v46 = vpop.xlane.xlu0 %3774 }
0x182c   : > { %5813 = vrcp.f32 %v3775_v46 }
0x182f   : > { %v3778_v42 = vpop.xlane.xlu1 %3777 }
0x1830   : > { %5815 = vrcp.f32 %v3778_v42 }
0x1832   : > { %v5812_v32 = vpop.eup %5811 }
0x1833   : > { %v3782_v36 = vmul.f32 %v5812_v32, %v5806_v20  ;;  %v4145_v20 = vld [vmem:[%s7146_s1 + $0x358] sm:$0xff] }
0x1834   : > { %v5668_v29 = vpack.c.bf16 %v4145_v20, %v4144_v28 }
0x1835   : > { %5383 = vmatmul.mubr.msk.f32.vlgmr.msra.gmra.mrb[96].mxu1 %vm606_vm5, %v3782_v36 }
0x1836   : > { %v5814_v17 = vpop.eup %5813  ;;  %5385 = vmatprep.mubr.msk.f32.mxu1 %vm5845_vm2, %v5846_v49  ;;  %5663 = vmatpush3.bf16.msra.mxu1 %v5662_v23 }
0x1837   : > { %v3783_v40 = vmul.f32 %v5814_v17, %v5808_v27  ;;  %5664 = vmatprep.subr.bf16.mxu1 %v5844_v41 }
0x1839   : > { %5386 = vmatmul.mubr.msk.f32.gmra.mrb[98].mxu1 %vm606_vm5, %v3783_v40  ;;  %v4479_v40 = vld [vmem:[%s7146_s1 + $0x204] ss:$0 sm:$0xff] }
0x183a   : > { %v5816_v43 = vpop.eup %5815  ;;  %5388 = vmatprep.mubr.msk.f32.mxu1 %vm5845_vm2, %v5846_v49  ;;  %5666 = vmatpush3.bf16.msra.mxu1 %v5665_v16 }
0x183b   : > { %v3784_v44 = vmul.f32 %v5816_v43, %v5810_v37  ;;  %5667 = vmatprep.subr.bf16.mxu1 %v5844_v41 }
0x183d   : > { %5389 = vmatmul.mubr.msk.f32.gmra.mrb[100].mxu1 %vm606_vm5, %v3784_v44  ;;  %v4480_v44 = vld [vmem:[%s7146_s1 + $0x205] ss:$0 sm:$0xff] }
0x183e   : > { %5440 = vmatprep.mubr.msk.f32.mxu1 %vm5845_vm2, %v5846_v49  ;;  %5669 = vmatpush3.bf16.msra.mxu1 %v5668_v29 }
0x183f   : > { %5670 = vmatprep.subr.bf16.mxu1 %v5844_v41 }
0x1908   : > { %v3944_v45 = vpop.f32.mrb[96].mxu1 }
0x1909   : > { %v3958_v47 = vadd.f32 %v3944_v45, %v6986_v58  ;;  %v5384_v38 = vpop.f32.mrb[97].mxu1 }
0x190b   : > { %v3961_v50 = vadd.f32 %v3958_v47, %v6526_v24 }
0x190c   : > { %v3949_v53 = vpop.f32.mrb[98].mxu1 }
0x190d   : > { %v3959_v55 = vadd.f32 %v3949_v53, %v6989_v63  ;;  %v5387_v56 = vpop.f32.mrb[99].mxu1  ;;  %v3969_v54 = vadd.f32 %v4478_v48, %v3961_v50 }
0x190f   : > { %v3962_v60 = vadd.f32 %v3959_v55, %v6531_v30  ;;  %v3974_v61 = vsel %vm266_vm1, %v3969_v54, 0.0 }
0x1910   : > { %3975 = vadd.xlane.f32.xlu0 %v3974_v61  ;;  %v3954_v34 = vpop.f32.mrb[100].mxu1  ;;  %v4146_v61 = vld [vmem:[%s7146_s1 + $0x360] sm:$0xff] }
0x1911   : > { %v3960_v18 = vadd.f32 %v3954_v34, %v6992_v59  ;;  %v5390_v52 = vpop.f32.mrb[101].mxu1  ;;  %v3970_v51 = vadd.f32 %v4478_v48, %v3962_v60  ;;  %v4147_v34 = vld [vmem:[%s7146_s1 + $0x368] sm:$0xff] }
0x1912   : > { %v4148_v52 = vld [vmem:[%s7146_s1 + $0x370] sm:$0xff] }
0x1913   : > { %v3963_v58 = vadd.f32 %v3960_v18, %v6536_v35  ;;  %v3977_v57 = vsel %vm266_vm1, %v3970_v51, 0.0  ;;  %v5671_v18 = vpack.c.bf16 %v4147_v34, %v4146_v61 }
0x1914   : > { %3978 = vadd.xlane.f32.xlu1 %v3977_v57  ;;  %v4150_v57 = vld [vmem:[%s7146_s1 + $0x380] sm:$0xff] }
0x1915   : > { %v7023_v24 = vadd.f32 %v4478_v48, %v3963_v58  ;;  %5672 = vmatpush3.bf16.msra.mxu1 %v5671_v18 }
0x1916   : > { %5673 = vmatprep.subr.bf16.mxu1 %v5844_v41 }
0x1917   : > { %v3980_v62 = vsel %vm266_vm1, %v7023_v24, 0.0 }
0x1918   : > { %3981 = vadd.xlane.f32.xlu0 %v3980_v62  ;;  %v4151_v62 = vld [vmem:[%s7146_s1 + $0x388] sm:$0xff] }
0x199d   : > { %v3976_v30 = vpop.xlane.xlu0 %3975 }
0x199e   : > { %v3983_v63 = vmul.f32 0.03125, %v3976_v30  ;;  %v5677_v30 = vpack.c.bf16 %v4151_v62, %v4150_v57 }
0x19a0   : > { %v3986_v4 = vsub.f32 %v3969_v54, %v3983_v63  ;;  %v4152_v63 = vld [vmem:[%s7146_s1 + $0x390] sm:$0xff] }
0x19a1   : > { %v3979_v0 = vpop.xlane.xlu1 %3978 }
0x19a2   : > { %v3984_v12 = vmul.f32 0.03125, %v3979_v0  ;;  %v3989_v14 = vmul.f32 %v3986_v4, %v3986_v4 }
0x19a4   : > { %v3987_v59 = vsub.f32 %v3970_v51, %v3984_v12  ;;  %v3992_v2 = vsel %vm266_vm1, %v3989_v14, 0.0  ;;  %v4149_v51 = vld [vmem:[%s7146_s1 + $0x378] sm:$0xff]  ;;  %v4154_v12 = vld [vmem:[%s7146_s1 + $0x3a0] sm:$0xff]  ;;  %v4155_v14 = vld [vmem:[%s7146_s1 + $0x3a8] sm:$0xff] }
0x19a5   : > { %3993 = vadd.xlane.f32.xlu1 %v3992_v2  ;;  %v3982_v35 = vpop.xlane.xlu0 %3981  ;;  %v5674_v58 = vpack.c.bf16 %v4149_v51, %v4148_v52  ;;  %v4481_v2 = vld [vmem:[%s7147_s2 + $0x48] ss:$0 sm:$0xff]  ;;  %v4264_v52 = vld [vmem:[%s7146_s1 + $0x4b] sm:$0x1] }
0x19a6   : > { %v3985_v3 = vmul.f32 0.03125, %v3982_v35  ;;  %v3990_v6 = vmul.f32 %v3987_v59, %v3987_v59 }
0x19a7   : > { %5675 = vmatpush3.bf16.msra.mxu1 %v5674_v58 }
0x19a8   : > { %v3988_v1 = vsub.f32 %v7023_v24, %v3985_v3  ;;  %v3995_v7 = vsel %vm266_vm1, %v3990_v6, 0.0  ;;  %5676 = vmatprep.subr.bf16.mxu1 %v5844_v41 }
0x19a9   : > { %3996 = vadd.xlane.f32.xlu0 %v3995_v7 }
0x19aa   : > { %v3991_v9 = vmul.f32 %v3988_v1, %v3988_v1 }
0x19ab   : > { %5678 = vmatpush3.bf16.msra.mxu1 %v5677_v30 }
0x19ac   : > { %v3998_v5 = vsel %vm266_vm1, %v3991_v9, 0.0  ;;  %5679 = vmatprep.subr.bf16.mxu1 %v5844_v41 }
0x19ad   : > { %3999 = vadd.xlane.f32.xlu1 %v3998_v5 }
0x1a32   : > { %v3994_v27 = vpop.xlane.xlu1 %3993 }
0x1a33   : > { %v4001_v33 = vmul.f32 0.03125, %v3994_v27 }
0x1a35   : > { %v4004_v37 = vadd.f32 1e-06, %v4001_v33 }
0x1a36   : > { %v3997_v39 = vpop.xlane.xlu0 %3996 }
0x1a37   : > { %5817 = vrsqrt.f32 %v4004_v37  ;;  %v4002_v31 = vmul.f32 0.03125, %v3997_v39 }
0x1a39   : > { %v4005_v46 = vadd.f32 1e-06, %v4002_v31 }
0x1a3a   : > { %v4000_v42 = vpop.xlane.xlu1 %3999 }
0x1a3b   : > { %5819 = vrsqrt.f32 %v4005_v46  ;;  %v4003_v32 = vmul.f32 0.03125, %v4000_v42  ;;  %v4485_v42 = vld [vmem:[%s7146_s1 + $0x206] ss:$0 sm:$0xff] }
0x1a3d   : > { %v4006_v36 = vadd.f32 1e-06, %v4003_v32 }
0x1a3f   : > { %5821 = vrsqrt.f32 %v4006_v36 }
0x1a41   : > { %v5818_v17 = vpop.eup %5817 }
0x1a42   : > { %v4010_v43 = vmul.f32 %v5818_v17, %v3986_v4  ;;  %v4153_v4 = vld [vmem:[%s7146_s1 + $0x398] sm:$0xff] }
0x1a43   : > { %v5680_v0 = vpack.c.bf16 %v4153_v4, %v4152_v63 }
0x1a44   : > { %v4017_v45 = vmul.f32 %v4479_v40, %v4010_v43 }
0x1a45   : > { %v5820_v47 = vpop.eup %5819  ;;  %5681 = vmatpush3.bf16.msra.mxu1 %v5680_v0 }
0x1a46   : > { %v4024_v38 = vadd.f32 %v4480_v44, %v4017_v45  ;;  %v4011_v48 = vmul.f32 %v5820_v47, %v3987_v59  ;;  %5682 = vmatprep.subr.bf16.mxu1 %v5844_v41  ;;  %v5683_v59 = vpack.c.bf16 %v4155_v14, %v4154_v12 }
0x1a48   : > { %5400 = vmatmul.mubr.msk.f32.vlgmr.msra.gmra.mrb[116].mxu0 %vm266_vm1, %v4024_v38  ;;  %v4018_v50 = vmul.f32 %v4479_v40, %v4011_v48 }
0x1a49   : > { %v5822_v53 = vpop.eup %5821  ;;  %5402 = vmatprep.mubr.msk.f32.mxu0 %vm5845_vm2, %v5846_v49  ;;  %5684 = vmatpush3.bf16.msra.mxu1 %v5683_v59 }
0x1a4a   : > { %v4025_v55 = vadd.f32 %v4480_v44, %v4018_v50  ;;  %v4012_v56 = vmul.f32 %v5822_v53, %v3988_v1 }
0x1a4c   : > { %5403 = vmatmul.mubr.msk.f32.gmra.mrb[118].mxu0 %vm266_vm1, %v4025_v55  ;;  %v4019_v54 = vmul.f32 %v4479_v40, %v4012_v56  ;;  %v4242_v56 = vld [vmem:[%s7146_s1 + $0x49] sm:$0x1] }
0x1a4d   : > { %5405 = vmatprep.mubr.msk.f32.mxu0 %vm5845_vm2, %v5846_v49 }
0x1a4e   : > { %v4026_v60 = vadd.f32 %v4480_v44, %v4019_v54 }
0x1a50   : > { %5406 = vmatmul.mubr.msk.f32.gmra.mrb[120].mxu0 %vm266_vm1, %v4026_v60  ;;  %v4259_v60 = vld [vmem:[%s7146_s1 + $0x4a] sm:$0x1] }
0x1b1b   : > { %v4111_v35 = vpop.f32.mrb[116].mxu0 }
0x1b1c   : > { %v4112_v3 = vadd.f32 %v4481_v2, %v4111_v35  ;;  %v5401_v6 = vpop.f32.mrb[117].mxu0 }
0x1b1e   : > { %v4128_v1 = vmul.f32 0.70710677, %v4112_v3  ;;  %v4125_v11 = vmul.f32 0.5, %v4112_v3 }
0x1b1f   : > { %v4116_v7 = vpop.f32.mrb[118].mxu0 }
0x1b20   : > { %5823 = verf.f32 %v4128_v1  ;;  %v4117_v41 = vadd.f32 %v4481_v2, %v4116_v7  ;;  %v5404_v9 = vpop.f32.mrb[119].mxu0 }
0x1b22   : > { %v4129_v5 = vmul.f32 0.70710677, %v4117_v41  ;;  %v4126_v23 = vmul.f32 0.5, %v4117_v41 }
0x1b23   : > { %v4121_v10 = vpop.f32.mrb[120].mxu0 }
0x1b24   : > { %5825 = verf.f32 %v4129_v5  ;;  %v4122_v15 = vadd.f32 %v4481_v2, %v4121_v10  ;;  %v5407_v8 = vpop.f32.mrb[121].mxu0 }
0x1b26   : > { %v4130_v19 = vmul.f32 0.70710677, %v4122_v15  ;;  %v4127_v20 = vmul.f32 0.5, %v4122_v15 }
0x1b28   : > { %5827 = verf.f32 %v4130_v19 }
0x1b2a   : > { %v5824_v21 = vpop.eup %5823 }
0x1b2b   : > { %v4134_v13 = vadd.f32 1.0, %v5824_v21 }
0x1b2d   : > { %v4137_v22 = vmul.f32 %v4134_v13, %v4125_v11 }
0x1b2e   : > { %v5826_v26 = vpop.eup %5825 }
0x1b2f   : > { %v4135_v25 = vadd.f32 1.0, %v5826_v26  ;;  %5441 = vmatmul.mubr.f32.vlgmr.msra.gmra.mrb[102].mxu1 %v4137_v22 }
0x1b30   : > { %5443 = vmatprep.mubr.msk.f32.mxu1 %vm5845_vm2, %v5846_v49 }
0x1b31   : > { %v4138_v16 = vmul.f32 %v4135_v25, %v4126_v23 }
0x1b32   : > { %v5828_v28 = vpop.eup %5827 }
0x1b33   : > { %v4136_v29 = vadd.f32 1.0, %v5828_v28  ;;  %5444 = vmatmul.mubr.f32.gmra.mrb[104].mxu1 %v4138_v16 }
0x1b34   : > { %5446 = vmatprep.mubr.msk.f32.mxu1 %vm5845_vm2, %v5846_v49 }
0x1b35   : > { %v4139_v27 = vmul.f32 %v4136_v29, %v4127_v20 }
0x1b37   : > { %5447 = vmatmul.mubr.f32.gmra.mrb[106].mxu1 %v4139_v27 }
0x1c02   : > { %v4222_v33 = vpop.f32.mrb[102].mxu1 }
0x1c03   : > { %v5442_v37 = vpop.f32.mrb[103].mxu1 }
0x1c06   : > { %v4226_v39 = vpop.f32.mrb[104].mxu1 }
0x1c07   : > { %v5445_v31 = vpop.f32.mrb[105].mxu1 }
0x1c0a   : > { %v4230_v46 = vpop.f32.mrb[106].mxu1 }
0x1c0b   : > { %v4234_v32 = vadd.f32 %v4230_v46, %v7023_v24  ;;  %v5448_v36 = vpop.f32.mrb[107].mxu1  ;;  %v4241_v24 = vld [vmem:[%s7146_s1 + $0x48] sm:$0x1] }
0x1c0d   : > { %v4240_v17 = vadd.f32 %v4485_v42, %v4234_v32 }
0x1c0f   : > { %v4244_v40 = vsel %vm4243_vm6, %v4240_v17, 0.0 }
0x1c10   : > { %4245 = vadd.xlane.f32.xlu0 %v4244_v40 }
0x1c9d   : > { %v4246_v49 = vpop.xlane.xlu0 %4245 }
0x1c9e   : > { %v4247_v43 = vmul.f32 0.03125, %v4246_v49 }
0x1ca0   : > { %v4248_v44 = vsub.f32 %v4240_v17, %v4247_v43 }
0x1ca2   : > { %v4249_v45 = vmul.f32 %v4248_v44, %v4248_v44 }
0x1ca4   : > { %v4250_v47 = vsel %vm4243_vm6, %v4249_v45, 0.0 }
0x1ca5   : > { %4251 = vadd.xlane.f32.xlu1 %v4250_v47 }
0x1d32   : > { %v4252_v38 = vpop.xlane.xlu1 %4251 }
0x1d33   : > { %v4253_v48 = vmul.f32 0.03125, %v4252_v38 }
0x1d35   : > { %v4254_v50 = vadd.f32 1e-06, %v4253_v48 }
0x1d37   : > { %5829 = vrsqrt.f32 %v4254_v50 }
0x1d41   : > { %v5830_v53 = vpop.eup %5829 }
0x1d42   : > { %v4256_v55 = vmul.f32 %v5830_v53, %v4248_v44 }
0x1d44   : > { %v4257_v54 = vmul.f32 %v4256_v55, %v4241_v24 }
0x1d46   : > { %v4258_v61 = vadd.f32 %v4257_v54, %v4242_v56 }
0x1d48   : > { %v4260_v34 = vmul.f32 %v4259_v60, %v4258_v61 }
0x1d4a   : > { %v4261_v18 = vsel %vm4243_vm6, %v4260_v34, 0.0 }
0x1d4b   : > { %4262 = vadd.xlane.f32.xlu0 %v4261_v18 }
0x1dd8   : > { %v4263_v51 = vpop.xlane.xlu0 %4262 }
0x1dd9   : > { %v4265_v58 = vadd.f32 %v4264_v52, %v4263_v51 }
0x1ddb   : > { %v4486_v57 = vmul.f32 -1.442695, %v4265_v58 }
0x1ddd   : > { %5831 = vpow2.f32 %v4486_v57 }
0x1de7   : > { %v5832_v62 = vpop.eup %5831 }
0x1de8   : > { %v4269_v30 = vadd.f32 1.0, %v5832_v62 }
0x1dea   : > { %5833 = vrcp.f32 %v4269_v30 }
0x1df4   : > { %v5834_v63 = vpop.eup %5833 }
0x1df5   : > { %4273 = vst.msk [vmem:[%s166_s20] sm:$0x1] %vm4272_vm7, %v5834_v63 }
0x1df6 PF: > { %s13_s12 = sadd.s32 1, %s5842_s12  }
0x1df7   : > { %p10_p4 = scmp.ge.s32.totalorder %s13_s12, 4  }
0x1df9   :  { %12 = sbr.rel (!%p10_p4) target bundleno = 1 (0x1), region = 62 }

</bundles_post_ra>
